<compile_context>
chip_gen: v7x
topology: tpu7x:2x2x1
jax: 0.10.0
libtpu: 0.0.40
codegen_flags: <defaults>
</compile_context>

<pallas_src>
import functools

import jax
import jax.numpy as jnp
from jax.experimental import pallas as pl
from jax.experimental.pallas import tpu as pltpu


# ----------------------------------------------------------------------------
# small helpers
# ----------------------------------------------------------------------------
def _round_up(x, m):
    return (x + m - 1) // m * m


def _largest_tile(dim_p, base, max_tile):
    """Largest multiple of `base` that divides dim_p (a multiple of base) and is <= max_tile."""
    q = dim_p // base
    best = base
    r = 2
    while r * base <= max_tile:
        if q % r == 0:
            best = r * base
        r += 1
    return min(best, dim_p)


def _pick_in_rows(nc, hwp):
    """Rows per InstanceNorm block: multiple of 8, in+out double-buffered <= ~8 MiB."""
    budget_rows = (8 * 1024 * 1024) // (16 * hwp)
    return min(256, max(8, (budget_rows // 8) * 8), _round_up(nc, 8))


# ----------------------------------------------------------------------------
# Pallas kernels
# ----------------------------------------------------------------------------
def _matmul_bias_act_kernel(a_ref, w_ref, b_ref, o_ref, acc_ref, *, act):
    @pl.when(pl.program_id(2) == 0)
    def _():
        acc_ref[...] = jnp.zeros_like(acc_ref)

    acc_ref[...] += jnp.dot(a_ref[...], w_ref[...],
                            preferred_element_type=jnp.float32)

    @pl.when(pl.program_id(2) == pl.num_programs(2) - 1)
    def _():
        y = acc_ref[...] + b_ref[...]          # f32 epilogue (v5e-safe)
        if act == "relu":
            y = jnp.maximum(y, 0.0)
        elif act == "tanh":
            y = jnp.tanh(y)
        o_ref[...] = y.astype(o_ref.dtype)


def _instance_norm_act_kernel(x_ref, o_ref, *, relu, eps, hw):
    x = x_ref[...]                              # (br, HWp) f32; zero-padded cols are inert
    inv_hw = 1.0 / hw
    s = jnp.sum(x, axis=1, keepdims=True)
    ss = jnp.sum(x * x, axis=1, keepdims=True)  # single pass over x
    mean = s * inv_hw
    var = jnp.maximum(ss * inv_hw - mean * mean, 0.0)
    y = (x - mean) * jax.lax.rsqrt(var + eps)
    if relu:
        y = jnp.maximum(y, 0.0)
    o_ref[...] = y.astype(o_ref.dtype)


# ----------------------------------------------------------------------------
# Pallas wrappers
# ----------------------------------------------------------------------------
def matmul_bias_act(a, packed, act="none"):
    """act(a @ W + b) with pre-packed bf16 weights, tiled on the MXU."""
    M, K = a.shape
    w_p, b_p = packed["w"], packed["b"]
    Kp, Np = w_p.shape
    N = packed["N"]

    tm = min(512, _round_up(M, 8))
    Mp = _round_up(M, tm)
    tk = _largest_tile(Kp, 128, 512)
    tn = _largest_tile(Np, 128, 256)

    # only pad the ragged edges (no full zeros+scatter copy)
    a_p = jnp.pad(a.astype(jnp.bfloat16), ((0, Mp - M), (0, Kp - K)))

    grid = (Mp // tm, Np // tn, Kp // tk)
    cost = pl.CostEstimate(
        flops=2 * Mp * Kp * Np,
        transcendentals=Mp * Np if act == "tanh" else 0,
        bytes_accessed=Mp * Kp * 2 + Kp * Np * 2 + Mp * Np * 4 + Np * 4,
    )

    out = pl.pallas_call(
        functools.partial(_matmul_bias_act_kernel, act=act),
        out_shape=jax.ShapeDtypeStruct((Mp, Np), jnp.float32),
        grid=grid,
        in_specs=[
            pl.BlockSpec((tm, tk), lambda i, j, k: (i, k)),
            pl.BlockSpec((tk, tn), lambda i, j, k: (k, j)),   # independent of M index
            pl.BlockSpec((1, tn), lambda i, j, k: (0, j)),
        ],
        out_specs=pl.BlockSpec((tm, tn), lambda i, j, k: (i, j)),
        scratch_shapes=[pltpu.VMEM((tm, tn), jnp.float32)],
        compiler_params=pltpu.CompilerParams(
            dimension_semantics=("parallel", "parallel", "arbitrary")),
        cost_estimate=cost,
    )(a_p, w_p, b_p)
    return out[:M, :N]


def instance_norm_act(x_nhwc, relu):
    """nn.InstanceNorm2d(affine=False, eps=1e-5) [+ ReLU], lane-dense (N*C, H*W) layout."""
    N, H, W, C = x_nhwc.shape
    HW = H * W
    NC = N * C
    # spatial on the 128-lane axis, one (n, c) instance per row
    z = jnp.transpose(x_nhwc.reshape(N, HW, C), (0, 2, 1)).reshape(NC, HW)
    HWp = _round_up(HW, 128)
    br = _pick_in_rows(NC, HWp)
    NCp = _round_up(NC, br)
    z = jnp.pad(z, ((0, NCp - NC), (0, HWp - HW)))

    out = pl.pallas_call(
        functools.partial(_instance_norm_act_kernel, relu=relu, eps=1e-5, hw=float(HW)),
        out_shape=jax.ShapeDtypeStruct((NCp, HWp), jnp.float32),
        grid=(NCp // br,),
        in_specs=[pl.BlockSpec((br, HWp), lambda i: (i, 0))],
        out_specs=pl.BlockSpec((br, HWp), lambda i: (i, 0)),
        compiler_params=pltpu.CompilerParams(dimension_semantics=("parallel",)),
    )(z)

    out = out[:NC, :HW].reshape(N, C, HW)
    return jnp.transpose(out, (0, 2, 1)).reshape(N, H, W, C)


# ----------------------------------------------------------------------------
# Conv / ConvTranspose glue (im2col) + one-time weight packing
# ----------------------------------------------------------------------------
def _im2col(x_padded, kh, kw, stride):
    N, Hp, Wp, C = x_padded.shape
    OH = (Hp - kh) // stride + 1
    OW = (Wp - kw) // stride + 1
    cols = []
    for i in range(kh):
        for j in range(kw):
            cols.append(
                x_padded[:, i: i + stride * OH: stride, j: j + stride * OW: stride, :]
            )
    # concatenate along channels -> (N, OH, OW, kh*kw*C) with (i, j, c) ordering
    patches = jnp.concatenate(cols, axis=-1)
    return patches.reshape(N * OH * OW, kh * kw * C), OH, OW


def _pack_matrix(w2, b):
    K, N = w2.shape
    Kp = _round_up(K, 128)
    Np = _round_up(N, 128)
    w_p = jnp.pad(w2, ((0, Kp - K), (0, Np - N))).astype(jnp.bfloat16)
    b_p = jnp.pad(b.astype(jnp.float32), (0, Np - N)).reshape(1, Np)
    return w_p, b_p, K, N


def _pack_conv(w_torch, b):
    """PyTorch Conv2d weight (Cout, Cin, KH, KW) -> packed (KH*KW*Cin, Cout)."""
    cout, cin, kh, kw = w_torch.shape
    w2 = jnp.transpose(w_torch, (2, 3, 1, 0)).reshape(kh * kw * cin, cout)
    w_p, b_p, K, N = _pack_matrix(w2, b)
    return {"w": w_p, "b": b_p, "K": K, "N": N, "kh": kh, "kw": kw, "cout": cout}


def _pack_tconv(w_torch, b):
    """PyTorch ConvTranspose2d weight (Cin, Cout, KH, KW) -> equivalent forward-conv packed."""
    cin, cout, kh, kw = w_torch.shape
    w_eq = jnp.transpose(w_torch[:, :, ::-1, ::-1], (2, 3, 0, 1))  # (kh, kw, Cin, Cout)
    w2 = w_eq.reshape(kh * kw * cin, cout)
    w_p, b_p, K, N = _pack_matrix(w2, b)
    return {"w": w_p, "b": b_p, "K": K, "N": N, "kh": kh, "kw": kw, "cout": cout}


def conv2d_reflect(x_nhwc, packed, stride, pad, act="none"):
    x_p = jnp.pad(x_nhwc, ((0, 0), (pad, pad), (pad, pad), (0, 0)), mode="reflect")
    a, OH, OW = _im2col(x_p, packed["kh"], packed["kw"], stride)
    y = matmul_bias_act(a, packed, act=act)
    return y.reshape(x_nhwc.shape[0], OH, OW, packed["cout"])


def conv_transpose2d(x_nhwc, packed, stride, pad, output_pad, act="none"):
    N, H, W, Cin = x_nhwc.shape
    kh, kw = packed["kh"], packed["kw"]
    # zero-dilate the input by the stride
    Hd, Wd = (H - 1) * stride + 1, (W - 1) * stride + 1
    x_d = jnp.zeros((N, Hd, Wd, Cin), x_nhwc.dtype).at[:, ::stride, ::stride, :].set(x_nhwc)
    lo = kh - 1 - pad
    hi = kh - 1 - pad + output_pad
    assert lo >= 0, "conv_transpose2d requires pad <= kernel_size - 1"
    x_p = jnp.pad(x_d, ((0, 0), (lo, hi), (lo, hi), (0, 0)))
    a, OH, OW = _im2col(x_p, kh, kw, 1)
    y = matmul_bias_act(a, packed, act=act)
    return y.reshape(N, OH, OW, packed["cout"])


# ----------------------------------------------------------------------------
# Generator: parameter init / packing + forward (mirrors the PyTorch module)
# ----------------------------------------------------------------------------
def init_params(key, in_channels, features):
    def conv_p(k, cout, cin, ksz):
        k1, k2 = jax.random.split(k)
        bound = 1.0 / (cin * ksz * ksz) ** 0.5
        w = jax.random.uniform(k1, (cout, cin, ksz, ksz), jnp.float32, -bound, bound)
        b = jax.random.uniform(k2, (cout,), jnp.float32, -bound, bound)
        return w, b

    def tconv_p(k, cin, cout, ksz):
        k1, k2 = jax.random.split(k)
        bound = 1.0 / (cin * ksz * ksz) ** 0.5
        w = jax.random.uniform(k1, (cin, cout, ksz, ksz), jnp.float32, -bound, bound)
        b = jax.random.uniform(k2, (cout,), jnp.float32, -bound, bound)
        return w, b

    F = features
    keys = jax.random.split(key, 8)
    return {
        "conv_in": conv_p(keys[0], F, in_channels, 7),
        "conv_1": conv_p(keys[1], F * 2, F, 3),
        "conv_2": conv_p(keys[2], F * 4, F * 2, 3),
        "conv_chain_1": conv_p(keys[3], F * 4, F * 4, 3),
        "conv_chain_2": conv_p(keys[4], F * 4, F * 4, 3),
        "T_conv_1": tconv_p(keys[5], F * 4, F * 2, 3),
        "T_conv_2": tconv_p(keys[6], F * 2, F, 3),
        "conv_out": conv_p(keys[7], 3, F, 7),
    }


def pack_params(params):
    """One-time layout packing (transpose/flip, flatten, pad, bf16) of all conv weights."""
    return {
        "conv_in": _pack_conv(*params["conv_in"]),
        "conv_1": _pack_conv(*params["conv_1"]),
        "conv_2": _pack_conv(*params["conv_2"]),
        "conv_chain_1": _pack_conv(*params["conv_chain_1"]),
        "conv_chain_2": _pack_conv(*params["conv_chain_2"]),
        "T_conv_1": _pack_tconv(*params["T_conv_1"]),
        "T_conv_2": _pack_tconv(*params["T_conv_2"]),
        "conv_out": _pack_conv(*params["conv_out"]),
    }


def generator_forward(packed, x_nchw):
    x = jnp.transpose(x_nchw, (0, 2, 3, 1)).astype(jnp.float32)  # NCHW -> NHWC

    x = conv2d_reflect(x, packed["conv_in"], stride=1, pad=3, act="relu")

    x = conv2d_reflect(x, packed["conv_1"], stride=2, pad=1, act="none")
    x = instance_norm_act(x, relu=True)

    x = conv2d_reflect(x, packed["conv_2"], stride=2, pad=1, act="none")
    x = instance_norm_act(x, relu=True)

    # NOTE: the reference module re-applies the SAME conv_chain_1/2 weights 9x,
    # with no residual skip connections — reproduced exactly.
    for _ in range(9):
        x = conv2d_reflect(x, packed["conv_chain_1"], stride=1, pad=1, act="none")
        x = instance_norm_act(x, relu=True)
        x = conv2d_reflect(x, packed["conv_chain_2"], stride=1, pad=1, act="none")
        x = instance_norm_act(x, relu=False)  # nn.Identity after the norm

    x = conv_transpose2d(x, packed["T_conv_1"], stride=2, pad=1, output_pad=1, act="none")
    x = instance_norm_act(x, relu=True)

    x = conv_transpose2d(x, packed["T_conv_2"], stride=2, pad=1, output_pad=1, act="none")
    x = instance_norm_act(x, relu=True)

    x = conv2d_reflect(x, packed["conv_out"], stride=1, pad=3, act="tanh")  # tanh fused

    return jnp.transpose(x, (0, 3, 1, 2))  # NHWC -> NCHW


if __name__ == "__main__":
    key = jax.random.PRNGKey(0)
    k_x, k_p = jax.random.split(key)

    batch, in_channels, features, spatial = 2, 3, 8, 16
    x = jax.random.normal(k_x, (batch, in_channels, spatial, spatial), jnp.float32)
    params = init_params(k_p, in_channels, features)
    packed = pack_params(params)  # one-time weight packing, outside the hot path

    fwd = jax.jit(functools.partial(generator_forward, packed))
    out = jax.block_until_ready(fwd(x))

    assert out.shape == (batch, 3, spatial, spatial), out.shape
    assert bool(jnp.all(jnp.isfinite(out)))
    print("KERNEL_OK")
</pallas_src>

<mosaic_0001>
module attributes {stable_mosaic.version = 11 : i64} {
  func.func @_matmul_bias_act_kernel(%arg0: i32, %arg1: i32, %arg2: i32, %arg3: memref<512x256xbf16, #tpu.memory_space<vmem>>, %arg4: memref<256x128xbf16, #tpu.memory_space<vmem>>, %arg5: memref<1x128xf32, #tpu.memory_space<vmem>>, %arg6: memref<512x128xf32, #tpu.memory_space<vmem>>, %arg7: memref<512x128xf32, #tpu.memory_space<vmem>>) attributes {dimension_semantics = [#tpu.dimension_semantics<parallel>, #tpu.dimension_semantics<parallel>, #tpu.dimension_semantics<arbitrary>], iteration_bounds = array<i64: 1, 1, 1>, scalar_prefetch = 0 : i64, scratch_operands = 1 : i64, tpu.core_type = #tpu.core_type<tc>, window_params = [{transform_indices = @transform_0, window_bounds = array<i64: 512, 256>}, {transform_indices = @transform_1, window_bounds = array<i64: 256, 128>}, {transform_indices = @transform_2, window_bounds = array<i64: 1, 128>}, {transform_indices = @transform_3, window_bounds = array<i64: 512, 128>}]} {
    %c0_i32 = arith.constant 0 : i32
    %0 = arith.cmpi eq, %arg2, %c0_i32 : i32
    %1 = arith.extui %0 : i1 to i32
    %c0_i32_0 = arith.constant 0 : i32
    %2 = arith.cmpi ne, %1, %c0_i32_0 : i32
    scf.if %2 {
      %cst_10 = arith.constant 0.000000e+00 : f32
      %12 = vector.broadcast %cst_10 : f32 to vector<512x128xf32>
      %c0_11 = arith.constant 0 : index
      %c0_12 = arith.constant 0 : index
      %13 = vector.load %arg7[%c0_11, %c0_12] : memref<512x128xf32, #tpu.memory_space<vmem>>, vector<512x128xf32>
      tpu.vector_store %arg7[%c0_11, %c0_12], %12 {strides = array<i32>} : memref<512x128xf32, #tpu.memory_space<vmem>>, vector<512x128xf32>,
    } else {
    }
    %c0 = arith.constant 0 : index
    %c0_1 = arith.constant 0 : index
    %3 = vector.load %arg7[%c0, %c0_1] : memref<512x128xf32, #tpu.memory_space<vmem>>, vector<512x128xf32>
    %c0_2 = arith.constant 0 : index
    %c0_3 = arith.constant 0 : index
    %4 = vector.load %arg3[%c0_2, %c0_3] : memref<512x256xbf16, #tpu.memory_space<vmem>>, vector<512x256xbf16>
    %c0_4 = arith.constant 0 : index
    %c0_5 = arith.constant 0 : index
    %5 = vector.load %arg4[%c0_4, %c0_5] : memref<256x128xbf16, #tpu.memory_space<vmem>>, vector<256x128xbf16>
    %cst = arith.constant dense<0.000000e+00> : vector<512x128xf32>
    %6 = tpu.matmul %4, %5, %cst {dimension_numbers = #tpu.dot_dimension_numbers<[1], [0], [0], [1], [0, 0, 1, 1], [], []>} : vector<512x256xbf16>, vector<256x128xbf16>, vector<512x128xf32> -> vector<512x128xf32>
    %7 = arith.addf %3, %6 : vector<512x128xf32>
    %c0_6 = arith.constant 0 : index
    %c0_7 = arith.constant 0 : index
    %8 = vector.load %arg7[%c0_6, %c0_7] : memref<512x128xf32, #tpu.memory_space<vmem>>, vector<512x128xf32>
    tpu.vector_store %arg7[%c0_6, %c0_7], %7 {strides = array<i32>} : memref<512x128xf32, #tpu.memory_space<vmem>>, vector<512x128xf32>,
    %c0_i32_8 = arith.constant 0 : i32
    %9 = arith.cmpi eq, %arg2, %c0_i32_8 : i32
    %10 = arith.extui %9 : i1 to i32
    %c0_i32_9 = arith.constant 0 : i32
    %11 = arith.cmpi ne, %10, %c0_i32_9 : i32
    scf.if %11 {
      %c0_10 = arith.constant 0 : index
      %c0_11 = arith.constant 0 : index
      %12 = vector.load %arg7[%c0_10, %c0_11] : memref<512x128xf32, #tpu.memory_space<vmem>>, vector<512x128xf32>
      %c0_12 = arith.constant 0 : index
      %c0_13 = arith.constant 0 : index
      %13 = vector.load %arg5[%c0_12, %c0_13] : memref<1x128xf32, #tpu.memory_space<vmem>>, vector<1x128xf32>
      %14 = vector.broadcast %13 : vector<1x128xf32> to vector<512x128xf32>
      %15 = arith.addf %12, %14 : vector<512x128xf32>
      %cst_14 = arith.constant 0.000000e+00 : f32
      %16 = vector.broadcast %cst_14 : f32 to vector<512x128xf32>
      %17 = arith.maximumf %15, %16 : vector<512x128xf32>
      %c0_15 = arith.constant 0 : index
      %c0_16 = arith.constant 0 : index
      %18 = vector.load %arg6[%c0_15, %c0_16] : memref<512x128xf32, #tpu.memory_space<vmem>>, vector<512x128xf32>
      tpu.vector_store %arg6[%c0_15, %c0_16], %17 {strides = array<i32>} : memref<512x128xf32, #tpu.memory_space<vmem>>, vector<512x128xf32>,
    } else {
    }
    return
  }
  func.func @transform_0(%arg0: i32, %arg1: i32, %arg2: i32) -> (i32, i32) {
    %c0_i32 = arith.constant 0 : i32
    return %arg0, %arg2 : i32, i32
  }
  func.func @transform_1(%arg0: i32, %arg1: i32, %arg2: i32) -> (i32, i32) {
    %c0_i32 = arith.constant 0 : i32
    return %arg2, %arg1 : i32, i32
  }
  func.func @transform_2(%arg0: i32, %arg1: i32, %arg2: i32) -> (i32, i32) {
    %c0_i32 = arith.constant 0 : i32
    %c0_i32_0 = arith.constant 0 : i32
    return %c0_i32, %arg1 : i32, i32
  }
  func.func @transform_3(%arg0: i32, %arg1: i32, %arg2: i32) -> (i32, i32) {
    %c0_i32 = arith.constant 0 : i32
    return %arg0, %arg1 : i32, i32
  }
}

module attributes {stable_mosaic.version = 11 : i64} {
  func.func @_matmul_bias_act_kernel(%arg0: i32, %arg1: i32, %arg2: i32, %arg3: memref<128x128xbf16, #tpu.memory_space<vmem>>, %arg4: memref<128x128xbf16, #tpu.memory_space<vmem>>, %arg5: memref<1x128xf32, #tpu.memory_space<vmem>>, %arg6: memref<128x128xf32, #tpu.memory_space<vmem>>, %arg7: memref<128x128xf32, #tpu.memory_space<vmem>>) attributes {dimension_semantics = [#tpu.dimension_semantics<parallel>, #tpu.dimension_semantics<parallel>, #tpu.dimension_semantics<arbitrary>], iteration_bounds = array<i64: 1, 1, 1>, scalar_prefetch = 0 : i64, scratch_operands = 1 : i64, tpu.core_type = #tpu.core_type<tc>, window_params = [{transform_indices = @transform_0, window_bounds = array<i64: 128, 128>}, {transform_indices = @transform_1, window_bounds = array<i64: 128, 128>}, {transform_indices = @transform_2, window_bounds = array<i64: 1, 128>}, {transform_indices = @transform_3, window_bounds = array<i64: 128, 128>}]} {
    %c0_i32 = arith.constant 0 : i32
    %0 = arith.cmpi eq, %arg2, %c0_i32 : i32
    %1 = arith.extui %0 : i1 to i32
    %c0_i32_0 = arith.constant 0 : i32
    %2 = arith.cmpi ne, %1, %c0_i32_0 : i32
    scf.if %2 {
      %cst_10 = arith.constant 0.000000e+00 : f32
      %12 = vector.broadcast %cst_10 : f32 to vector<128x128xf32>
      %c0_11 = arith.constant 0 : index
      %c0_12 = arith.constant 0 : index
      %13 = vector.load %arg7[%c0_11, %c0_12] : memref<128x128xf32, #tpu.memory_space<vmem>>, vector<128x128xf32>
      tpu.vector_store %arg7[%c0_11, %c0_12], %12 {strides = array<i32>} : memref<128x128xf32, #tpu.memory_space<vmem>>, vector<128x128xf32>,
    } else {
    }
    %c0 = arith.constant 0 : index
    %c0_1 = arith.constant 0 : index
    %3 = vector.load %arg7[%c0, %c0_1] : memref<128x128xf32, #tpu.memory_space<vmem>>, vector<128x128xf32>
    %c0_2 = arith.constant 0 : index
    %c0_3 = arith.constant 0 : index
    %4 = vector.load %arg3[%c0_2, %c0_3] : memref<128x128xbf16, #tpu.memory_space<vmem>>, vector<128x128xbf16>
    %c0_4 = arith.constant 0 : index
    %c0_5 = arith.constant 0 : index
    %5 = vector.load %arg4[%c0_4, %c0_5] : memref<128x128xbf16, #tpu.memory_space<vmem>>, vector<128x128xbf16>
    %cst = arith.constant dense<0.000000e+00> : vector<128x128xf32>
    %6 = tpu.matmul %4, %5, %cst {dimension_numbers = #tpu.dot_dimension_numbers<[1], [0], [0], [1], [0, 0, 1, 1], [], []>} : vector<128x128xbf16>, vector<128x128xbf16>, vector<128x128xf32> -> vector<128x128xf32>
    %7 = arith.addf %3, %6 : vector<128x128xf32>
    %c0_6 = arith.constant 0 : index
    %c0_7 = arith.constant 0 : index
    %8 = vector.load %arg7[%c0_6, %c0_7] : memref<128x128xf32, #tpu.memory_space<vmem>>, vector<128x128xf32>
    tpu.vector_store %arg7[%c0_6, %c0_7], %7 {strides = array<i32>} : memref<128x128xf32, #tpu.memory_space<vmem>>, vector<128x128xf32>,
    %c0_i32_8 = arith.constant 0 : i32
    %9 = arith.cmpi eq, %arg2, %c0_i32_8 : i32
    %10 = arith.extui %9 : i1 to i32
    %c0_i32_9 = arith.constant 0 : i32
    %11 = arith.cmpi ne, %10, %c0_i32_9 : i32
    scf.if %11 {
      %c0_10 = arith.constant 0 : index
      %c0_11 = arith.constant 0 : index
      %12 = vector.load %arg7[%c0_10, %c0_11] : memref<128x128xf32, #tpu.memory_space<vmem>>, vector<128x128xf32>
      %c0_12 = arith.constant 0 : index
      %c0_13 = arith.constant 0 : index
      %13 = vector.load %arg5[%c0_12, %c0_13] : memref<1x128xf32, #tpu.memory_space<vmem>>, vector<1x128xf32>
      %14 = vector.broadcast %13 : vector<1x128xf32> to vector<128x128xf32>
      %15 = arith.addf %12, %14 : vector<128x128xf32>
      %c0_14 = arith.constant 0 : index
      %c0_15 = arith.constant 0 : index
      %16 = vector.load %arg6[%c0_14, %c0_15] : memref<128x128xf32, #tpu.memory_space<vmem>>, vector<128x128xf32>
      tpu.vector_store %arg6[%c0_14, %c0_15], %15 {strides = array<i32>} : memref<128x128xf32, #tpu.memory_space<vmem>>, vector<128x128xf32>,
    } else {
    }
    return
  }
  func.func @transform_0(%arg0: i32, %arg1: i32, %arg2: i32) -> (i32, i32) {
    %c0_i32 = arith.constant 0 : i32
    return %arg0, %arg2 : i32, i32
  }
  func.func @transform_1(%arg0: i32, %arg1: i32, %arg2: i32) -> (i32, i32) {
    %c0_i32 = arith.constant 0 : i32
    return %arg2, %arg1 : i32, i32
  }
  func.func @transform_2(%arg0: i32, %arg1: i32, %arg2: i32) -> (i32, i32) {
    %c0_i32 = arith.constant 0 : i32
    %c0_i32_0 = arith.constant 0 : i32
    return %c0_i32, %arg1 : i32, i32
  }
  func.func @transform_3(%arg0: i32, %arg1: i32, %arg2: i32) -> (i32, i32) {
    %c0_i32 = arith.constant 0 : i32
    return %arg0, %arg1 : i32, i32
  }
}

module attributes {stable_mosaic.version = 11 : i64} {
  func.func @_instance_norm_act_kernel(%arg0: i32, %arg1: memref<32x128xf32, #tpu.memory_space<vmem>>, %arg2: memref<32x128xf32, #tpu.memory_space<vmem>>) attributes {dimension_semantics = [#tpu.dimension_semantics<parallel>], iteration_bounds = array<i64: 1>, scalar_prefetch = 0 : i64, scratch_operands = 0 : i64, tpu.core_type = #tpu.core_type<tc>, window_params = [{transform_indices = @transform_0, window_bounds = array<i64: 32, 128>}, {transform_indices = @transform_1, window_bounds = array<i64: 32, 128>}]} {
    %c0 = arith.constant 0 : index
    %c0_0 = arith.constant 0 : index
    %0 = vector.load %arg1[%c0, %c0_0] : memref<32x128xf32, #tpu.memory_space<vmem>>, vector<32x128xf32>
    %cst = arith.constant dense<0.000000e+00> : vector<32xf32>
    %1 = vector.multi_reduction <add>, %0, %cst [1] : vector<32x128xf32> to vector<32xf32>
    %2 = vector.shape_cast %1 : vector<32xf32> to vector<32x1xf32>
    %3 = arith.mulf %0, %0 : vector<32x128xf32>
    %cst_1 = arith.constant dense<0.000000e+00> : vector<32xf32>
    %4 = vector.multi_reduction <add>, %3, %cst_1 [1] : vector<32x128xf32> to vector<32xf32>
    %5 = vector.shape_cast %4 : vector<32xf32> to vector<32x1xf32>
    %cst_2 = arith.constant 1.562500e-02 : f32
    %6 = vector.broadcast %cst_2 : f32 to vector<32x1xf32>
    %7 = arith.mulf %2, %6 : vector<32x1xf32>
    %cst_3 = arith.constant 1.562500e-02 : f32
    %8 = vector.broadcast %cst_3 : f32 to vector<32x1xf32>
    %9 = arith.mulf %5, %8 : vector<32x1xf32>
    %10 = arith.mulf %7, %7 : vector<32x1xf32>
    %11 = arith.subf %9, %10 : vector<32x1xf32>
    %cst_4 = arith.constant 0.000000e+00 : f32
    %12 = vector.broadcast %cst_4 : f32 to vector<32x1xf32>
    %13 = arith.maximumf %11, %12 : vector<32x1xf32>
    %14 = vector.broadcast %7 : vector<32x1xf32> to vector<32x128xf32>
    %15 = arith.subf %0, %14 : vector<32x128xf32>
    %cst_5 = arith.constant 9.99999974E-6 : f32
    %16 = vector.broadcast %cst_5 : f32 to vector<32x1xf32>
    %17 = arith.addf %13, %16 : vector<32x1xf32>
    %18 = math.rsqrt %17 : vector<32x1xf32>
    %19 = vector.broadcast %18 : vector<32x1xf32> to vector<32x128xf32>
    %20 = arith.mulf %15, %19 : vector<32x128xf32>
    %cst_6 = arith.constant 0.000000e+00 : f32
    %21 = vector.broadcast %cst_6 : f32 to vector<32x128xf32>
    %22 = arith.maximumf %20, %21 : vector<32x128xf32>
    %c0_7 = arith.constant 0 : index
    %c0_8 = arith.constant 0 : index
    %23 = vector.load %arg2[%c0_7, %c0_8] : memref<32x128xf32, #tpu.memory_space<vmem>>, vector<32x128xf32>
    tpu.vector_store %arg2[%c0_7, %c0_8], %22 {strides = array<i32>} : memref<32x128xf32, #tpu.memory_space<vmem>>, vector<32x128xf32>,
    return
  }
  func.func @transform_0(%arg0: i32) -> (i32, i32) {
    %c0_i32 = arith.constant 0 : i32
    %c0_i32_0 = arith.constant 0 : i32
    return %arg0, %c0_i32 : i32, i32
  }
  func.func @transform_1(%arg0: i32) -> (i32, i32) {
    %c0_i32 = arith.constant 0 : i32
    %c0_i32_0 = arith.constant 0 : i32
    return %arg0, %c0_i32 : i32, i32
  }
}

module attributes {stable_mosaic.version = 11 : i64} {
  func.func @_instance_norm_act_kernel(%arg0: i32, %arg1: memref<64x128xf32, #tpu.memory_space<vmem>>, %arg2: memref<64x128xf32, #tpu.memory_space<vmem>>) attributes {dimension_semantics = [#tpu.dimension_semantics<parallel>], iteration_bounds = array<i64: 1>, scalar_prefetch = 0 : i64, scratch_operands = 0 : i64, tpu.core_type = #tpu.core_type<tc>, window_params = [{transform_indices = @transform_0, window_bounds = array<i64: 64, 128>}, {transform_indices = @transform_1, window_bounds = array<i64: 64, 128>}]} {
    %c0 = arith.constant 0 : index
    %c0_0 = arith.constant 0 : index
    %0 = vector.load %arg1[%c0, %c0_0] : memref<64x128xf32, #tpu.memory_space<vmem>>, vector<64x128xf32>
    %cst = arith.constant dense<0.000000e+00> : vector<64xf32>
    %1 = vector.multi_reduction <add>, %0, %cst [1] : vector<64x128xf32> to vector<64xf32>
    %2 = vector.shape_cast %1 : vector<64xf32> to vector<64x1xf32>
    %3 = arith.mulf %0, %0 : vector<64x128xf32>
    %cst_1 = arith.constant dense<0.000000e+00> : vector<64xf32>
    %4 = vector.multi_reduction <add>, %3, %cst_1 [1] : vector<64x128xf32> to vector<64xf32>
    %5 = vector.shape_cast %4 : vector<64xf32> to vector<64x1xf32>
    %cst_2 = arith.constant 6.250000e-02 : f32
    %6 = vector.broadcast %cst_2 : f32 to vector<64x1xf32>
    %7 = arith.mulf %2, %6 : vector<64x1xf32>
    %cst_3 = arith.constant 6.250000e-02 : f32
    %8 = vector.broadcast %cst_3 : f32 to vector<64x1xf32>
    %9 = arith.mulf %5, %8 : vector<64x1xf32>
    %10 = arith.mulf %7, %7 : vector<64x1xf32>
    %11 = arith.subf %9, %10 : vector<64x1xf32>
    %cst_4 = arith.constant 0.000000e+00 : f32
    %12 = vector.broadcast %cst_4 : f32 to vector<64x1xf32>
    %13 = arith.maximumf %11, %12 : vector<64x1xf32>
    %14 = vector.broadcast %7 : vector<64x1xf32> to vector<64x128xf32>
    %15 = arith.subf %0, %14 : vector<64x128xf32>
    %cst_5 = arith.constant 9.99999974E-6 : f32
    %16 = vector.broadcast %cst_5 : f32 to vector<64x1xf32>
    %17 = arith.addf %13, %16 : vector<64x1xf32>
    %18 = math.rsqrt %17 : vector<64x1xf32>
    %19 = vector.broadcast %18 : vector<64x1xf32> to vector<64x128xf32>
    %20 = arith.mulf %15, %19 : vector<64x128xf32>
    %cst_6 = arith.constant 0.000000e+00 : f32
    %21 = vector.broadcast %cst_6 : f32 to vector<64x128xf32>
    %22 = arith.maximumf %20, %21 : vector<64x128xf32>
    %c0_7 = arith.constant 0 : index
    %c0_8 = arith.constant 0 : index
    %23 = vector.load %arg2[%c0_7, %c0_8] : memref<64x128xf32, #tpu.memory_space<vmem>>, vector<64x128xf32>
    tpu.vector_store %arg2[%c0_7, %c0_8], %22 {strides = array<i32>} : memref<64x128xf32, #tpu.memory_space<vmem>>, vector<64x128xf32>,
    return
  }
  func.func @transform_0(%arg0: i32) -> (i32, i32) {
    %c0_i32 = arith.constant 0 : i32
    %c0_i32_0 = arith.constant 0 : i32
    return %arg0, %c0_i32 : i32, i32
  }
  func.func @transform_1(%arg0: i32) -> (i32, i32) {
    %c0_i32 = arith.constant 0 : i32
    %c0_i32_0 = arith.constant 0 : i32
    return %arg0, %c0_i32 : i32, i32
  }
}

module attributes {stable_mosaic.version = 11 : i64} {
  func.func @_matmul_bias_act_kernel(%arg0: i32, %arg1: i32, %arg2: i32, %arg3: memref<32x256xbf16, #tpu.memory_space<vmem>>, %arg4: memref<256x128xbf16, #tpu.memory_space<vmem>>, %arg5: memref<1x128xf32, #tpu.memory_space<vmem>>, %arg6: memref<32x128xf32, #tpu.memory_space<vmem>>, %arg7: memref<32x128xf32, #tpu.memory_space<vmem>>) attributes {dimension_semantics = [#tpu.dimension_semantics<parallel>, #tpu.dimension_semantics<parallel>, #tpu.dimension_semantics<arbitrary>], iteration_bounds = array<i64: 1, 1, 1>, scalar_prefetch = 0 : i64, scratch_operands = 1 : i64, tpu.core_type = #tpu.core_type<tc>, window_params = [{transform_indices = @transform_0, window_bounds = array<i64: 32, 256>}, {transform_indices = @transform_1, window_bounds = array<i64: 256, 128>}, {transform_indices = @transform_2, window_bounds = array<i64: 1, 128>}, {transform_indices = @transform_3, window_bounds = array<i64: 32, 128>}]} {
    %c0_i32 = arith.constant 0 : i32
    %0 = arith.cmpi eq, %arg2, %c0_i32 : i32
    %1 = arith.extui %0 : i1 to i32
    %c0_i32_0 = arith.constant 0 : i32
    %2 = arith.cmpi ne, %1, %c0_i32_0 : i32
    scf.if %2 {
      %cst_10 = arith.constant 0.000000e+00 : f32
      %12 = vector.broadcast %cst_10 : f32 to vector<32x128xf32>
      %c0_11 = arith.constant 0 : index
      %c0_12 = arith.constant 0 : index
      %13 = vector.load %arg7[%c0_11, %c0_12] : memref<32x128xf32, #tpu.memory_space<vmem>>, vector<32x128xf32>
      tpu.vector_store %arg7[%c0_11, %c0_12], %12 {strides = array<i32>} : memref<32x128xf32, #tpu.memory_space<vmem>>, vector<32x128xf32>,
    } else {
    }
    %c0 = arith.constant 0 : index
    %c0_1 = arith.constant 0 : index
    %3 = vector.load %arg7[%c0, %c0_1] : memref<32x128xf32, #tpu.memory_space<vmem>>, vector<32x128xf32>
    %c0_2 = arith.constant 0 : index
    %c0_3 = arith.constant 0 : index
    %4 = vector.load %arg3[%c0_2, %c0_3] : memref<32x256xbf16, #tpu.memory_space<vmem>>, vector<32x256xbf16>
    %c0_4 = arith.constant 0 : index
    %c0_5 = arith.constant 0 : index
    %5 = vector.load %arg4[%c0_4, %c0_5] : memref<256x128xbf16, #tpu.memory_space<vmem>>, vector<256x128xbf16>
    %cst = arith.constant dense<0.000000e+00> : vector<32x128xf32>
    %6 = tpu.matmul %4, %5, %cst {dimension_numbers = #tpu.dot_dimension_numbers<[1], [0], [0], [1], [0, 0, 1, 1], [], []>} : vector<32x256xbf16>, vector<256x128xbf16>, vector<32x128xf32> -> vector<32x128xf32>
    %7 = arith.addf %3, %6 : vector<32x128xf32>
    %c0_6 = arith.constant 0 : index
    %c0_7 = arith.constant 0 : index
    %8 = vector.load %arg7[%c0_6, %c0_7] : memref<32x128xf32, #tpu.memory_space<vmem>>, vector<32x128xf32>
    tpu.vector_store %arg7[%c0_6, %c0_7], %7 {strides = array<i32>} : memref<32x128xf32, #tpu.memory_space<vmem>>, vector<32x128xf32>,
    %c0_i32_8 = arith.constant 0 : i32
    %9 = arith.cmpi eq, %arg2, %c0_i32_8 : i32
    %10 = arith.extui %9 : i1 to i32
    %c0_i32_9 = arith.constant 0 : i32
    %11 = arith.cmpi ne, %10, %c0_i32_9 : i32
    scf.if %11 {
      %c0_10 = arith.constant 0 : index
      %c0_11 = arith.constant 0 : index
      %12 = vector.load %arg7[%c0_10, %c0_11] : memref<32x128xf32, #tpu.memory_space<vmem>>, vector<32x128xf32>
      %c0_12 = arith.constant 0 : index
      %c0_13 = arith.constant 0 : index
      %13 = vector.load %arg5[%c0_12, %c0_13] : memref<1x128xf32, #tpu.memory_space<vmem>>, vector<1x128xf32>
      %14 = vector.broadcast %13 : vector<1x128xf32> to vector<32x128xf32>
      %15 = arith.addf %12, %14 : vector<32x128xf32>
      %c0_14 = arith.constant 0 : index
      %c0_15 = arith.constant 0 : index
      %16 = vector.load %arg6[%c0_14, %c0_15] : memref<32x128xf32, #tpu.memory_space<vmem>>, vector<32x128xf32>
      tpu.vector_store %arg6[%c0_14, %c0_15], %15 {strides = array<i32>} : memref<32x128xf32, #tpu.memory_space<vmem>>, vector<32x128xf32>,
    } else {
    }
    return
  }
  func.func @transform_0(%arg0: i32, %arg1: i32, %arg2: i32) -> (i32, i32) {
    %c0_i32 = arith.constant 0 : i32
    return %arg0, %arg2 : i32, i32
  }
  func.func @transform_1(%arg0: i32, %arg1: i32, %arg2: i32) -> (i32, i32) {
    %c0_i32 = arith.constant 0 : i32
    return %arg2, %arg1 : i32, i32
  }
  func.func @transform_2(%arg0: i32, %arg1: i32, %arg2: i32) -> (i32, i32) {
    %c0_i32 = arith.constant 0 : i32
    %c0_i32_0 = arith.constant 0 : i32
    return %c0_i32, %arg1 : i32, i32
  }
  func.func @transform_3(%arg0: i32, %arg1: i32, %arg2: i32) -> (i32, i32) {
    %c0_i32 = arith.constant 0 : i32
    return %arg0, %arg1 : i32, i32
  }
}

module attributes {stable_mosaic.version = 11 : i64} {
  func.func @_matmul_bias_act_kernel(%arg0: i32, %arg1: i32, %arg2: i32, %arg3: memref<32x384xbf16, #tpu.memory_space<vmem>>, %arg4: memref<384x128xbf16, #tpu.memory_space<vmem>>, %arg5: memref<1x128xf32, #tpu.memory_space<vmem>>, %arg6: memref<32x128xf32, #tpu.memory_space<vmem>>, %arg7: memref<32x128xf32, #tpu.memory_space<vmem>>) attributes {dimension_semantics = [#tpu.dimension_semantics<parallel>, #tpu.dimension_semantics<parallel>, #tpu.dimension_semantics<arbitrary>], iteration_bounds = array<i64: 1, 1, 1>, scalar_prefetch = 0 : i64, scratch_operands = 1 : i64, tpu.core_type = #tpu.core_type<tc>, window_params = [{transform_indices = @transform_0, window_bounds = array<i64: 32, 384>}, {transform_indices = @transform_1, window_bounds = array<i64: 384, 128>}, {transform_indices = @transform_2, window_bounds = array<i64: 1, 128>}, {transform_indices = @transform_3, window_bounds = array<i64: 32, 128>}]} {
    %c0_i32 = arith.constant 0 : i32
    %0 = arith.cmpi eq, %arg2, %c0_i32 : i32
    %1 = arith.extui %0 : i1 to i32
    %c0_i32_0 = arith.constant 0 : i32
    %2 = arith.cmpi ne, %1, %c0_i32_0 : i32
    scf.if %2 {
      %cst_10 = arith.constant 0.000000e+00 : f32
      %12 = vector.broadcast %cst_10 : f32 to vector<32x128xf32>
      %c0_11 = arith.constant 0 : index
      %c0_12 = arith.constant 0 : index
      %13 = vector.load %arg7[%c0_11, %c0_12] : memref<32x128xf32, #tpu.memory_space<vmem>>, vector<32x128xf32>
      tpu.vector_store %arg7[%c0_11, %c0_12], %12 {strides = array<i32>} : memref<32x128xf32, #tpu.memory_space<vmem>>, vector<32x128xf32>,
    } else {
    }
    %c0 = arith.constant 0 : index
    %c0_1 = arith.constant 0 : index
    %3 = vector.load %arg7[%c0, %c0_1] : memref<32x128xf32, #tpu.memory_space<vmem>>, vector<32x128xf32>
    %c0_2 = arith.constant 0 : index
    %c0_3 = arith.constant 0 : index
    %4 = vector.load %arg3[%c0_2, %c0_3] : memref<32x384xbf16, #tpu.memory_space<vmem>>, vector<32x384xbf16>
    %c0_4 = arith.constant 0 : index
    %c0_5 = arith.constant 0 : index
    %5 = vector.load %arg4[%c0_4, %c0_5] : memref<384x128xbf16, #tpu.memory_space<vmem>>, vector<384x128xbf16>
    %cst = arith.constant dense<0.000000e+00> : vector<32x128xf32>
    %6 = tpu.matmul %4, %5, %cst {dimension_numbers = #tpu.dot_dimension_numbers<[1], [0], [0], [1], [0, 0, 1, 1], [], []>} : vector<32x384xbf16>, vector<384x128xbf16>, vector<32x128xf32> -> vector<32x128xf32>
    %7 = arith.addf %3, %6 : vector<32x128xf32>
    %c0_6 = arith.constant 0 : index
    %c0_7 = arith.constant 0 : index
    %8 = vector.load %arg7[%c0_6, %c0_7] : memref<32x128xf32, #tpu.memory_space<vmem>>, vector<32x128xf32>
    tpu.vector_store %arg7[%c0_6, %c0_7], %7 {strides = array<i32>} : memref<32x128xf32, #tpu.memory_space<vmem>>, vector<32x128xf32>,
    %c0_i32_8 = arith.constant 0 : i32
    %9 = arith.cmpi eq, %arg2, %c0_i32_8 : i32
    %10 = arith.extui %9 : i1 to i32
    %c0_i32_9 = arith.constant 0 : i32
    %11 = arith.cmpi ne, %10, %c0_i32_9 : i32
    scf.if %11 {
      %c0_10 = arith.constant 0 : index
      %c0_11 = arith.constant 0 : index
      %12 = vector.load %arg7[%c0_10, %c0_11] : memref<32x128xf32, #tpu.memory_space<vmem>>, vector<32x128xf32>
      %c0_12 = arith.constant 0 : index
      %c0_13 = arith.constant 0 : index
      %13 = vector.load %arg5[%c0_12, %c0_13] : memref<1x128xf32, #tpu.memory_space<vmem>>, vector<1x128xf32>
      %14 = vector.broadcast %13 : vector<1x128xf32> to vector<32x128xf32>
      %15 = arith.addf %12, %14 : vector<32x128xf32>
      %c0_14 = arith.constant 0 : index
      %c0_15 = arith.constant 0 : index
      %16 = vector.load %arg6[%c0_14, %c0_15] : memref<32x128xf32, #tpu.memory_space<vmem>>, vector<32x128xf32>
      tpu.vector_store %arg6[%c0_14, %c0_15], %15 {strides = array<i32>} : memref<32x128xf32, #tpu.memory_space<vmem>>, vector<32x128xf32>,
    } else {
    }
    return
  }
  func.func @transform_0(%arg0: i32, %arg1: i32, %arg2: i32) -> (i32, i32) {
    %c0_i32 = arith.constant 0 : i32
    return %arg0, %arg2 : i32, i32
  }
  func.func @transform_1(%arg0: i32, %arg1: i32, %arg2: i32) -> (i32, i32) {
    %c0_i32 = arith.constant 0 : i32
    return %arg2, %arg1 : i32, i32
  }
  func.func @transform_2(%arg0: i32, %arg1: i32, %arg2: i32) -> (i32, i32) {
    %c0_i32 = arith.constant 0 : i32
    %c0_i32_0 = arith.constant 0 : i32
    return %c0_i32, %arg1 : i32, i32
  }
  func.func @transform_3(%arg0: i32, %arg1: i32, %arg2: i32) -> (i32, i32) {
    %c0_i32 = arith.constant 0 : i32
    return %arg0, %arg1 : i32, i32
  }
}

module attributes {stable_mosaic.version = 11 : i64} {
  func.func @_instance_norm_act_kernel(%arg0: i32, %arg1: memref<64x128xf32, #tpu.memory_space<vmem>>, %arg2: memref<64x128xf32, #tpu.memory_space<vmem>>) attributes {dimension_semantics = [#tpu.dimension_semantics<parallel>], iteration_bounds = array<i64: 1>, scalar_prefetch = 0 : i64, scratch_operands = 0 : i64, tpu.core_type = #tpu.core_type<tc>, window_params = [{transform_indices = @transform_0, window_bounds = array<i64: 64, 128>}, {transform_indices = @transform_1, window_bounds = array<i64: 64, 128>}]} {
    %c0 = arith.constant 0 : index
    %c0_0 = arith.constant 0 : index
    %0 = vector.load %arg1[%c0, %c0_0] : memref<64x128xf32, #tpu.memory_space<vmem>>, vector<64x128xf32>
    %cst = arith.constant dense<0.000000e+00> : vector<64xf32>
    %1 = vector.multi_reduction <add>, %0, %cst [1] : vector<64x128xf32> to vector<64xf32>
    %2 = vector.shape_cast %1 : vector<64xf32> to vector<64x1xf32>
    %3 = arith.mulf %0, %0 : vector<64x128xf32>
    %cst_1 = arith.constant dense<0.000000e+00> : vector<64xf32>
    %4 = vector.multi_reduction <add>, %3, %cst_1 [1] : vector<64x128xf32> to vector<64xf32>
    %5 = vector.shape_cast %4 : vector<64xf32> to vector<64x1xf32>
    %cst_2 = arith.constant 6.250000e-02 : f32
    %6 = vector.broadcast %cst_2 : f32 to vector<64x1xf32>
    %7 = arith.mulf %2, %6 : vector<64x1xf32>
    %cst_3 = arith.constant 6.250000e-02 : f32
    %8 = vector.broadcast %cst_3 : f32 to vector<64x1xf32>
    %9 = arith.mulf %5, %8 : vector<64x1xf32>
    %10 = arith.mulf %7, %7 : vector<64x1xf32>
    %11 = arith.subf %9, %10 : vector<64x1xf32>
    %cst_4 = arith.constant 0.000000e+00 : f32
    %12 = vector.broadcast %cst_4 : f32 to vector<64x1xf32>
    %13 = arith.maximumf %11, %12 : vector<64x1xf32>
    %14 = vector.broadcast %7 : vector<64x1xf32> to vector<64x128xf32>
    %15 = arith.subf %0, %14 : vector<64x128xf32>
    %cst_5 = arith.constant 9.99999974E-6 : f32
    %16 = vector.broadcast %cst_5 : f32 to vector<64x1xf32>
    %17 = arith.addf %13, %16 : vector<64x1xf32>
    %18 = math.rsqrt %17 : vector<64x1xf32>
    %19 = vector.broadcast %18 : vector<64x1xf32> to vector<64x128xf32>
    %20 = arith.mulf %15, %19 : vector<64x128xf32>
    %c0_6 = arith.constant 0 : index
    %c0_7 = arith.constant 0 : index
    %21 = vector.load %arg2[%c0_6, %c0_7] : memref<64x128xf32, #tpu.memory_space<vmem>>, vector<64x128xf32>
    tpu.vector_store %arg2[%c0_6, %c0_7], %20 {strides = array<i32>} : memref<64x128xf32, #tpu.memory_space<vmem>>, vector<64x128xf32>,
    return
  }
  func.func @transform_0(%arg0: i32) -> (i32, i32) {
    %c0_i32 = arith.constant 0 : i32
    %c0_i32_0 = arith.constant 0 : i32
    return %arg0, %c0_i32 : i32, i32
  }
  func.func @transform_1(%arg0: i32) -> (i32, i32) {
    %c0_i32 = arith.constant 0 : i32
    %c0_i32_0 = arith.constant 0 : i32
    return %arg0, %c0_i32 : i32, i32
  }
}

module attributes {stable_mosaic.version = 11 : i64} {
  func.func @_matmul_bias_act_kernel(%arg0: i32, %arg1: i32, %arg2: i32, %arg3: memref<128x384xbf16, #tpu.memory_space<vmem>>, %arg4: memref<384x128xbf16, #tpu.memory_space<vmem>>, %arg5: memref<1x128xf32, #tpu.memory_space<vmem>>, %arg6: memref<128x128xf32, #tpu.memory_space<vmem>>, %arg7: memref<128x128xf32, #tpu.memory_space<vmem>>) attributes {dimension_semantics = [#tpu.dimension_semantics<parallel>, #tpu.dimension_semantics<parallel>, #tpu.dimension_semantics<arbitrary>], iteration_bounds = array<i64: 1, 1, 1>, scalar_prefetch = 0 : i64, scratch_operands = 1 : i64, tpu.core_type = #tpu.core_type<tc>, window_params = [{transform_indices = @transform_0, window_bounds = array<i64: 128, 384>}, {transform_indices = @transform_1, window_bounds = array<i64: 384, 128>}, {transform_indices = @transform_2, window_bounds = array<i64: 1, 128>}, {transform_indices = @transform_3, window_bounds = array<i64: 128, 128>}]} {
    %c0_i32 = arith.constant 0 : i32
    %0 = arith.cmpi eq, %arg2, %c0_i32 : i32
    %1 = arith.extui %0 : i1 to i32
    %c0_i32_0 = arith.constant 0 : i32
    %2 = arith.cmpi ne, %1, %c0_i32_0 : i32
    scf.if %2 {
      %cst_10 = arith.constant 0.000000e+00 : f32
      %12 = vector.broadcast %cst_10 : f32 to vector<128x128xf32>
      %c0_11 = arith.constant 0 : index
      %c0_12 = arith.constant 0 : index
      %13 = vector.load %arg7[%c0_11, %c0_12] : memref<128x128xf32, #tpu.memory_space<vmem>>, vector<128x128xf32>
      tpu.vector_store %arg7[%c0_11, %c0_12], %12 {strides = array<i32>} : memref<128x128xf32, #tpu.memory_space<vmem>>, vector<128x128xf32>,
    } else {
    }
    %c0 = arith.constant 0 : index
    %c0_1 = arith.constant 0 : index
    %3 = vector.load %arg7[%c0, %c0_1] : memref<128x128xf32, #tpu.memory_space<vmem>>, vector<128x128xf32>
    %c0_2 = arith.constant 0 : index
    %c0_3 = arith.constant 0 : index
    %4 = vector.load %arg3[%c0_2, %c0_3] : memref<128x384xbf16, #tpu.memory_space<vmem>>, vector<128x384xbf16>
    %c0_4 = arith.constant 0 : index
    %c0_5 = arith.constant 0 : index
    %5 = vector.load %arg4[%c0_4, %c0_5] : memref<384x128xbf16, #tpu.memory_space<vmem>>, vector<384x128xbf16>
    %cst = arith.constant dense<0.000000e+00> : vector<128x128xf32>
    %6 = tpu.matmul %4, %5, %cst {dimension_numbers = #tpu.dot_dimension_numbers<[1], [0], [0], [1], [0, 0, 1, 1], [], []>} : vector<128x384xbf16>, vector<384x128xbf16>, vector<128x128xf32> -> vector<128x128xf32>
    %7 = arith.addf %3, %6 : vector<128x128xf32>
    %c0_6 = arith.constant 0 : index
    %c0_7 = arith.constant 0 : index
    %8 = vector.load %arg7[%c0_6, %c0_7] : memref<128x128xf32, #tpu.memory_space<vmem>>, vector<128x128xf32>
    tpu.vector_store %arg7[%c0_6, %c0_7], %7 {strides = array<i32>} : memref<128x128xf32, #tpu.memory_space<vmem>>, vector<128x128xf32>,
    %c0_i32_8 = arith.constant 0 : i32
    %9 = arith.cmpi eq, %arg2, %c0_i32_8 : i32
    %10 = arith.extui %9 : i1 to i32
    %c0_i32_9 = arith.constant 0 : i32
    %11 = arith.cmpi ne, %10, %c0_i32_9 : i32
    scf.if %11 {
      %c0_10 = arith.constant 0 : index
      %c0_11 = arith.constant 0 : index
      %12 = vector.load %arg7[%c0_10, %c0_11] : memref<128x128xf32, #tpu.memory_space<vmem>>, vector<128x128xf32>
      %c0_12 = arith.constant 0 : index
      %c0_13 = arith.constant 0 : index
      %13 = vector.load %arg5[%c0_12, %c0_13] : memref<1x128xf32, #tpu.memory_space<vmem>>, vector<1x128xf32>
      %14 = vector.broadcast %13 : vector<1x128xf32> to vector<128x128xf32>
      %15 = arith.addf %12, %14 : vector<128x128xf32>
      %c0_14 = arith.constant 0 : index
      %c0_15 = arith.constant 0 : index
      %16 = vector.load %arg6[%c0_14, %c0_15] : memref<128x128xf32, #tpu.memory_space<vmem>>, vector<128x128xf32>
      tpu.vector_store %arg6[%c0_14, %c0_15], %15 {strides = array<i32>} : memref<128x128xf32, #tpu.memory_space<vmem>>, vector<128x128xf32>,
    } else {
    }
    return
  }
  func.func @transform_0(%arg0: i32, %arg1: i32, %arg2: i32) -> (i32, i32) {
    %c0_i32 = arith.constant 0 : i32
    return %arg0, %arg2 : i32, i32
  }
  func.func @transform_1(%arg0: i32, %arg1: i32, %arg2: i32) -> (i32, i32) {
    %c0_i32 = arith.constant 0 : i32
    return %arg2, %arg1 : i32, i32
  }
  func.func @transform_2(%arg0: i32, %arg1: i32, %arg2: i32) -> (i32, i32) {
    %c0_i32 = arith.constant 0 : i32
    %c0_i32_0 = arith.constant 0 : i32
    return %c0_i32, %arg1 : i32, i32
  }
  func.func @transform_3(%arg0: i32, %arg1: i32, %arg2: i32) -> (i32, i32) {
    %c0_i32 = arith.constant 0 : i32
    return %arg0, %arg1 : i32, i32
  }
}

module attributes {stable_mosaic.version = 11 : i64} {
  func.func @_matmul_bias_act_kernel(%arg0: i32, %arg1: i32, %arg2: i32, %arg3: memref<512x256xbf16, #tpu.memory_space<vmem>>, %arg4: memref<256x128xbf16, #tpu.memory_space<vmem>>, %arg5: memref<1x128xf32, #tpu.memory_space<vmem>>, %arg6: memref<512x128xf32, #tpu.memory_space<vmem>>, %arg7: memref<512x128xf32, #tpu.memory_space<vmem>>) attributes {dimension_semantics = [#tpu.dimension_semantics<parallel>, #tpu.dimension_semantics<parallel>, #tpu.dimension_semantics<arbitrary>], iteration_bounds = array<i64: 1, 1, 1>, scalar_prefetch = 0 : i64, scratch_operands = 1 : i64, tpu.core_type = #tpu.core_type<tc>, window_params = [{transform_indices = @transform_0, window_bounds = array<i64: 512, 256>}, {transform_indices = @transform_1, window_bounds = array<i64: 256, 128>}, {transform_indices = @transform_2, window_bounds = array<i64: 1, 128>}, {transform_indices = @transform_3, window_bounds = array<i64: 512, 128>}]} {
    %c0_i32 = arith.constant 0 : i32
    %0 = arith.cmpi eq, %arg2, %c0_i32 : i32
    %1 = arith.extui %0 : i1 to i32
    %c0_i32_0 = arith.constant 0 : i32
    %2 = arith.cmpi ne, %1, %c0_i32_0 : i32
    scf.if %2 {
      %cst_10 = arith.constant 0.000000e+00 : f32
      %12 = vector.broadcast %cst_10 : f32 to vector<512x128xf32>
      %c0_11 = arith.constant 0 : index
      %c0_12 = arith.constant 0 : index
      %13 = vector.load %arg7[%c0_11, %c0_12] : memref<512x128xf32, #tpu.memory_space<vmem>>, vector<512x128xf32>
      tpu.vector_store %arg7[%c0_11, %c0_12], %12 {strides = array<i32>} : memref<512x128xf32, #tpu.memory_space<vmem>>, vector<512x128xf32>,
    } else {
    }
    %c0 = arith.constant 0 : index
    %c0_1 = arith.constant 0 : index
    %3 = vector.load %arg7[%c0, %c0_1] : memref<512x128xf32, #tpu.memory_space<vmem>>, vector<512x128xf32>
    %c0_2 = arith.constant 0 : index
    %c0_3 = arith.constant 0 : index
    %4 = vector.load %arg3[%c0_2, %c0_3] : memref<512x256xbf16, #tpu.memory_space<vmem>>, vector<512x256xbf16>
    %c0_4 = arith.constant 0 : index
    %c0_5 = arith.constant 0 : index
    %5 = vector.load %arg4[%c0_4, %c0_5] : memref<256x128xbf16, #tpu.memory_space<vmem>>, vector<256x128xbf16>
    %cst = arith.constant dense<0.000000e+00> : vector<512x128xf32>
    %6 = tpu.matmul %4, %5, %cst {dimension_numbers = #tpu.dot_dimension_numbers<[1], [0], [0], [1], [0, 0, 1, 1], [], []>} : vector<512x256xbf16>, vector<256x128xbf16>, vector<512x128xf32> -> vector<512x128xf32>
    %7 = arith.addf %3, %6 : vector<512x128xf32>
    %c0_6 = arith.constant 0 : index
    %c0_7 = arith.constant 0 : index
    %8 = vector.load %arg7[%c0_6, %c0_7] : memref<512x128xf32, #tpu.memory_space<vmem>>, vector<512x128xf32>
    tpu.vector_store %arg7[%c0_6, %c0_7], %7 {strides = array<i32>} : memref<512x128xf32, #tpu.memory_space<vmem>>, vector<512x128xf32>,
    %c0_i32_8 = arith.constant 0 : i32
    %9 = arith.cmpi eq, %arg2, %c0_i32_8 : i32
    %10 = arith.extui %9 : i1 to i32
    %c0_i32_9 = arith.constant 0 : i32
    %11 = arith.cmpi ne, %10, %c0_i32_9 : i32
    scf.if %11 {
      %c0_10 = arith.constant 0 : index
      %c0_11 = arith.constant 0 : index
      %12 = vector.load %arg7[%c0_10, %c0_11] : memref<512x128xf32, #tpu.memory_space<vmem>>, vector<512x128xf32>
      %c0_12 = arith.constant 0 : index
      %c0_13 = arith.constant 0 : index
      %13 = vector.load %arg5[%c0_12, %c0_13] : memref<1x128xf32, #tpu.memory_space<vmem>>, vector<1x128xf32>
      %14 = vector.broadcast %13 : vector<1x128xf32> to vector<512x128xf32>
      %15 = arith.addf %12, %14 : vector<512x128xf32>
      %c0_14 = arith.constant 0 : index
      %c0_15 = arith.constant 0 : index
      %16 = vector.load %arg6[%c0_14, %c0_15] : memref<512x128xf32, #tpu.memory_space<vmem>>, vector<512x128xf32>
      tpu.vector_store %arg6[%c0_14, %c0_15], %15 {strides = array<i32>} : memref<512x128xf32, #tpu.memory_space<vmem>>, vector<512x128xf32>,
    } else {
    }
    return
  }
  func.func @transform_0(%arg0: i32, %arg1: i32, %arg2: i32) -> (i32, i32) {
    %c0_i32 = arith.constant 0 : i32
    return %arg0, %arg2 : i32, i32
  }
  func.func @transform_1(%arg0: i32, %arg1: i32, %arg2: i32) -> (i32, i32) {
    %c0_i32 = arith.constant 0 : i32
    return %arg2, %arg1 : i32, i32
  }
  func.func @transform_2(%arg0: i32, %arg1: i32, %arg2: i32) -> (i32, i32) {
    %c0_i32 = arith.constant 0 : i32
    %c0_i32_0 = arith.constant 0 : i32
    return %c0_i32, %arg1 : i32, i32
  }
  func.func @transform_3(%arg0: i32, %arg1: i32, %arg2: i32) -> (i32, i32) {
    %c0_i32 = arith.constant 0 : i32
    return %arg0, %arg1 : i32, i32
  }
}

module attributes {stable_mosaic.version = 11 : i64} {
  func.func @_instance_norm_act_kernel(%arg0: i32, %arg1: memref<16x256xf32, #tpu.memory_space<vmem>>, %arg2: memref<16x256xf32, #tpu.memory_space<vmem>>) attributes {dimension_semantics = [#tpu.dimension_semantics<parallel>], iteration_bounds = array<i64: 1>, scalar_prefetch = 0 : i64, scratch_operands = 0 : i64, tpu.core_type = #tpu.core_type<tc>, window_params = [{transform_indices = @transform_0, window_bounds = array<i64: 16, 256>}, {transform_indices = @transform_1, window_bounds = array<i64: 16, 256>}]} {
    %c0 = arith.constant 0 : index
    %c0_0 = arith.constant 0 : index
    %0 = vector.load %arg1[%c0, %c0_0] : memref<16x256xf32, #tpu.memory_space<vmem>>, vector<16x256xf32>
    %cst = arith.constant dense<0.000000e+00> : vector<16xf32>
    %1 = vector.multi_reduction <add>, %0, %cst [1] : vector<16x256xf32> to vector<16xf32>
    %2 = vector.shape_cast %1 : vector<16xf32> to vector<16x1xf32>
    %3 = arith.mulf %0, %0 : vector<16x256xf32>
    %cst_1 = arith.constant dense<0.000000e+00> : vector<16xf32>
    %4 = vector.multi_reduction <add>, %3, %cst_1 [1] : vector<16x256xf32> to vector<16xf32>
    %5 = vector.shape_cast %4 : vector<16xf32> to vector<16x1xf32>
    %cst_2 = arith.constant 3.906250e-03 : f32
    %6 = vector.broadcast %cst_2 : f32 to vector<16x1xf32>
    %7 = arith.mulf %2, %6 : vector<16x1xf32>
    %cst_3 = arith.constant 3.906250e-03 : f32
    %8 = vector.broadcast %cst_3 : f32 to vector<16x1xf32>
    %9 = arith.mulf %5, %8 : vector<16x1xf32>
    %10 = arith.mulf %7, %7 : vector<16x1xf32>
    %11 = arith.subf %9, %10 : vector<16x1xf32>
    %cst_4 = arith.constant 0.000000e+00 : f32
    %12 = vector.broadcast %cst_4 : f32 to vector<16x1xf32>
    %13 = arith.maximumf %11, %12 : vector<16x1xf32>
    %14 = vector.broadcast %7 : vector<16x1xf32> to vector<16x256xf32>
    %15 = arith.subf %0, %14 : vector<16x256xf32>
    %cst_5 = arith.constant 9.99999974E-6 : f32
    %16 = vector.broadcast %cst_5 : f32 to vector<16x1xf32>
    %17 = arith.addf %13, %16 : vector<16x1xf32>
    %18 = math.rsqrt %17 : vector<16x1xf32>
    %19 = vector.broadcast %18 : vector<16x1xf32> to vector<16x256xf32>
    %20 = arith.mulf %15, %19 : vector<16x256xf32>
    %cst_6 = arith.constant 0.000000e+00 : f32
    %21 = vector.broadcast %cst_6 : f32 to vector<16x256xf32>
    %22 = arith.maximumf %20, %21 : vector<16x256xf32>
    %c0_7 = arith.constant 0 : index
    %c0_8 = arith.constant 0 : index
    %23 = vector.load %arg2[%c0_7, %c0_8] : memref<16x256xf32, #tpu.memory_space<vmem>>, vector<16x256xf32>
    tpu.vector_store %arg2[%c0_7, %c0_8], %22 {strides = array<i32>} : memref<16x256xf32, #tpu.memory_space<vmem>>, vector<16x256xf32>,
    return
  }
  func.func @transform_0(%arg0: i32) -> (i32, i32) {
    %c0_i32 = arith.constant 0 : i32
    %c0_i32_0 = arith.constant 0 : i32
    return %arg0, %c0_i32 : i32, i32
  }
  func.func @transform_1(%arg0: i32) -> (i32, i32) {
    %c0_i32 = arith.constant 0 : i32
    %c0_i32_0 = arith.constant 0 : i32
    return %arg0, %c0_i32 : i32, i32
  }
}

module attributes {stable_mosaic.version = 11 : i64} {
  func.func @_matmul_bias_act_kernel(%arg0: i32, %arg1: i32, %arg2: i32, %arg3: memref<512x512xbf16, #tpu.memory_space<vmem>>, %arg4: memref<512x128xbf16, #tpu.memory_space<vmem>>, %arg5: memref<1x128xf32, #tpu.memory_space<vmem>>, %arg6: memref<512x128xf32, #tpu.memory_space<vmem>>, %arg7: memref<512x128xf32, #tpu.memory_space<vmem>>) attributes {dimension_semantics = [#tpu.dimension_semantics<parallel>, #tpu.dimension_semantics<parallel>, #tpu.dimension_semantics<arbitrary>], iteration_bounds = array<i64: 1, 1, 1>, scalar_prefetch = 0 : i64, scratch_operands = 1 : i64, tpu.core_type = #tpu.core_type<tc>, window_params = [{transform_indices = @transform_0, window_bounds = array<i64: 512, 512>}, {transform_indices = @transform_1, window_bounds = array<i64: 512, 128>}, {transform_indices = @transform_2, window_bounds = array<i64: 1, 128>}, {transform_indices = @transform_3, window_bounds = array<i64: 512, 128>}]} {
    %c0_i32 = arith.constant 0 : i32
    %0 = arith.cmpi eq, %arg2, %c0_i32 : i32
    %1 = arith.extui %0 : i1 to i32
    %c0_i32_0 = arith.constant 0 : i32
    %2 = arith.cmpi ne, %1, %c0_i32_0 : i32
    scf.if %2 {
      %cst_10 = arith.constant 0.000000e+00 : f32
      %12 = vector.broadcast %cst_10 : f32 to vector<512x128xf32>
      %c0_11 = arith.constant 0 : index
      %c0_12 = arith.constant 0 : index
      %13 = vector.load %arg7[%c0_11, %c0_12] : memref<512x128xf32, #tpu.memory_space<vmem>>, vector<512x128xf32>
      tpu.vector_store %arg7[%c0_11, %c0_12], %12 {strides = array<i32>} : memref<512x128xf32, #tpu.memory_space<vmem>>, vector<512x128xf32>,
    } else {
    }
    %c0 = arith.constant 0 : index
    %c0_1 = arith.constant 0 : index
    %3 = vector.load %arg7[%c0, %c0_1] : memref<512x128xf32, #tpu.memory_space<vmem>>, vector<512x128xf32>
    %c0_2 = arith.constant 0 : index
    %c0_3 = arith.constant 0 : index
    %4 = vector.load %arg3[%c0_2, %c0_3] : memref<512x512xbf16, #tpu.memory_space<vmem>>, vector<512x512xbf16>
    %c0_4 = arith.constant 0 : index
    %c0_5 = arith.constant 0 : index
    %5 = vector.load %arg4[%c0_4, %c0_5] : memref<512x128xbf16, #tpu.memory_space<vmem>>, vector<512x128xbf16>
    %cst = arith.constant dense<0.000000e+00> : vector<512x128xf32>
    %6 = tpu.matmul %4, %5, %cst {dimension_numbers = #tpu.dot_dimension_numbers<[1], [0], [0], [1], [0, 0, 1, 1], [], []>} : vector<512x512xbf16>, vector<512x128xbf16>, vector<512x128xf32> -> vector<512x128xf32>
    %7 = arith.addf %3, %6 : vector<512x128xf32>
    %c0_6 = arith.constant 0 : index
    %c0_7 = arith.constant 0 : index
    %8 = vector.load %arg7[%c0_6, %c0_7] : memref<512x128xf32, #tpu.memory_space<vmem>>, vector<512x128xf32>
    tpu.vector_store %arg7[%c0_6, %c0_7], %7 {strides = array<i32>} : memref<512x128xf32, #tpu.memory_space<vmem>>, vector<512x128xf32>,
    %c0_i32_8 = arith.constant 0 : i32
    %9 = arith.cmpi eq, %arg2, %c0_i32_8 : i32
    %10 = arith.extui %9 : i1 to i32
    %c0_i32_9 = arith.constant 0 : i32
    %11 = arith.cmpi ne, %10, %c0_i32_9 : i32
    scf.if %11 {
      %c0_10 = arith.constant 0 : index
      %c0_11 = arith.constant 0 : index
      %12 = vector.load %arg7[%c0_10, %c0_11] : memref<512x128xf32, #tpu.memory_space<vmem>>, vector<512x128xf32>
      %c0_12 = arith.constant 0 : index
      %c0_13 = arith.constant 0 : index
      %13 = vector.load %arg5[%c0_12, %c0_13] : memref<1x128xf32, #tpu.memory_space<vmem>>, vector<1x128xf32>
      %14 = vector.broadcast %13 : vector<1x128xf32> to vector<512x128xf32>
      %15 = arith.addf %12, %14 : vector<512x128xf32>
      %16 = math.tanh %15 : vector<512x128xf32>
      %c0_14 = arith.constant 0 : index
      %c0_15 = arith.constant 0 : index
      %17 = vector.load %arg6[%c0_14, %c0_15] : memref<512x128xf32, #tpu.memory_space<vmem>>, vector<512x128xf32>
      tpu.vector_store %arg6[%c0_14, %c0_15], %16 {strides = array<i32>} : memref<512x128xf32, #tpu.memory_space<vmem>>, vector<512x128xf32>,
    } else {
    }
    return
  }
  func.func @transform_0(%arg0: i32, %arg1: i32, %arg2: i32) -> (i32, i32) {
    %c0_i32 = arith.constant 0 : i32
    return %arg0, %arg2 : i32, i32
  }
  func.func @transform_1(%arg0: i32, %arg1: i32, %arg2: i32) -> (i32, i32) {
    %c0_i32 = arith.constant 0 : i32
    return %arg2, %arg1 : i32, i32
  }
  func.func @transform_2(%arg0: i32, %arg1: i32, %arg2: i32) -> (i32, i32) {
    %c0_i32 = arith.constant 0 : i32
    %c0_i32_0 = arith.constant 0 : i32
    return %c0_i32, %arg1 : i32, i32
  }
  func.func @transform_3(%arg0: i32, %arg1: i32, %arg2: i32) -> (i32, i32) {
    %c0_i32 = arith.constant 0 : i32
    return %arg0, %arg1 : i32, i32
  }
}

</mosaic_0001>

<bundles_post_ra>
// kernel: generator_forward.46
= control target key start
LH: loop header
LB: loop body
LE: loop exit
PB: predicated region body
PF: predicated region fallthrough
CT: control target
= control target key end

     0   :  { %v1572_v0 = vmov 0   ;;  %s2126_s1 = inlined_call_operand.vmem [shape: bf16[256,128], index: 1, kind: input, shape index: {}]   ;;  %s2127_s0 = inlined_call_operand.vmem [shape: bf16[512,256], index: 0, kind: input, shape index: {}]   ;;  %s2128_s2 = inlined_call_operand.vmem [shape: f32[1,128], index: 2, kind: input, shape index: {}]   ;;  %s2129_s3 = inlined_call_operand.vmem [shape: f32[512,128], index: 3, kind: output, shape index: {}]  }
   0x1   :  { %659 = vmatprep.subr.bf16.mxu0 %v1572_v0  ;;  %1427 = vmatprep.subr.bf16.mxu1 %v1572_v0  ;;  %v1460_v1 = vld [vmem:[%s2126_s1] sm:$0xff]   ;;  %v1461_v2 = vld [vmem:[%s2126_s1 + $0x8] sm:$0xff]   ;;  %v1462_v3 = vld [vmem:[%s2126_s1 + $0x10] sm:$0xff]  }
   0x2   :  { %660 = vmatpush1.bf16.msra.mxu0 %v1460_v1  ;;  %1443 = vmatpush1.bf16.msra.mxu1 %v1460_v1  ;;  %v1463_v4 = vld [vmem:[%s2126_s1 + $0x18] sm:$0xff]   ;;  %v1464_v5 = vld [vmem:[%s2126_s1 + $0x20] sm:$0xff]   ;;  %v1465_v7 = vld [vmem:[%s2126_s1 + $0x28] sm:$0xff]  }
   0x3   :  { %661 = vmatprep.subr.bf16.mxu0 %v1572_v0  ;;  %1428 = vmatprep.subr.bf16.mxu1 %v1572_v0  ;;  %v1478_v6 = vld [vmem:[%s2127_s0 + $0x4] ss:$8 sps:$4 sm:$0xff]   ;;  %v1466_v9 = vld [vmem:[%s2126_s1 + $0x30] sm:$0xff]   ;;  %v1467_v10 = vld [vmem:[%s2126_s1 + $0x38] sm:$0xff]  }
   0x4   :  { %v1481_v8 = vld [vmem:[%s2127_s0 + $0x104] ss:$8 sps:$4 sm:$0xff]   ;;  %691 = vmatprep.mubr.bf16.mxu0 %v1478_v6  ;;  %v1470_v13 = vld [vmem:[%s2126_s1 + $0x50] sm:$0xff]   ;;  %v1471_v14 = vld [vmem:[%s2126_s1 + $0x58] sm:$0xff]  }
   0x5   :  { %819 = vmatprep.mubr.bf16.mxu1 %v1481_v8  ;;  %v1468_v11 = vld [vmem:[%s2126_s1 + $0x40] sm:$0xff]   ;;  %v1469_v12 = vld [vmem:[%s2126_s1 + $0x48] sm:$0xff]   ;;  %v1474_v17 = vld [vmem:[%s2126_s1 + $0x70] sm:$0xff]  }
   0x6   :  { %662 = vmatpush1.bf16.msra.mxu0 %v1461_v2  ;;  %1444 = vmatpush1.bf16.msra.mxu1 %v1461_v2  ;;  %v1472_v15 = vld [vmem:[%s2126_s1 + $0x60] sm:$0xff]   ;;  %v1473_v16 = vld [vmem:[%s2126_s1 + $0x68] sm:$0xff]   ;;  %v1475_v18 = vld [vmem:[%s2126_s1 + $0x78] sm:$0xff]  }
   0x7   :  { %663 = vmatprep.subr.bf16.mxu0 %v1572_v0  ;;  %1429 = vmatprep.subr.bf16.mxu1 %v1572_v0  ;;  %v1476_v19 = vld [vmem:[%s2127_s0] ss:$8 sps:$4 sm:$0xff]   ;;  %v1482_v21 = vld [vmem:[%s2127_s0 + $0x14] ss:$8 sps:$4 sm:$0xff]   ;;  %v1486_v23 = vld [vmem:[%s2127_s0 + $0x10] ss:$8 sps:$4 sm:$0xff]  }
   0x8   :  { %v1479_v20 = vld [vmem:[%s2127_s0 + $0x100] ss:$8 sps:$4 sm:$0xff]   ;;  %v1484_v22 = vld [vmem:[%s2127_s0 + $0x114] ss:$8 sps:$4 sm:$0xff]   ;;  %v1487_v24 = vld [vmem:[%s2127_s0 + $0x110] ss:$8 sps:$4 sm:$0xff]  }
   0x9   :  { %v1488_v25 = vld [vmem:[%s2127_s0 + $0x24] ss:$8 sps:$4 sm:$0xff]   ;;  %v1492_v27 = vld [vmem:[%s2127_s0 + $0x20] ss:$8 sps:$4 sm:$0xff]   ;;  %v1494_v29 = vld [vmem:[%s2127_s0 + $0x34] ss:$8 sps:$4 sm:$0xff]  }
   0xa   :  { %664 = vmatpush1.bf16.msra.mxu0 %v1462_v3  ;;  %1445 = vmatpush1.bf16.msra.mxu1 %v1462_v3  ;;  %v1490_v26 = vld [vmem:[%s2127_s0 + $0x124] ss:$8 sps:$4 sm:$0xff]   ;;  %v1493_v28 = vld [vmem:[%s2127_s0 + $0x120] ss:$8 sps:$4 sm:$0xff]   ;;  %v1496_v30 = vld [vmem:[%s2127_s0 + $0x134] ss:$8 sps:$4 sm:$0xff]  }
   0xb   :  { %665 = vmatprep.subr.bf16.mxu0 %v1572_v0  ;;  %1430 = vmatprep.subr.bf16.mxu1 %v1572_v0  ;;  %v1498_v31 = vld [vmem:[%s2127_s0 + $0x30] ss:$8 sps:$4 sm:$0xff]   ;;  %v1500_v33 = vld [vmem:[%s2127_s0 + $0x44] ss:$8 sps:$4 sm:$0xff]   ;;  %v1504_v35 = vld [vmem:[%s2127_s0 + $0x40] ss:$8 sps:$4 sm:$0xff]  }
   0xc   :  { %v1499_v32 = vld [vmem:[%s2127_s0 + $0x130] ss:$8 sps:$4 sm:$0xff]   ;;  %v1502_v34 = vld [vmem:[%s2127_s0 + $0x144] ss:$8 sps:$4 sm:$0xff]   ;;  %v1505_v36 = vld [vmem:[%s2127_s0 + $0x140] ss:$8 sps:$4 sm:$0xff]  }
   0xd   :  { %v1506_v37 = vld [vmem:[%s2127_s0 + $0x54] ss:$8 sps:$4 sm:$0xff]   ;;  %v1510_v39 = vld [vmem:[%s2127_s0 + $0x50] ss:$8 sps:$4 sm:$0xff]   ;;  %v1512_v41 = vld [vmem:[%s2127_s0 + $0x64] ss:$8 sps:$4 sm:$0xff]  }
   0xe   :  { %666 = vmatpush1.bf16.msra.mxu0 %v1463_v4  ;;  %1446 = vmatpush1.bf16.msra.mxu1 %v1463_v4  ;;  %v1508_v38 = vld [vmem:[%s2127_s0 + $0x154] ss:$8 sps:$4 sm:$0xff]   ;;  %v1511_v40 = vld [vmem:[%s2127_s0 + $0x150] ss:$8 sps:$4 sm:$0xff]   ;;  %v1514_v42 = vld [vmem:[%s2127_s0 + $0x164] ss:$8 sps:$4 sm:$0xff]  }
   0xf   :  { %667 = vmatprep.subr.bf16.mxu0 %v1572_v0  ;;  %1431 = vmatprep.subr.bf16.mxu1 %v1572_v0  ;;  %v1516_v43 = vld [vmem:[%s2127_s0 + $0x60] ss:$8 sps:$4 sm:$0xff]   ;;  %v1518_v45 = vld [vmem:[%s2127_s0 + $0x74] ss:$8 sps:$4 sm:$0xff]   ;;  %v1522_v47 = vld [vmem:[%s2127_s0 + $0x70] ss:$8 sps:$4 sm:$0xff]  }
  0x10   :  { %v1517_v44 = vld [vmem:[%s2127_s0 + $0x160] ss:$8 sps:$4 sm:$0xff]   ;;  %v1520_v46 = vld [vmem:[%s2127_s0 + $0x174] ss:$8 sps:$4 sm:$0xff]   ;;  %v1523_v48 = vld [vmem:[%s2127_s0 + $0x170] ss:$8 sps:$4 sm:$0xff]  }
  0x11   :  { %v1524_v49 = vld [vmem:[%s2127_s0 + $0x84] ss:$8 sps:$4 sm:$0xff]   ;;  %v1528_v51 = vld [vmem:[%s2127_s0 + $0x80] ss:$8 sps:$4 sm:$0xff]   ;;  %v1530_v53 = vld [vmem:[%s2127_s0 + $0x94] ss:$8 sps:$4 sm:$0xff]  }
  0x12   :  { %668 = vmatpush1.bf16.msra.mxu0 %v1464_v5  ;;  %1447 = vmatpush1.bf16.msra.mxu1 %v1464_v5  ;;  %v1526_v50 = vld [vmem:[%s2127_s0 + $0x184] ss:$8 sps:$4 sm:$0xff]   ;;  %v1529_v52 = vld [vmem:[%s2127_s0 + $0x180] ss:$8 sps:$4 sm:$0xff]   ;;  %v1532_v54 = vld [vmem:[%s2127_s0 + $0x194] ss:$8 sps:$4 sm:$0xff]  }
  0x13   :  { %669 = vmatprep.subr.bf16.mxu0 %v1572_v0  ;;  %1432 = vmatprep.subr.bf16.mxu1 %v1572_v0  ;;  %v1534_v55 = vld [vmem:[%s2127_s0 + $0x90] ss:$8 sps:$4 sm:$0xff]   ;;  %v1536_v57 = vld [vmem:[%s2127_s0 + $0xa4] ss:$8 sps:$4 sm:$0xff]   ;;  %v1540_v59 = vld [vmem:[%s2127_s0 + $0xa0] ss:$8 sps:$4 sm:$0xff]  }
  0x14   :  { %v1535_v56 = vld [vmem:[%s2127_s0 + $0x190] ss:$8 sps:$4 sm:$0xff]   ;;  %v1538_v58 = vld [vmem:[%s2127_s0 + $0x1a4] ss:$8 sps:$4 sm:$0xff]   ;;  %v1541_v60 = vld [vmem:[%s2127_s0 + $0x1a0] ss:$8 sps:$4 sm:$0xff]  }
  0x15   :  { %v1542_v61 = vld [vmem:[%s2127_s0 + $0xb4] ss:$8 sps:$4 sm:$0xff]   ;;  %v1546_v63 = vld [vmem:[%s2127_s0 + $0xb0] ss:$8 sps:$4 sm:$0xff]   ;;  %v1548_v1 = vld [vmem:[%s2127_s0 + $0xc4] ss:$8 sps:$4 sm:$0xff]  }
  0x16   :  { %670 = vmatpush1.bf16.msra.mxu0 %v1465_v7  ;;  %1448 = vmatpush1.bf16.msra.mxu1 %v1465_v7  ;;  %v1544_v62 = vld [vmem:[%s2127_s0 + $0x1b4] ss:$8 sps:$4 sm:$0xff]   ;;  %v1550_v2 = vld [vmem:[%s2127_s0 + $0x1c4] ss:$8 sps:$4 sm:$0xff]   ;;  %v1552_v3 = vld [vmem:[%s2127_s0 + $0xc0] ss:$8 sps:$4 sm:$0xff]  }
  0x17   :  { %671 = vmatprep.subr.bf16.mxu0 %v1572_v0  ;;  %1433 = vmatprep.subr.bf16.mxu1 %v1572_v0  ;;  %v1553_v4 = vld [vmem:[%s2127_s0 + $0x1c0] ss:$8 sps:$4 sm:$0xff]   ;;  %v1554_v5 = vld [vmem:[%s2127_s0 + $0xd4] ss:$8 sps:$4 sm:$0xff]   ;;  %v1558_v7 = vld [vmem:[%s2127_s0 + $0xd0] ss:$8 sps:$4 sm:$0xff]  }
  0x18   :  { %v1556_v6 = vld [vmem:[%s2127_s0 + $0x1d4] ss:$8 sps:$4 sm:$0xff]   ;;  %v1559_v8 = vld [vmem:[%s2127_s0 + $0x1d0] ss:$8 sps:$4 sm:$0xff]  }
  0x1a   :  { %672 = vmatpush1.bf16.msra.mxu0 %v1466_v9  ;;  %1449 = vmatpush1.bf16.msra.mxu1 %v1466_v9  ;;  %v1560_v9 = vld [vmem:[%s2127_s0 + $0xe4] ss:$8 sps:$4 sm:$0xff]  }
  0x1b   :  { %673 = vmatprep.subr.bf16.mxu0 %v1572_v0  ;;  %1434 = vmatprep.subr.bf16.mxu1 %v1572_v0 }
  0x1e   :  { %674 = vmatpush1.bf16.msra.mxu0 %v1467_v10  ;;  %1450 = vmatpush1.bf16.msra.mxu1 %v1467_v10  ;;  %v1562_v10 = vld [vmem:[%s2127_s0 + $0x1e4] ss:$8 sps:$4 sm:$0xff]  }
  0x1f   :  { %675 = vmatprep.subr.bf16.mxu0 %v1572_v0  ;;  %1435 = vmatprep.subr.bf16.mxu1 %v1572_v0 }
  0x22   :  { %676 = vmatpush1.bf16.msra.mxu0 %v1468_v11  ;;  %1451 = vmatpush1.bf16.msra.mxu1 %v1468_v11  ;;  %v1564_v11 = vld [vmem:[%s2127_s0 + $0xe0] ss:$8 sps:$4 sm:$0xff]  }
  0x23   :  { %677 = vmatprep.subr.bf16.mxu0 %v1572_v0  ;;  %1436 = vmatprep.subr.bf16.mxu1 %v1572_v0 }
  0x26   :  { %678 = vmatpush1.bf16.msra.mxu0 %v1469_v12  ;;  %1452 = vmatpush1.bf16.msra.mxu1 %v1469_v12  ;;  %v1565_v12 = vld [vmem:[%s2127_s0 + $0x1e0] ss:$8 sps:$4 sm:$0xff]  }
  0x27   :  { %679 = vmatprep.subr.bf16.mxu0 %v1572_v0  ;;  %1437 = vmatprep.subr.bf16.mxu1 %v1572_v0 }
  0x2a   :  { %680 = vmatpush1.bf16.msra.mxu0 %v1470_v13  ;;  %1453 = vmatpush1.bf16.msra.mxu1 %v1470_v13  ;;  %v1566_v13 = vld [vmem:[%s2127_s0 + $0xf4] ss:$8 sps:$4 sm:$0xff]  }
  0x2b   :  { %681 = vmatprep.subr.bf16.mxu0 %v1572_v0  ;;  %1438 = vmatprep.subr.bf16.mxu1 %v1572_v0 }
  0x2e   :  { %682 = vmatpush1.bf16.msra.mxu0 %v1471_v14  ;;  %1454 = vmatpush1.bf16.msra.mxu1 %v1471_v14  ;;  %v1568_v14 = vld [vmem:[%s2127_s0 + $0x1f4] ss:$8 sps:$4 sm:$0xff]  }
  0x2f   :  { %683 = vmatprep.subr.bf16.mxu0 %v1572_v0  ;;  %1439 = vmatprep.subr.bf16.mxu1 %v1572_v0 }
  0x32   :  { %684 = vmatpush1.bf16.msra.mxu0 %v1472_v15  ;;  %1455 = vmatpush1.bf16.msra.mxu1 %v1472_v15  ;;  %v1570_v15 = vld [vmem:[%s2127_s0 + $0xf0] ss:$8 sps:$4 sm:$0xff]  }
  0x33   :  { %685 = vmatprep.subr.bf16.mxu0 %v1572_v0  ;;  %1440 = vmatprep.subr.bf16.mxu1 %v1572_v0 }
  0x36   :  { %686 = vmatpush1.bf16.msra.mxu0 %v1473_v16  ;;  %1456 = vmatpush1.bf16.msra.mxu1 %v1473_v16  ;;  %v1571_v16 = vld [vmem:[%s2127_s0 + $0x1f0] ss:$8 sps:$4 sm:$0xff]  }
  0x37   :  { %687 = vmatprep.subr.bf16.mxu0 %v1572_v0  ;;  %1441 = vmatprep.subr.bf16.mxu1 %v1572_v0 }
  0x3a   :  { %688 = vmatpush1.bf16.msra.mxu0 %v1474_v17  ;;  %1457 = vmatpush1.bf16.msra.mxu1 %v1474_v17  ;;  %v1868_v17 = vld [vmem:[%s2128_s2] ss:$0 sm:$0xff] }
  0x3b   :  { %689 = vmatprep.subr.bf16.mxu0 %v1572_v0  ;;  %1442 = vmatprep.subr.bf16.mxu1 %v1572_v0  ;;  %v1547_v0 = vld [vmem:[%s2127_s0 + $0x1b0] ss:$8 sps:$4 sm:$0xff]  }
  0x3e   :  { %690 = vmatpush1.bf16.msra.mxu0 %v1475_v18  ;;  %1458 = vmatpush1.bf16.msra.mxu1 %v1475_v18 }
  0x41   :  { %692 = vmatmul.mubr.bf16.vlgmr.msra.gmra.mrb[0].mxu0 %v1476_v19  ;;  %820 = vmatmul.mubr.bf16.vlgmr.msra.gmra.mrb[0].mxu1 %v1479_v20 }
  0x42   :  { %699 = vmatprep.mubr.bf16.mxu0 %v1482_v21  ;;  %827 = vmatprep.mubr.bf16.mxu1 %v1484_v22 }
  0x49   :  { %700 = vmatmul.mubr.bf16.gmra.mrb[4].mxu0 %v1486_v23  ;;  %828 = vmatmul.mubr.bf16.gmra.mrb[4].mxu1 %v1487_v24 }
  0x4a   :  { %707 = vmatprep.mubr.bf16.mxu0 %v1488_v25  ;;  %835 = vmatprep.mubr.bf16.mxu1 %v1490_v26 }
  0x51   :  { %708 = vmatmul.mubr.bf16.gmra.mrb[8].mxu0 %v1492_v27  ;;  %836 = vmatmul.mubr.bf16.gmra.mrb[8].mxu1 %v1493_v28 }
  0x52   :  { %715 = vmatprep.mubr.bf16.mxu0 %v1494_v29  ;;  %843 = vmatprep.mubr.bf16.mxu1 %v1496_v30 }
  0x59   :  { %716 = vmatmul.mubr.bf16.gmra.mrb[12].mxu0 %v1498_v31  ;;  %844 = vmatmul.mubr.bf16.gmra.mrb[12].mxu1 %v1499_v32 }
  0x5a   :  { %723 = vmatprep.mubr.bf16.mxu0 %v1500_v33  ;;  %851 = vmatprep.mubr.bf16.mxu1 %v1502_v34 }
  0x61   :  { %724 = vmatmul.mubr.bf16.gmra.mrb[16].mxu0 %v1504_v35  ;;  %852 = vmatmul.mubr.bf16.gmra.mrb[16].mxu1 %v1505_v36 }
  0x62   :  { %731 = vmatprep.mubr.bf16.mxu0 %v1506_v37  ;;  %859 = vmatprep.mubr.bf16.mxu1 %v1508_v38 }
  0x69   :  { %732 = vmatmul.mubr.bf16.gmra.mrb[20].mxu0 %v1510_v39  ;;  %860 = vmatmul.mubr.bf16.gmra.mrb[20].mxu1 %v1511_v40 }
  0x6a   :  { %739 = vmatprep.mubr.bf16.mxu0 %v1512_v41  ;;  %867 = vmatprep.mubr.bf16.mxu1 %v1514_v42 }
  0x71   :  { %740 = vmatmul.mubr.bf16.gmra.mrb[24].mxu0 %v1516_v43  ;;  %868 = vmatmul.mubr.bf16.gmra.mrb[24].mxu1 %v1517_v44 }
  0x72   :  { %747 = vmatprep.mubr.bf16.mxu0 %v1518_v45  ;;  %875 = vmatprep.mubr.bf16.mxu1 %v1520_v46 }
  0x79   :  { %748 = vmatmul.mubr.bf16.gmra.mrb[28].mxu0 %v1522_v47  ;;  %876 = vmatmul.mubr.bf16.gmra.mrb[28].mxu1 %v1523_v48 }
  0x7a   :  { %755 = vmatprep.mubr.bf16.mxu0 %v1524_v49  ;;  %883 = vmatprep.mubr.bf16.mxu1 %v1526_v50 }
  0x81   :  { %756 = vmatmul.mubr.bf16.gmra.mrb[32].mxu0 %v1528_v51  ;;  %884 = vmatmul.mubr.bf16.gmra.mrb[32].mxu1 %v1529_v52 }
  0x82   :  { %763 = vmatprep.mubr.bf16.mxu0 %v1530_v53  ;;  %891 = vmatprep.mubr.bf16.mxu1 %v1532_v54 }
  0x89   :  { %764 = vmatmul.mubr.bf16.gmra.mrb[36].mxu0 %v1534_v55  ;;  %892 = vmatmul.mubr.bf16.gmra.mrb[36].mxu1 %v1535_v56 }
  0x8a   :  { %771 = vmatprep.mubr.bf16.mxu0 %v1536_v57  ;;  %899 = vmatprep.mubr.bf16.mxu1 %v1538_v58 }
  0x91   :  { %772 = vmatmul.mubr.bf16.gmra.mrb[40].mxu0 %v1540_v59  ;;  %900 = vmatmul.mubr.bf16.gmra.mrb[40].mxu1 %v1541_v60 }
  0x92   :  { %779 = vmatprep.mubr.bf16.mxu0 %v1542_v61  ;;  %907 = vmatprep.mubr.bf16.mxu1 %v1544_v62 }
  0x99   :  { %780 = vmatmul.mubr.bf16.gmra.mrb[44].mxu0 %v1546_v63  ;;  %908 = vmatmul.mubr.bf16.gmra.mrb[44].mxu1 %v1547_v0 }
  0x9a   :  { %787 = vmatprep.mubr.bf16.mxu0 %v1548_v1  ;;  %915 = vmatprep.mubr.bf16.mxu1 %v1550_v2 }
  0xa1   :  { %788 = vmatmul.mubr.bf16.gmra.mrb[48].mxu0 %v1552_v3  ;;  %916 = vmatmul.mubr.bf16.gmra.mrb[48].mxu1 %v1553_v4 }
  0xa2   :  { %795 = vmatprep.mubr.bf16.mxu0 %v1554_v5  ;;  %923 = vmatprep.mubr.bf16.mxu1 %v1556_v6 }
  0xa9   :  { %796 = vmatmul.mubr.bf16.gmra.mrb[52].mxu0 %v1558_v7  ;;  %924 = vmatmul.mubr.bf16.gmra.mrb[52].mxu1 %v1559_v8 }
  0xaa   :  { %803 = vmatprep.mubr.bf16.mxu0 %v1560_v9  ;;  %931 = vmatprep.mubr.bf16.mxu1 %v1562_v10 }
  0xb1   :  { %804 = vmatmul.mubr.bf16.gmra.mrb[56].mxu0 %v1564_v11  ;;  %932 = vmatmul.mubr.bf16.gmra.mrb[56].mxu1 %v1565_v12 }
  0xb2   :  { %811 = vmatprep.mubr.bf16.mxu0 %v1566_v13  ;;  %939 = vmatprep.mubr.bf16.mxu1 %v1568_v14 }
  0xb9   :  { %812 = vmatmul.mubr.bf16.gmra.mrb[60].mxu0 %v1570_v15  ;;  %940 = vmatmul.mubr.bf16.gmra.mrb[60].mxu1 %v1571_v16 }
 0x114   :  { %v693_v18 = vpop.f32.mrb[0].mxu0  ;;  %v821_v19 = vpop.f32.mrb[0].mxu1 }
 0x115   :  { %v1150_v20 = vadd.f32 %v1868_v17, %v693_v18  ;;  %v1182_v21 = vadd.f32 %v1868_v17, %v821_v19  ;;  %v695_v22 = vpop.f32.mrb[1].mxu0  ;;  %v823_v23 = vpop.f32.mrb[1].mxu1 }
 0x116   :  { %v696_v24 = vpop.f32.mrb[2].mxu0  ;;  %v824_v25 = vpop.f32.mrb[2].mxu1 }
 0x117   :  { %v1214_v26 = vmax.f32 %v1150_v20, 0.0  ;;  %v1246_v27 = vmax.f32 %v1182_v21, 0.0  ;;  %v1151_v28 = vadd.f32 %v1868_v17, %v696_v24  ;;  %v1183_v29 = vadd.f32 %v1868_v17, %v824_v25  ;;  %v698_v30 = vpop.f32.mrb[3].mxu0  ;;  %v826_v31 = vpop.f32.mrb[3].mxu1 }
 0x119   :  { %1278 = vst [vmem:[%s2129_s3] sm:$0xff] %v1214_v26  ;;  %1310 = vst [vmem:[%s2129_s3 + $0x100] sm:$0xff] %v1246_v27  ;;  %v1215_v32 = vmax.f32 %v1151_v28, 0.0  ;;  %v1247_v33 = vmax.f32 %v1183_v29, 0.0 }
 0x11b   :  { %1279 = vst [vmem:[%s2129_s3 + $0x8] sm:$0xff] %v1215_v32  ;;  %1311 = vst [vmem:[%s2129_s3 + $0x108] sm:$0xff] %v1247_v33 }
 0x11c   :  { %v701_v34 = vpop.f32.mrb[4].mxu0  ;;  %v829_v35 = vpop.f32.mrb[4].mxu1 }
 0x11d   :  { %v1152_v36 = vadd.f32 %v1868_v17, %v701_v34  ;;  %v1184_v37 = vadd.f32 %v1868_v17, %v829_v35  ;;  %v703_v38 = vpop.f32.mrb[5].mxu0  ;;  %v831_v39 = vpop.f32.mrb[5].mxu1 }
 0x11e   :  { %v704_v40 = vpop.f32.mrb[6].mxu0  ;;  %v832_v41 = vpop.f32.mrb[6].mxu1 }
 0x11f   :  { %v1216_v42 = vmax.f32 %v1152_v36, 0.0  ;;  %v1248_v43 = vmax.f32 %v1184_v37, 0.0  ;;  %v1153_v44 = vadd.f32 %v1868_v17, %v704_v40  ;;  %v1185_v45 = vadd.f32 %v1868_v17, %v832_v41  ;;  %v706_v46 = vpop.f32.mrb[7].mxu0  ;;  %v834_v47 = vpop.f32.mrb[7].mxu1 }
 0x121   :  { %1280 = vst [vmem:[%s2129_s3 + $0x10] sm:$0xff] %v1216_v42  ;;  %1312 = vst [vmem:[%s2129_s3 + $0x110] sm:$0xff] %v1248_v43  ;;  %v1217_v48 = vmax.f32 %v1153_v44, 0.0  ;;  %v1249_v49 = vmax.f32 %v1185_v45, 0.0 }
 0x123   :  { %1281 = vst [vmem:[%s2129_s3 + $0x18] sm:$0xff] %v1217_v48  ;;  %1313 = vst [vmem:[%s2129_s3 + $0x118] sm:$0xff] %v1249_v49 }
 0x124   :  { %v709_v50 = vpop.f32.mrb[8].mxu0  ;;  %v837_v51 = vpop.f32.mrb[8].mxu1 }
 0x125   :  { %v1154_v52 = vadd.f32 %v1868_v17, %v709_v50  ;;  %v1186_v53 = vadd.f32 %v1868_v17, %v837_v51  ;;  %v711_v54 = vpop.f32.mrb[9].mxu0  ;;  %v839_v55 = vpop.f32.mrb[9].mxu1 }
 0x126   :  { %v712_v56 = vpop.f32.mrb[10].mxu0  ;;  %v840_v57 = vpop.f32.mrb[10].mxu1 }
 0x127   :  { %v1218_v58 = vmax.f32 %v1154_v52, 0.0  ;;  %v1250_v59 = vmax.f32 %v1186_v53, 0.0  ;;  %v1155_v60 = vadd.f32 %v1868_v17, %v712_v56  ;;  %v1187_v61 = vadd.f32 %v1868_v17, %v840_v57  ;;  %v714_v62 = vpop.f32.mrb[11].mxu0  ;;  %v842_v63 = vpop.f32.mrb[11].mxu1 }
 0x129   :  { %1282 = vst [vmem:[%s2129_s3 + $0x20] sm:$0xff] %v1218_v58  ;;  %1314 = vst [vmem:[%s2129_s3 + $0x120] sm:$0xff] %v1250_v59  ;;  %v1219_v0 = vmax.f32 %v1155_v60, 0.0  ;;  %v1251_v1 = vmax.f32 %v1187_v61, 0.0 }
 0x12b   :  { %1283 = vst [vmem:[%s2129_s3 + $0x28] sm:$0xff] %v1219_v0  ;;  %1315 = vst [vmem:[%s2129_s3 + $0x128] sm:$0xff] %v1251_v1 }
 0x12c   :  { %v717_v2 = vpop.f32.mrb[12].mxu0  ;;  %v845_v3 = vpop.f32.mrb[12].mxu1 }
 0x12d   :  { %v1156_v4 = vadd.f32 %v1868_v17, %v717_v2  ;;  %v1188_v5 = vadd.f32 %v1868_v17, %v845_v3  ;;  %v719_v6 = vpop.f32.mrb[13].mxu0  ;;  %v847_v7 = vpop.f32.mrb[13].mxu1 }
 0x12e   :  { %v720_v8 = vpop.f32.mrb[14].mxu0  ;;  %v848_v9 = vpop.f32.mrb[14].mxu1 }
 0x12f   :  { %v1220_v10 = vmax.f32 %v1156_v4, 0.0  ;;  %v1252_v11 = vmax.f32 %v1188_v5, 0.0  ;;  %v1157_v12 = vadd.f32 %v1868_v17, %v720_v8  ;;  %v1189_v13 = vadd.f32 %v1868_v17, %v848_v9  ;;  %v722_v14 = vpop.f32.mrb[15].mxu0  ;;  %v850_v15 = vpop.f32.mrb[15].mxu1 }
 0x131   :  { %1284 = vst [vmem:[%s2129_s3 + $0x30] sm:$0xff] %v1220_v10  ;;  %1316 = vst [vmem:[%s2129_s3 + $0x130] sm:$0xff] %v1252_v11  ;;  %v1221_v16 = vmax.f32 %v1157_v12, 0.0  ;;  %v1253_v18 = vmax.f32 %v1189_v13, 0.0 }
 0x133   :  { %1285 = vst [vmem:[%s2129_s3 + $0x38] sm:$0xff] %v1221_v16  ;;  %1317 = vst [vmem:[%s2129_s3 + $0x138] sm:$0xff] %v1253_v18 }
 0x134   :  { %v725_v19 = vpop.f32.mrb[16].mxu0  ;;  %v853_v20 = vpop.f32.mrb[16].mxu1 }
 0x135   :  { %v1158_v21 = vadd.f32 %v1868_v17, %v725_v19  ;;  %v1190_v22 = vadd.f32 %v1868_v17, %v853_v20  ;;  %v727_v23 = vpop.f32.mrb[17].mxu0  ;;  %v855_v24 = vpop.f32.mrb[17].mxu1 }
 0x136   :  { %v728_v25 = vpop.f32.mrb[18].mxu0  ;;  %v856_v26 = vpop.f32.mrb[18].mxu1 }
 0x137   :  { %v1222_v27 = vmax.f32 %v1158_v21, 0.0  ;;  %v1254_v28 = vmax.f32 %v1190_v22, 0.0  ;;  %v1159_v29 = vadd.f32 %v1868_v17, %v728_v25  ;;  %v1191_v30 = vadd.f32 %v1868_v17, %v856_v26  ;;  %v730_v31 = vpop.f32.mrb[19].mxu0  ;;  %v858_v32 = vpop.f32.mrb[19].mxu1 }
 0x139   :  { %1286 = vst [vmem:[%s2129_s3 + $0x40] sm:$0xff] %v1222_v27  ;;  %1318 = vst [vmem:[%s2129_s3 + $0x140] sm:$0xff] %v1254_v28  ;;  %v1223_v33 = vmax.f32 %v1159_v29, 0.0  ;;  %v1255_v34 = vmax.f32 %v1191_v30, 0.0 }
 0x13b   :  { %1287 = vst [vmem:[%s2129_s3 + $0x48] sm:$0xff] %v1223_v33  ;;  %1319 = vst [vmem:[%s2129_s3 + $0x148] sm:$0xff] %v1255_v34 }
 0x13c   :  { %v733_v35 = vpop.f32.mrb[20].mxu0  ;;  %v861_v36 = vpop.f32.mrb[20].mxu1 }
 0x13d   :  { %v1160_v37 = vadd.f32 %v1868_v17, %v733_v35  ;;  %v1192_v38 = vadd.f32 %v1868_v17, %v861_v36  ;;  %v735_v39 = vpop.f32.mrb[21].mxu0  ;;  %v863_v40 = vpop.f32.mrb[21].mxu1 }
 0x13e   :  { %v736_v41 = vpop.f32.mrb[22].mxu0  ;;  %v864_v42 = vpop.f32.mrb[22].mxu1 }
 0x13f   :  { %v1224_v43 = vmax.f32 %v1160_v37, 0.0  ;;  %v1256_v44 = vmax.f32 %v1192_v38, 0.0  ;;  %v1161_v45 = vadd.f32 %v1868_v17, %v736_v41  ;;  %v1193_v46 = vadd.f32 %v1868_v17, %v864_v42  ;;  %v738_v47 = vpop.f32.mrb[23].mxu0  ;;  %v866_v48 = vpop.f32.mrb[23].mxu1 }
 0x141   :  { %1288 = vst [vmem:[%s2129_s3 + $0x50] sm:$0xff] %v1224_v43  ;;  %1320 = vst [vmem:[%s2129_s3 + $0x150] sm:$0xff] %v1256_v44  ;;  %v1225_v49 = vmax.f32 %v1161_v45, 0.0  ;;  %v1257_v50 = vmax.f32 %v1193_v46, 0.0 }
 0x143   :  { %1289 = vst [vmem:[%s2129_s3 + $0x58] sm:$0xff] %v1225_v49  ;;  %1321 = vst [vmem:[%s2129_s3 + $0x158] sm:$0xff] %v1257_v50 }
 0x144   :  { %v741_v51 = vpop.f32.mrb[24].mxu0  ;;  %v869_v52 = vpop.f32.mrb[24].mxu1 }
 0x145   :  { %v1162_v53 = vadd.f32 %v1868_v17, %v741_v51  ;;  %v1194_v54 = vadd.f32 %v1868_v17, %v869_v52  ;;  %v743_v55 = vpop.f32.mrb[25].mxu0  ;;  %v871_v56 = vpop.f32.mrb[25].mxu1 }
 0x146   :  { %v744_v57 = vpop.f32.mrb[26].mxu0  ;;  %v872_v58 = vpop.f32.mrb[26].mxu1 }
 0x147   :  { %v1226_v59 = vmax.f32 %v1162_v53, 0.0  ;;  %v1258_v60 = vmax.f32 %v1194_v54, 0.0  ;;  %v1163_v61 = vadd.f32 %v1868_v17, %v744_v57  ;;  %v1195_v62 = vadd.f32 %v1868_v17, %v872_v58  ;;  %v746_v63 = vpop.f32.mrb[27].mxu0  ;;  %v874_v0 = vpop.f32.mrb[27].mxu1 }
 0x149   :  { %1290 = vst [vmem:[%s2129_s3 + $0x60] sm:$0xff] %v1226_v59  ;;  %1322 = vst [vmem:[%s2129_s3 + $0x160] sm:$0xff] %v1258_v60  ;;  %v1227_v1 = vmax.f32 %v1163_v61, 0.0  ;;  %v1259_v2 = vmax.f32 %v1195_v62, 0.0 }
 0x14b   :  { %1291 = vst [vmem:[%s2129_s3 + $0x68] sm:$0xff] %v1227_v1  ;;  %1323 = vst [vmem:[%s2129_s3 + $0x168] sm:$0xff] %v1259_v2 }
 0x14c   :  { %v749_v3 = vpop.f32.mrb[28].mxu0  ;;  %v877_v4 = vpop.f32.mrb[28].mxu1 }
 0x14d   :  { %v1164_v5 = vadd.f32 %v1868_v17, %v749_v3  ;;  %v1196_v6 = vadd.f32 %v1868_v17, %v877_v4  ;;  %v751_v7 = vpop.f32.mrb[29].mxu0  ;;  %v879_v8 = vpop.f32.mrb[29].mxu1 }
 0x14e   :  { %v752_v9 = vpop.f32.mrb[30].mxu0  ;;  %v880_v10 = vpop.f32.mrb[30].mxu1 }
 0x14f   :  { %v1228_v11 = vmax.f32 %v1164_v5, 0.0  ;;  %v1260_v12 = vmax.f32 %v1196_v6, 0.0  ;;  %v1165_v13 = vadd.f32 %v1868_v17, %v752_v9  ;;  %v1197_v14 = vadd.f32 %v1868_v17, %v880_v10  ;;  %v754_v15 = vpop.f32.mrb[31].mxu0  ;;  %v882_v16 = vpop.f32.mrb[31].mxu1 }
 0x151   :  { %1292 = vst [vmem:[%s2129_s3 + $0x70] sm:$0xff] %v1228_v11  ;;  %1324 = vst [vmem:[%s2129_s3 + $0x170] sm:$0xff] %v1260_v12  ;;  %v1229_v18 = vmax.f32 %v1165_v13, 0.0  ;;  %v1261_v19 = vmax.f32 %v1197_v14, 0.0 }
 0x153   :  { %1293 = vst [vmem:[%s2129_s3 + $0x78] sm:$0xff] %v1229_v18  ;;  %1325 = vst [vmem:[%s2129_s3 + $0x178] sm:$0xff] %v1261_v19 }
 0x154   :  { %v757_v20 = vpop.f32.mrb[32].mxu0  ;;  %v885_v21 = vpop.f32.mrb[32].mxu1 }
 0x155   :  { %v1166_v22 = vadd.f32 %v1868_v17, %v757_v20  ;;  %v1198_v23 = vadd.f32 %v1868_v17, %v885_v21  ;;  %v759_v24 = vpop.f32.mrb[33].mxu0  ;;  %v887_v25 = vpop.f32.mrb[33].mxu1 }
 0x156   :  { %v760_v26 = vpop.f32.mrb[34].mxu0  ;;  %v888_v27 = vpop.f32.mrb[34].mxu1 }
 0x157   :  { %v1230_v28 = vmax.f32 %v1166_v22, 0.0  ;;  %v1262_v29 = vmax.f32 %v1198_v23, 0.0  ;;  %v1167_v30 = vadd.f32 %v1868_v17, %v760_v26  ;;  %v1199_v31 = vadd.f32 %v1868_v17, %v888_v27  ;;  %v762_v32 = vpop.f32.mrb[35].mxu0  ;;  %v890_v33 = vpop.f32.mrb[35].mxu1 }
 0x159   :  { %1294 = vst [vmem:[%s2129_s3 + $0x80] sm:$0xff] %v1230_v28  ;;  %1326 = vst [vmem:[%s2129_s3 + $0x180] sm:$0xff] %v1262_v29  ;;  %v1231_v34 = vmax.f32 %v1167_v30, 0.0  ;;  %v1263_v35 = vmax.f32 %v1199_v31, 0.0 }
 0x15b   :  { %1295 = vst [vmem:[%s2129_s3 + $0x88] sm:$0xff] %v1231_v34  ;;  %1327 = vst [vmem:[%s2129_s3 + $0x188] sm:$0xff] %v1263_v35 }
 0x15c   :  { %v765_v36 = vpop.f32.mrb[36].mxu0  ;;  %v893_v37 = vpop.f32.mrb[36].mxu1 }
 0x15d   :  { %v1168_v38 = vadd.f32 %v1868_v17, %v765_v36  ;;  %v1200_v39 = vadd.f32 %v1868_v17, %v893_v37  ;;  %v767_v40 = vpop.f32.mrb[37].mxu0  ;;  %v895_v41 = vpop.f32.mrb[37].mxu1 }
 0x15e   :  { %v768_v42 = vpop.f32.mrb[38].mxu0  ;;  %v896_v43 = vpop.f32.mrb[38].mxu1 }
 0x15f   :  { %v1232_v44 = vmax.f32 %v1168_v38, 0.0  ;;  %v1264_v45 = vmax.f32 %v1200_v39, 0.0  ;;  %v1169_v46 = vadd.f32 %v1868_v17, %v768_v42  ;;  %v1201_v47 = vadd.f32 %v1868_v17, %v896_v43  ;;  %v770_v48 = vpop.f32.mrb[39].mxu0  ;;  %v898_v49 = vpop.f32.mrb[39].mxu1 }
 0x161   :  { %1296 = vst [vmem:[%s2129_s3 + $0x90] sm:$0xff] %v1232_v44  ;;  %1328 = vst [vmem:[%s2129_s3 + $0x190] sm:$0xff] %v1264_v45  ;;  %v1233_v50 = vmax.f32 %v1169_v46, 0.0  ;;  %v1265_v51 = vmax.f32 %v1201_v47, 0.0 }
 0x163   :  { %1297 = vst [vmem:[%s2129_s3 + $0x98] sm:$0xff] %v1233_v50  ;;  %1329 = vst [vmem:[%s2129_s3 + $0x198] sm:$0xff] %v1265_v51 }
 0x164   :  { %v773_v52 = vpop.f32.mrb[40].mxu0  ;;  %v901_v53 = vpop.f32.mrb[40].mxu1 }
 0x165   :  { %v1170_v54 = vadd.f32 %v1868_v17, %v773_v52  ;;  %v1202_v55 = vadd.f32 %v1868_v17, %v901_v53  ;;  %v775_v56 = vpop.f32.mrb[41].mxu0  ;;  %v903_v57 = vpop.f32.mrb[41].mxu1 }
 0x166   :  { %v776_v58 = vpop.f32.mrb[42].mxu0  ;;  %v904_v59 = vpop.f32.mrb[42].mxu1 }
 0x167   :  { %v1234_v60 = vmax.f32 %v1170_v54, 0.0  ;;  %v1266_v61 = vmax.f32 %v1202_v55, 0.0  ;;  %v1171_v62 = vadd.f32 %v1868_v17, %v776_v58  ;;  %v1203_v63 = vadd.f32 %v1868_v17, %v904_v59  ;;  %v778_v0 = vpop.f32.mrb[43].mxu0  ;;  %v906_v1 = vpop.f32.mrb[43].mxu1 }
 0x169   :  { %1298 = vst [vmem:[%s2129_s3 + $0xa0] sm:$0xff] %v1234_v60  ;;  %1330 = vst [vmem:[%s2129_s3 + $0x1a0] sm:$0xff] %v1266_v61  ;;  %v1235_v2 = vmax.f32 %v1171_v62, 0.0  ;;  %v1267_v3 = vmax.f32 %v1203_v63, 0.0 }
 0x16b   :  { %1299 = vst [vmem:[%s2129_s3 + $0xa8] sm:$0xff] %v1235_v2  ;;  %1331 = vst [vmem:[%s2129_s3 + $0x1a8] sm:$0xff] %v1267_v3 }
 0x16c   :  { %v781_v4 = vpop.f32.mrb[44].mxu0  ;;  %v909_v5 = vpop.f32.mrb[44].mxu1 }
 0x16d   :  { %v1172_v6 = vadd.f32 %v1868_v17, %v781_v4  ;;  %v1204_v7 = vadd.f32 %v1868_v17, %v909_v5  ;;  %v783_v8 = vpop.f32.mrb[45].mxu0  ;;  %v911_v9 = vpop.f32.mrb[45].mxu1 }
 0x16e   :  { %v784_v10 = vpop.f32.mrb[46].mxu0  ;;  %v912_v11 = vpop.f32.mrb[46].mxu1 }
 0x16f   :  { %v1236_v12 = vmax.f32 %v1172_v6, 0.0  ;;  %v1268_v13 = vmax.f32 %v1204_v7, 0.0  ;;  %v1173_v14 = vadd.f32 %v1868_v17, %v784_v10  ;;  %v1205_v15 = vadd.f32 %v1868_v17, %v912_v11  ;;  %v786_v16 = vpop.f32.mrb[47].mxu0  ;;  %v914_v18 = vpop.f32.mrb[47].mxu1 }
 0x171   :  { %1300 = vst [vmem:[%s2129_s3 + $0xb0] sm:$0xff] %v1236_v12  ;;  %1332 = vst [vmem:[%s2129_s3 + $0x1b0] sm:$0xff] %v1268_v13  ;;  %v1237_v19 = vmax.f32 %v1173_v14, 0.0  ;;  %v1269_v20 = vmax.f32 %v1205_v15, 0.0 }
 0x173   :  { %1301 = vst [vmem:[%s2129_s3 + $0xb8] sm:$0xff] %v1237_v19  ;;  %1333 = vst [vmem:[%s2129_s3 + $0x1b8] sm:$0xff] %v1269_v20 }
 0x174   :  { %v789_v21 = vpop.f32.mrb[48].mxu0  ;;  %v917_v22 = vpop.f32.mrb[48].mxu1 }
 0x175   :  { %v1174_v23 = vadd.f32 %v1868_v17, %v789_v21  ;;  %v1206_v24 = vadd.f32 %v1868_v17, %v917_v22  ;;  %v791_v25 = vpop.f32.mrb[49].mxu0  ;;  %v919_v26 = vpop.f32.mrb[49].mxu1 }
 0x176   :  { %v792_v27 = vpop.f32.mrb[50].mxu0  ;;  %v920_v28 = vpop.f32.mrb[50].mxu1 }
 0x177   :  { %v1238_v29 = vmax.f32 %v1174_v23, 0.0  ;;  %v1270_v30 = vmax.f32 %v1206_v24, 0.0  ;;  %v1175_v31 = vadd.f32 %v1868_v17, %v792_v27  ;;  %v1207_v32 = vadd.f32 %v1868_v17, %v920_v28  ;;  %v794_v33 = vpop.f32.mrb[51].mxu0  ;;  %v922_v34 = vpop.f32.mrb[51].mxu1 }
 0x179   :  { %1302 = vst [vmem:[%s2129_s3 + $0xc0] sm:$0xff] %v1238_v29  ;;  %1334 = vst [vmem:[%s2129_s3 + $0x1c0] sm:$0xff] %v1270_v30  ;;  %v1239_v35 = vmax.f32 %v1175_v31, 0.0  ;;  %v1271_v36 = vmax.f32 %v1207_v32, 0.0 }
 0x17b   :  { %1303 = vst [vmem:[%s2129_s3 + $0xc8] sm:$0xff] %v1239_v35  ;;  %1335 = vst [vmem:[%s2129_s3 + $0x1c8] sm:$0xff] %v1271_v36 }
 0x17c   :  { %v797_v37 = vpop.f32.mrb[52].mxu0  ;;  %v925_v38 = vpop.f32.mrb[52].mxu1 }
 0x17d   :  { %v1176_v39 = vadd.f32 %v1868_v17, %v797_v37  ;;  %v1208_v40 = vadd.f32 %v1868_v17, %v925_v38  ;;  %v799_v41 = vpop.f32.mrb[53].mxu0  ;;  %v927_v42 = vpop.f32.mrb[53].mxu1 }
 0x17e   :  { %v800_v43 = vpop.f32.mrb[54].mxu0  ;;  %v928_v44 = vpop.f32.mrb[54].mxu1 }
 0x17f   :  { %v1240_v45 = vmax.f32 %v1176_v39, 0.0  ;;  %v1272_v46 = vmax.f32 %v1208_v40, 0.0  ;;  %v1177_v47 = vadd.f32 %v1868_v17, %v800_v43  ;;  %v1209_v48 = vadd.f32 %v1868_v17, %v928_v44  ;;  %v802_v49 = vpop.f32.mrb[55].mxu0  ;;  %v930_v50 = vpop.f32.mrb[55].mxu1 }
 0x181   :  { %1304 = vst [vmem:[%s2129_s3 + $0xd0] sm:$0xff] %v1240_v45  ;;  %1336 = vst [vmem:[%s2129_s3 + $0x1d0] sm:$0xff] %v1272_v46  ;;  %v1241_v51 = vmax.f32 %v1177_v47, 0.0  ;;  %v1273_v52 = vmax.f32 %v1209_v48, 0.0 }
 0x183   :  { %1305 = vst [vmem:[%s2129_s3 + $0xd8] sm:$0xff] %v1241_v51  ;;  %1337 = vst [vmem:[%s2129_s3 + $0x1d8] sm:$0xff] %v1273_v52 }
 0x184   :  { %v805_v53 = vpop.f32.mrb[56].mxu0  ;;  %v933_v54 = vpop.f32.mrb[56].mxu1 }
 0x185   :  { %v1178_v55 = vadd.f32 %v1868_v17, %v805_v53  ;;  %v1210_v56 = vadd.f32 %v1868_v17, %v933_v54  ;;  %v807_v57 = vpop.f32.mrb[57].mxu0  ;;  %v935_v58 = vpop.f32.mrb[57].mxu1 }
 0x186   :  { %v808_v59 = vpop.f32.mrb[58].mxu0  ;;  %v936_v60 = vpop.f32.mrb[58].mxu1 }
 0x187   :  { %v1242_v61 = vmax.f32 %v1178_v55, 0.0  ;;  %v1274_v62 = vmax.f32 %v1210_v56, 0.0  ;;  %v1179_v63 = vadd.f32 %v1868_v17, %v808_v59  ;;  %v1211_v0 = vadd.f32 %v1868_v17, %v936_v60  ;;  %v810_v1 = vpop.f32.mrb[59].mxu0  ;;  %v938_v2 = vpop.f32.mrb[59].mxu1 }
 0x189   :  { %1306 = vst [vmem:[%s2129_s3 + $0xe0] sm:$0xff] %v1242_v61  ;;  %1338 = vst [vmem:[%s2129_s3 + $0x1e0] sm:$0xff] %v1274_v62  ;;  %v1243_v3 = vmax.f32 %v1179_v63, 0.0  ;;  %v1275_v4 = vmax.f32 %v1211_v0, 0.0 }
 0x18b   :  { %1307 = vst [vmem:[%s2129_s3 + $0xe8] sm:$0xff] %v1243_v3  ;;  %1339 = vst [vmem:[%s2129_s3 + $0x1e8] sm:$0xff] %v1275_v4 }
 0x18c   :  { %v813_v5 = vpop.f32.mrb[60].mxu0  ;;  %v941_v6 = vpop.f32.mrb[60].mxu1 }
 0x18d   :  { %v1180_v7 = vadd.f32 %v1868_v17, %v813_v5  ;;  %v1212_v8 = vadd.f32 %v1868_v17, %v941_v6  ;;  %v815_v9 = vpop.f32.mrb[61].mxu0  ;;  %v943_v10 = vpop.f32.mrb[61].mxu1 }
 0x18e   :  { %v816_v11 = vpop.f32.mrb[62].mxu0  ;;  %v944_v12 = vpop.f32.mrb[62].mxu1 }
 0x18f   :  { %v1244_v13 = vmax.f32 %v1180_v7, 0.0  ;;  %v1276_v14 = vmax.f32 %v1212_v8, 0.0  ;;  %v1181_v15 = vadd.f32 %v1868_v17, %v816_v11  ;;  %v1213_v16 = vadd.f32 %v1868_v17, %v944_v12  ;;  %v818_v18 = vpop.f32.mrb[63].mxu0  ;;  %v946_v19 = vpop.f32.mrb[63].mxu1 }
 0x191   :  { %1308 = vst [vmem:[%s2129_s3 + $0xf0] sm:$0xff] %v1244_v13  ;;  %1340 = vst [vmem:[%s2129_s3 + $0x1f0] sm:$0xff] %v1276_v14  ;;  %v1245_v20 = vmax.f32 %v1181_v15, 0.0  ;;  %v1277_v21 = vmax.f32 %v1213_v16, 0.0 }
 0x193   :  { %1309 = vst [vmem:[%s2129_s3 + $0xf8] sm:$0xff] %v1245_v20  ;;  %1341 = vst [vmem:[%s2129_s3 + $0x1f8] sm:$0xff] %v1277_v21 }

// kernel: generator_forward.47
= control target key start
LH: loop header
LB: loop body
LE: loop exit
PB: predicated region body
PF: predicated region fallthrough
CT: control target
= control target key end

     0   :  { %s586_s1 = inlined_call_operand.vmem [shape: bf16[128,128], index: 1, kind: input, shape index: {}]   ;;  %s587_s0 = inlined_call_operand.vmem [shape: bf16[128,128], index: 0, kind: input, shape index: {}]   ;;  %s588_s2 = inlined_call_operand.vmem [shape: f32[1,128], index: 2, kind: input, shape index: {}]   ;;  %s589_s3 = inlined_call_operand.vmem [shape: f32[128,128], index: 3, kind: output, shape index: {}]  }
   0x1   :  { %v451_v0 = vld [vmem:[%s586_s1] sm:$0xff]   ;;  %v452_v1 = vld [vmem:[%s586_s1 + $0x8] sm:$0xff]   ;;  %v453_v2 = vld [vmem:[%s586_s1 + $0x10] sm:$0xff]  }
   0x2   :  { %403 = vmatprep.subr.bf16.mxu0 %v451_v0  ;;  %435 = vmatprep.subr.bf16.mxu1 %v451_v0  ;;  %v454_v3 = vld [vmem:[%s586_s1 + $0x18] sm:$0xff]   ;;  %v459_v4 = vld [vmem:[%s587_s0] sm:$0xff]   ;;  %v456_v7 = vld [vmem:[%s586_s1 + $0x28] sm:$0xff]  }
   0x3   :  { %404 = vmatpush3.bf16.msra.mxu0 %v451_v0  ;;  %443 = vmatpush3.bf16.msra.mxu1 %v451_v0  ;;  %v460_v5 = vld [vmem:[%s587_s0 + $0x20] sm:$0xff]   ;;  %v457_v8 = vld [vmem:[%s586_s1 + $0x30] sm:$0xff]   ;;  %v458_v9 = vld [vmem:[%s586_s1 + $0x38] sm:$0xff]  }
   0x4   :  { %405 = vmatprep.subr.bf16.mxu0 %v452_v1  ;;  %436 = vmatprep.subr.bf16.mxu1 %v452_v1  ;;  %v455_v6 = vld [vmem:[%s586_s1 + $0x20] sm:$0xff]   ;;  %v461_v10 = vld [vmem:[%s587_s0 + $0x8] sm:$0xff]   ;;  %v463_v12 = vld [vmem:[%s587_s0 + $0x10] sm:$0xff]  }
   0x5   :  { %419 = vmatprep.mubr.bf16.mxu0 %v459_v4  ;;  %427 = vmatprep.mubr.bf16.mxu1 %v460_v5  ;;  %v462_v11 = vld [vmem:[%s587_s0 + $0x28] sm:$0xff]   ;;  %v464_v13 = vld [vmem:[%s587_s0 + $0x30] sm:$0xff]   ;;  %v465_v14 = vld [vmem:[%s587_s0 + $0x18] sm:$0xff]  }
   0x6   :  { %v466_v15 = vld [vmem:[%s587_s0 + $0x38] sm:$0xff]   ;;  %v386_v16 = vld [vmem:[%s588_s2] ss:$0 sm:$0xff] }
   0x7   :  { %406 = vmatpush3.bf16.msra.mxu0 %v452_v1  ;;  %444 = vmatpush3.bf16.msra.mxu1 %v452_v1 }
   0x8   :  { %407 = vmatprep.subr.bf16.mxu0 %v453_v2  ;;  %437 = vmatprep.subr.bf16.mxu1 %v453_v2 }
   0xb   :  { %408 = vmatpush3.bf16.msra.mxu0 %v453_v2  ;;  %445 = vmatpush3.bf16.msra.mxu1 %v453_v2 }
   0xc   :  { %409 = vmatprep.subr.bf16.mxu0 %v454_v3  ;;  %438 = vmatprep.subr.bf16.mxu1 %v454_v3 }
   0xf   :  { %410 = vmatpush3.bf16.msra.mxu0 %v454_v3  ;;  %446 = vmatpush3.bf16.msra.mxu1 %v454_v3 }
  0x10   :  { %411 = vmatprep.subr.bf16.mxu0 %v455_v6  ;;  %439 = vmatprep.subr.bf16.mxu1 %v455_v6 }
  0x13   :  { %412 = vmatpush3.bf16.msra.mxu0 %v455_v6  ;;  %447 = vmatpush3.bf16.msra.mxu1 %v455_v6 }
  0x14   :  { %413 = vmatprep.subr.bf16.mxu0 %v456_v7  ;;  %440 = vmatprep.subr.bf16.mxu1 %v456_v7 }
  0x17   :  { %414 = vmatpush3.bf16.msra.mxu0 %v456_v7  ;;  %448 = vmatpush3.bf16.msra.mxu1 %v456_v7 }
  0x18   :  { %415 = vmatprep.subr.bf16.mxu0 %v457_v8  ;;  %441 = vmatprep.subr.bf16.mxu1 %v457_v8 }
  0x1b   :  { %416 = vmatpush3.bf16.msra.mxu0 %v457_v8  ;;  %449 = vmatpush3.bf16.msra.mxu1 %v457_v8 }
  0x1c   :  { %417 = vmatprep.subr.bf16.mxu0 %v458_v9  ;;  %442 = vmatprep.subr.bf16.mxu1 %v458_v9 }
  0x1f   :  { %418 = vmatpush3.bf16.msra.mxu0 %v458_v9  ;;  %450 = vmatpush3.bf16.msra.mxu1 %v458_v9 }
  0x22   :  { %420 = vmatmul.mubr.bf16.vlgmr.msra.gmra.mrb[0].mxu0 %v461_v10  ;;  %428 = vmatmul.mubr.bf16.vlgmr.msra.gmra.mrb[0].mxu1 %v462_v11 }
  0x23   :  { %423 = vmatprep.mubr.bf16.mxu0 %v463_v12  ;;  %431 = vmatprep.mubr.bf16.mxu1 %v464_v13 }
  0x2a   :  { %424 = vmatmul.mubr.bf16.gmra.mrb[4].mxu0 %v465_v14  ;;  %432 = vmatmul.mubr.bf16.gmra.mrb[4].mxu1 %v466_v15 }
  0xf5   :  { %v421_v17 = vpop.f32.mrb[0].mxu0  ;;  %v429_v18 = vpop.f32.mrb[0].mxu1 }
  0xf6   :  { %v336_v19 = vadd.f32 %v421_v17, %v386_v16  ;;  %v344_v20 = vadd.f32 %v429_v18, %v386_v16  ;;  %v213_v21 = vpop.f32.mrb[1].mxu0  ;;  %v245_v22 = vpop.f32.mrb[1].mxu1 }
  0xf7   :  { %v334_v23 = vadd.f32 %v386_v16, %v213_v21  ;;  %v342_v24 = vadd.f32 %v386_v16, %v245_v22  ;;  %v422_v25 = vpop.f32.mrb[2].mxu0  ;;  %v430_v26 = vpop.f32.mrb[2].mxu1 }
  0xf8   :  { %352 = vst [vmem:[%s589_s3 + $0x10] sm:$0xff] %v336_v19  ;;  %360 = vst [vmem:[%s589_s3 + $0x50] sm:$0xff] %v344_v20  ;;  %v337_v27 = vadd.f32 %v422_v25, %v386_v16  ;;  %v345_v28 = vadd.f32 %v430_v26, %v386_v16  ;;  %v216_v29 = vpop.f32.mrb[3].mxu0  ;;  %v248_v30 = vpop.f32.mrb[3].mxu1 }
  0xf9   :  { %350 = vst [vmem:[%s589_s3] sm:$0xff] %v334_v23  ;;  %358 = vst [vmem:[%s589_s3 + $0x40] sm:$0xff] %v342_v24  ;;  %v335_v31 = vadd.f32 %v386_v16, %v216_v29  ;;  %v343_v32 = vadd.f32 %v386_v16, %v248_v30 }
  0xfa   :  { %353 = vst [vmem:[%s589_s3 + $0x18] sm:$0xff] %v337_v27  ;;  %361 = vst [vmem:[%s589_s3 + $0x58] sm:$0xff] %v345_v28 }
  0xfb   :  { %351 = vst [vmem:[%s589_s3 + $0x8] sm:$0xff] %v335_v31  ;;  %359 = vst [vmem:[%s589_s3 + $0x48] sm:$0xff] %v343_v32 }
  0xfd   :  { %v425_v33 = vpop.f32.mrb[4].mxu0  ;;  %v433_v34 = vpop.f32.mrb[4].mxu1 }
  0xfe   :  { %v340_v35 = vadd.f32 %v425_v33, %v386_v16  ;;  %v348_v36 = vadd.f32 %v433_v34, %v386_v16  ;;  %v229_v37 = vpop.f32.mrb[5].mxu0  ;;  %v261_v38 = vpop.f32.mrb[5].mxu1 }
  0xff   :  { %v338_v39 = vadd.f32 %v386_v16, %v229_v37  ;;  %v346_v40 = vadd.f32 %v386_v16, %v261_v38  ;;  %v426_v41 = vpop.f32.mrb[6].mxu0  ;;  %v434_v42 = vpop.f32.mrb[6].mxu1 }
 0x100   :  { %356 = vst [vmem:[%s589_s3 + $0x30] sm:$0xff] %v340_v35  ;;  %364 = vst [vmem:[%s589_s3 + $0x70] sm:$0xff] %v348_v36  ;;  %v341_v43 = vadd.f32 %v426_v41, %v386_v16  ;;  %v349_v44 = vadd.f32 %v434_v42, %v386_v16  ;;  %v232_v45 = vpop.f32.mrb[7].mxu0  ;;  %v264_v46 = vpop.f32.mrb[7].mxu1 }
 0x101   :  { %354 = vst [vmem:[%s589_s3 + $0x20] sm:$0xff] %v338_v39  ;;  %362 = vst [vmem:[%s589_s3 + $0x60] sm:$0xff] %v346_v40  ;;  %v339_v47 = vadd.f32 %v386_v16, %v232_v45  ;;  %v347_v48 = vadd.f32 %v386_v16, %v264_v46 }
 0x102   :  { %357 = vst [vmem:[%s589_s3 + $0x38] sm:$0xff] %v341_v43  ;;  %365 = vst [vmem:[%s589_s3 + $0x78] sm:$0xff] %v349_v44 }
 0x103   :  { %355 = vst [vmem:[%s589_s3 + $0x28] sm:$0xff] %v339_v47  ;;  %363 = vst [vmem:[%s589_s3 + $0x68] sm:$0xff] %v347_v48 }

// kernel: generator_forward.48
= control target key start
LH: loop header
LB: loop body
LE: loop exit
PB: predicated region body
PF: predicated region fallthrough
CT: control target
= control target key end

     0   :  { %s134_s0 = inlined_call_operand.vmem [shape: f32[32,128], index: 0, kind: input, shape index: {}]   ;;  %s135_s1 = inlined_call_operand.vmem [shape: f32[32,128], index: 1, kind: output, shape index: {}]  }
   0x1   :  { %v101_v0 = vld [vmem:[%s134_s0 + $0x10] sm:$0xff]  ;;  %v8_v1 = vld [vmem:[%s134_s0] sm:$0xff]  ;;  %v110_v2 = vld [vmem:[%s134_s0 + $0x18] sm:$0xff] }
   0x2   :  { %16 = vadd.xlane.f32.xlu1 %v101_v0  ;;  %12 = vadd.xlane.f32.xlu0 %v8_v1  ;;  %v9_v3 = vld [vmem:[%s134_s0 + $0x8] sm:$0xff]  ;;  %v20_v5 = vmul.f32 %v8_v1, %v8_v1  ;;  %v23_v6 = vmul.f32 %v110_v2, %v110_v2  ;;  %v22_v7 = vmul.f32 %v101_v0, %v101_v0 }
   0x3   :  { %v21_v4 = vmul.f32 %v9_v3, %v9_v3 }
   0x6   :  { %18 = vadd.xlane.f32.xlu1 %v110_v2  ;;  %14 = vadd.xlane.f32.xlu0 %v9_v3 }
   0xa   :  { %26 = vadd.xlane.f32.xlu1 %v21_v4  ;;  %24 = vadd.xlane.f32.xlu0 %v20_v5 }
   0xe   :  { %30 = vadd.xlane.f32.xlu1 %v23_v6  ;;  %28 = vadd.xlane.f32.xlu0 %v22_v7 }
  0x8f   :  { %v17_v8 = vpop.xlane.xlu1 %16  ;;  %v13_v9 = vpop.xlane.xlu0 %12 }
  0x90   :  { %v32_v12 = vmul.f32 0.015625, %v13_v9  ;;  %v34_v14 = vmul.f32 0.015625, %v17_v8 }
  0x92   :  { %v40_v18 = vmul.f32 %v32_v12, %v32_v12  ;;  %v42_v24 = vmul.f32 %v34_v14, %v34_v14  ;;  %v52_v42 = vsub.f32 %v8_v1, %v32_v12  ;;  %v54_v49 = vsub.f32 %v101_v0, %v34_v14 }
  0x93   :  { %v19_v10 = vpop.xlane.xlu1 %18  ;;  %v15_v11 = vpop.xlane.xlu0 %14 }
  0x94   :  { %v33_v13 = vmul.f32 0.015625, %v15_v11  ;;  %v35_v15 = vmul.f32 0.015625, %v19_v10 }
  0x96   :  { %v41_v19 = vmul.f32 %v33_v13, %v33_v13  ;;  %v43_v25 = vmul.f32 %v35_v15, %v35_v15  ;;  %v53_v40 = vsub.f32 %v9_v3, %v33_v13  ;;  %v55_v46 = vsub.f32 %v110_v2, %v35_v15 }
  0x97   :  { %v27_v16 = vpop.xlane.xlu1 %26  ;;  %v25_v17 = vpop.xlane.xlu0 %24 }
  0x98   :  { %v37_v20 = vmul.f32 0.015625, %v27_v16  ;;  %v36_v21 = vmul.f32 0.015625, %v25_v17 }
  0x9a   :  { %v45_v22 = vsub.f32 %v37_v20, %v41_v19  ;;  %v44_v23 = vsub.f32 %v36_v21, %v40_v18 }
  0x9b   :  { %v31_v26 = vpop.xlane.xlu1 %30  ;;  %v29_v27 = vpop.xlane.xlu0 %28 }
  0x9c   :  { %v49_v28 = vmax.f32 %v45_v22, 0.0  ;;  %v48_v29 = vmax.f32 %v44_v23, 0.0  ;;  %v39_v30 = vmul.f32 0.015625, %v31_v26  ;;  %v38_v31 = vmul.f32 0.015625, %v29_v27 }
  0x9e   :  { %v57_v32 = vadd.f32 1e-05, %v49_v28  ;;  %v56_v33 = vadd.f32 1e-05, %v48_v29  ;;  %v47_v34 = vsub.f32 %v39_v30, %v43_v25  ;;  %v46_v35 = vsub.f32 %v38_v31, %v42_v24 }
  0xa0   :  { %80 = vrsqrt.f32 %v57_v32  ;;  %v51_v36 = vmax.f32 %v47_v34, 0.0  ;;  %v50_v37 = vmax.f32 %v46_v35, 0.0 }
  0xa1   :  { %82 = vrsqrt.f32 %v56_v33 }
  0xa2   :  { %v59_v38 = vadd.f32 1e-05, %v51_v36  ;;  %v58_v39 = vadd.f32 1e-05, %v50_v37 }
  0xa4   :  { %84 = vrsqrt.f32 %v59_v38 }
  0xa5   :  { %86 = vrsqrt.f32 %v58_v39 }
  0xaa   :  { %v81_v41 = vpop.eup %80 }
  0xab   :  { %v83_v43 = vpop.eup %82  ;;  %v65_v44 = vmul.f32 %v81_v41, %v53_v40 }
  0xac   :  { %v64_v45 = vmul.f32 %v83_v43, %v52_v42 }
  0xad   :  { %v69_v47 = vmax.f32 %v65_v44, 0.0 }
  0xae   :  { %v85_v48 = vpop.eup %84  ;;  %v68_v50 = vmax.f32 %v64_v45, 0.0 }
  0xaf   :  { %v87_v51 = vpop.eup %86  ;;  %73 = vst [vmem:[%s135_s1 + $0x8] sm:$0xff] %v69_v47  ;;  %v67_v52 = vmul.f32 %v85_v48, %v55_v46 }
  0xb0   :  { %72 = vst [vmem:[%s135_s1] sm:$0xff] %v68_v50  ;;  %v66_v53 = vmul.f32 %v87_v51, %v54_v49 }
  0xb1   :  { %v71_v54 = vmax.f32 %v67_v52, 0.0 }
  0xb2   :  { %v70_v55 = vmax.f32 %v66_v53, 0.0 }
  0xb3   :  { %75 = vst [vmem:[%s135_s1 + $0x18] sm:$0xff] %v71_v54 }
  0xb4   :  { %74 = vst [vmem:[%s135_s1 + $0x10] sm:$0xff] %v70_v55 }

// kernel: generator_forward.50
= control target key start
LH: loop header
LB: loop body
LE: loop exit
PB: predicated region body
PF: predicated region fallthrough
CT: control target
= control target key end

     0   :  { %s310_s0 = inlined_call_operand.vmem [shape: f32[64,128], index: 0, kind: input, shape index: {}]   ;;  %s311_s1 = inlined_call_operand.vmem [shape: f32[64,128], index: 1, kind: output, shape index: {}]  }
   0x1   :  { %v177_v0 = vld [vmem:[%s310_s0 + $0x10] sm:$0xff]  ;;  %v182_v1 = vld [vmem:[%s310_s0] sm:$0xff]  ;;  %v189_v2 = vld [vmem:[%s310_s0 + $0x18] sm:$0xff] }
   0x2   :  { %20 = vadd.xlane.f32.xlu1 %v177_v0  ;;  %16 = vadd.xlane.f32.xlu0 %v182_v1  ;;  %v194_v3 = vld [vmem:[%s310_s0 + $0x8] sm:$0xff]  ;;  %v206_v5 = vld [vmem:[%s310_s0 + $0x20] sm:$0xff]  ;;  %v213_v6 = vld [vmem:[%s310_s0 + $0x38] sm:$0xff]  ;;  %v32_v9 = vmul.f32 %v182_v1, %v182_v1  ;;  %v35_v10 = vmul.f32 %v189_v2, %v189_v2  ;;  %v34_v11 = vmul.f32 %v177_v0, %v177_v0 }
   0x3   :  { %v201_v4 = vld [vmem:[%s310_s0 + $0x28] sm:$0xff]  ;;  %v218_v7 = vld [vmem:[%s310_s0 + $0x30] sm:$0xff]  ;;  %v33_v8 = vmul.f32 %v194_v3, %v194_v3  ;;  %v36_v13 = vmul.f32 %v206_v5, %v206_v5  ;;  %v39_v14 = vmul.f32 %v213_v6, %v213_v6 }
   0x4   :  { %v37_v12 = vmul.f32 %v201_v4, %v201_v4  ;;  %v38_v15 = vmul.f32 %v218_v7, %v218_v7 }
   0x6   :  { %22 = vadd.xlane.f32.xlu1 %v189_v2  ;;  %18 = vadd.xlane.f32.xlu0 %v194_v3 }
   0xa   :  { %26 = vadd.xlane.f32.xlu1 %v201_v4  ;;  %24 = vadd.xlane.f32.xlu0 %v206_v5 }
   0xe   :  { %30 = vadd.xlane.f32.xlu1 %v213_v6  ;;  %28 = vadd.xlane.f32.xlu0 %v218_v7 }
  0x12   :  { %42 = vadd.xlane.f32.xlu1 %v33_v8  ;;  %40 = vadd.xlane.f32.xlu0 %v32_v9 }
  0x16   :  { %46 = vadd.xlane.f32.xlu1 %v35_v10  ;;  %44 = vadd.xlane.f32.xlu0 %v34_v11 }
  0x1a   :  { %50 = vadd.xlane.f32.xlu1 %v37_v12  ;;  %48 = vadd.xlane.f32.xlu0 %v36_v13 }
  0x1e   :  { %54 = vadd.xlane.f32.xlu1 %v39_v14  ;;  %52 = vadd.xlane.f32.xlu0 %v38_v15 }
  0x8f   :  { %v21_v16 = vpop.xlane.xlu1 %20  ;;  %v17_v17 = vpop.xlane.xlu0 %16 }
  0x90   :  { %v238_v24 = vmul.f32 0.0625, %v17_v17  ;;  %v242_v26 = vmul.f32 0.0625, %v21_v16 }
  0x92   :  { %v72_v30 = vmul.f32 %v238_v24, %v238_v24  ;;  %v74_v36 = vmul.f32 %v242_v26, %v242_v26 }
  0x93   :  { %v23_v18 = vpop.xlane.xlu1 %22  ;;  %v19_v19 = vpop.xlane.xlu0 %18 }
  0x94   :  { %v240_v25 = vmul.f32 0.0625, %v19_v19  ;;  %v244_v27 = vmul.f32 0.0625, %v23_v18 }
  0x96   :  { %v73_v31 = vmul.f32 %v240_v25, %v240_v25  ;;  %v75_v37 = vmul.f32 %v244_v27, %v244_v27 }
  0x97   :  { %v27_v20 = vpop.xlane.xlu1 %26  ;;  %v25_v21 = vpop.xlane.xlu0 %24 }
  0x98   :  { %v254_v38 = vmul.f32 0.0625, %v27_v20  ;;  %v256_v45 = vmul.f32 0.0625, %v25_v21 }
  0x9a   :  { %v77_v50 = vmul.f32 %v254_v38, %v254_v38  ;;  %v76_v58 = vmul.f32 %v256_v45, %v256_v45 }
  0x9b   :  { %v31_v22 = vpop.xlane.xlu1 %30  ;;  %v29_v23 = vpop.xlane.xlu0 %28 }
  0x9c   :  { %v260_v51 = vmul.f32 0.0625, %v31_v22  ;;  %v262_v52 = vmul.f32 0.0625, %v29_v23  ;;  %v97_v22 = vsub.f32 %v194_v3, %v240_v25  ;;  %v98_v3 = vsub.f32 %v177_v0, %v242_v26 }
  0x9d   :  { %v100_v0 = vsub.f32 %v206_v5, %v256_v45 }
  0x9e   :  { %v79_v63 = vmul.f32 %v260_v51, %v260_v51  ;;  %v78_v8 = vmul.f32 %v262_v52, %v262_v52  ;;  %v102_v5 = vsub.f32 %v218_v7, %v262_v52 }
  0x9f   :  { %v43_v28 = vpop.xlane.xlu1 %42  ;;  %v41_v29 = vpop.xlane.xlu0 %40 }
  0xa0   :  { %v65_v32 = vmul.f32 0.0625, %v43_v28  ;;  %v64_v33 = vmul.f32 0.0625, %v41_v29  ;;  %v96_v28 = vsub.f32 %v182_v1, %v238_v24 }
  0xa2   :  { %v81_v34 = vsub.f32 %v65_v32, %v73_v31  ;;  %v80_v35 = vsub.f32 %v64_v33, %v72_v30 }
  0xa3   :  { %v47_v39 = vpop.xlane.xlu1 %46  ;;  %v45_v40 = vpop.xlane.xlu0 %44 }
  0xa4   :  { %v89_v41 = vmax.f32 %v81_v34, 0.0  ;;  %v88_v42 = vmax.f32 %v80_v35, 0.0  ;;  %v67_v43 = vmul.f32 0.0625, %v47_v39  ;;  %v66_v44 = vmul.f32 0.0625, %v45_v40 }
  0xa5   :  { %v99_v34 = vsub.f32 %v189_v2, %v244_v27  ;;  %v101_v2 = vsub.f32 %v201_v4, %v254_v38  ;;  %v103_v4 = vsub.f32 %v213_v6, %v260_v51 }
  0xa6   :  { %v105_v46 = vadd.f32 1e-05, %v89_v41  ;;  %v104_v47 = vadd.f32 1e-05, %v88_v42  ;;  %v83_v48 = vsub.f32 %v67_v43, %v75_v37  ;;  %v82_v49 = vsub.f32 %v66_v44, %v74_v36 }
  0xa7   :  { %v51_v53 = vpop.xlane.xlu1 %50  ;;  %v49_v54 = vpop.xlane.xlu0 %48 }
  0xa8   :  { %148 = vrsqrt.f32 %v105_v46  ;;  %v91_v55 = vmax.f32 %v83_v48, 0.0  ;;  %v90_v56 = vmax.f32 %v82_v49, 0.0  ;;  %v69_v57 = vmul.f32 0.0625, %v51_v53 }
  0xa9   :  { %150 = vrsqrt.f32 %v104_v47  ;;  %v68_v59 = vmul.f32 0.0625, %v49_v54 }
  0xaa   :  { %v107_v60 = vadd.f32 1e-05, %v91_v55  ;;  %v106_v61 = vadd.f32 1e-05, %v90_v56  ;;  %v85_v62 = vsub.f32 %v69_v57, %v77_v50 }
  0xab   :  { %v84_v9 = vsub.f32 %v68_v59, %v76_v58  ;;  %v55_v10 = vpop.xlane.xlu1 %54  ;;  %v53_v11 = vpop.xlane.xlu0 %52 }
  0xac   :  { %152 = vrsqrt.f32 %v107_v60  ;;  %v93_v12 = vmax.f32 %v85_v62, 0.0  ;;  %v71_v13 = vmul.f32 0.0625, %v55_v10  ;;  %v70_v14 = vmul.f32 0.0625, %v53_v11 }
  0xad   :  { %154 = vrsqrt.f32 %v106_v61  ;;  %v92_v15 = vmax.f32 %v84_v9, 0.0 }
  0xae   :  { %v109_v16 = vadd.f32 1e-05, %v93_v12  ;;  %v87_v17 = vsub.f32 %v71_v13, %v79_v63  ;;  %v86_v18 = vsub.f32 %v70_v14, %v78_v8 }
  0xaf   :  { %v108_v19 = vadd.f32 1e-05, %v92_v15 }
  0xb0   :  { %156 = vrsqrt.f32 %v109_v16  ;;  %v95_v20 = vmax.f32 %v87_v17, 0.0  ;;  %v94_v21 = vmax.f32 %v86_v18, 0.0 }
  0xb1   :  { %158 = vrsqrt.f32 %v108_v19 }
  0xb2   :  { %v149_v23 = vpop.eup %148  ;;  %v111_v29 = vadd.f32 1e-05, %v95_v20  ;;  %v110_v30 = vadd.f32 1e-05, %v94_v21 }
  0xb3   :  { %v151_v31 = vpop.eup %150  ;;  %v121_v32 = vmul.f32 %v149_v23, %v97_v22 }
  0xb4   :  { %v120_v33 = vmul.f32 %v151_v31, %v96_v28  ;;  %160 = vrsqrt.f32 %v111_v29 }
  0xb5   :  { %v129_v35 = vmax.f32 %v121_v32, 0.0  ;;  %162 = vrsqrt.f32 %v110_v30 }
  0xb6   :  { %v153_v36 = vpop.eup %152  ;;  %v128_v25 = vmax.f32 %v120_v33, 0.0 }
  0xb7   :  { %v155_v37 = vpop.eup %154  ;;  %137 = vst [vmem:[%s311_s1 + $0x8] sm:$0xff] %v129_v35  ;;  %v123_v1 = vmul.f32 %v153_v36, %v99_v34 }
  0xb8   :  { %136 = vst [vmem:[%s311_s1] sm:$0xff] %v128_v25  ;;  %v122_v24 = vmul.f32 %v155_v37, %v98_v3 }
  0xb9   :  { %v131_v27 = vmax.f32 %v123_v1, 0.0 }
  0xba   :  { %v157_v39 = vpop.eup %156  ;;  %v130_v26 = vmax.f32 %v122_v24, 0.0 }
  0xbb   :  { %v159_v40 = vpop.eup %158  ;;  %139 = vst [vmem:[%s311_s1 + $0x18] sm:$0xff] %v131_v27  ;;  %v125_v41 = vmul.f32 %v157_v39, %v101_v2 }
  0xbc   :  { %138 = vst [vmem:[%s311_s1 + $0x10] sm:$0xff] %v130_v26  ;;  %v124_v42 = vmul.f32 %v159_v40, %v100_v0 }
  0xbd   :  { %v133_v38 = vmax.f32 %v125_v41, 0.0 }
  0xbe   :  { %v161_v43 = vpop.eup %160  ;;  %v132_v44 = vmax.f32 %v124_v42, 0.0 }
  0xbf   :  { %v163_v45 = vpop.eup %162  ;;  %141 = vst [vmem:[%s311_s1 + $0x28] sm:$0xff] %v133_v38  ;;  %v127_v46 = vmul.f32 %v161_v43, %v103_v4 }
  0xc0   :  { %140 = vst [vmem:[%s311_s1 + $0x20] sm:$0xff] %v132_v44  ;;  %v126_v47 = vmul.f32 %v163_v45, %v102_v5 }
  0xc1   :  { %v135_v48 = vmax.f32 %v127_v46, 0.0 }
  0xc2   :  { %v134_v49 = vmax.f32 %v126_v47, 0.0 }
  0xc3   :  { %143 = vst [vmem:[%s311_s1 + $0x38] sm:$0xff] %v135_v48 }
  0xc4   :  { %142 = vst [vmem:[%s311_s1 + $0x30] sm:$0xff] %v134_v49 }

// kernel: generator_forward.49
= control target key start
LH: loop header
LB: loop body
LE: loop exit
PB: predicated region body
PF: predicated region fallthrough
CT: control target
= control target key end

     0   :  { %s444_s1 = inlined_call_operand.vmem [shape: bf16[256,128], index: 1, kind: input, shape index: {}]   ;;  %s445_s0 = inlined_call_operand.vmem [shape: bf16[32,256], index: 0, kind: input, shape index: {}]   ;;  %s446_s2 = inlined_call_operand.vmem [shape: f32[1,128], index: 2, kind: input, shape index: {}]   ;;  %s447_s3 = inlined_call_operand.vmem [shape: f32[32,128], index: 3, kind: output, shape index: {}]  }
   0x1   :  { %v327_v0 = vld [vmem:[%s444_s1 + $0x40] sm:$0xff]   ;;  %v329_v2 = vld [vmem:[%s444_s1 + $0x48] sm:$0xff]   ;;  %v331_v4 = vld [vmem:[%s444_s1 + $0x50] sm:$0xff]  }
   0x2   :  { %v328_v1 = vld [vmem:[%s444_s1] sm:$0xff]   ;;  %283 = vmatprep.subr.bf16.mxu0 %v327_v0  ;;  %311 = vmatprep.subr.bf16.mxu1 %v327_v0  ;;  %v330_v3 = vld [vmem:[%s444_s1 + $0x8] sm:$0xff]   ;;  %v332_v5 = vld [vmem:[%s444_s1 + $0x10] sm:$0xff]  }
   0x3   :  { %284 = vmatpush3.bf16.msra.mxu0 %v328_v1  ;;  %319 = vmatpush3.bf16.msra.mxu1 %v328_v1  ;;  %v333_v6 = vld [vmem:[%s444_s1 + $0x58] sm:$0xff]   ;;  %v335_v8 = vld [vmem:[%s444_s1 + $0x60] sm:$0xff]   ;;  %v337_v10 = vld [vmem:[%s444_s1 + $0x68] sm:$0xff]  }
   0x4   :  { %285 = vmatprep.subr.bf16.mxu0 %v329_v2  ;;  %312 = vmatprep.subr.bf16.mxu1 %v329_v2  ;;  %v334_v7 = vld [vmem:[%s444_s1 + $0x18] sm:$0xff]   ;;  %v336_v9 = vld [vmem:[%s444_s1 + $0x20] sm:$0xff]   ;;  %v338_v13 = vld [vmem:[%s444_s1 + $0x28] sm:$0xff]  }
   0x5   :  { %v345_v11 = vld [vmem:[%s445_s0 + $0x4] ss:$8 sps:$4 sm:$0xff]   ;;  %v348_v12 = vld [vmem:[%s445_s0 + $0x14] ss:$8 sps:$4 sm:$0xff]   ;;  %v343_v18 = vld [vmem:[%s445_s0] ss:$8 sps:$4 sm:$0xff]  }
   0x6   :  { %v339_v14 = vld [vmem:[%s444_s1 + $0x70] sm:$0xff]   ;;  %211 = vmatprep.mubr.bf16.mxu0 %v345_v11  ;;  %219 = vmatprep.mubr.bf16.mxu1 %v348_v12  ;;  %v341_v16 = vld [vmem:[%s444_s1 + $0x78] sm:$0xff]   ;;  %v282_v23 = vld [vmem:[%s446_s2] ss:$0 sm:$0xff] }
   0x7   :  { %286 = vmatpush3.bf16.msra.mxu0 %v330_v3  ;;  %320 = vmatpush3.bf16.msra.mxu1 %v330_v3  ;;  %v340_v15 = vld [vmem:[%s444_s1 + $0x30] sm:$0xff]   ;;  %v342_v17 = vld [vmem:[%s444_s1 + $0x38] sm:$0xff]  }
   0x8   :  { %287 = vmatprep.subr.bf16.mxu0 %v331_v4  ;;  %313 = vmatprep.subr.bf16.mxu1 %v331_v4  ;;  %v346_v19 = vld [vmem:[%s445_s0 + $0x10] ss:$8 sps:$4 sm:$0xff]  }
   0xb   :  { %288 = vmatpush3.bf16.msra.mxu0 %v332_v5  ;;  %321 = vmatpush3.bf16.msra.mxu1 %v332_v5 }
   0xc   :  { %289 = vmatprep.subr.bf16.mxu0 %v333_v6  ;;  %314 = vmatprep.subr.bf16.mxu1 %v333_v6 }
   0xf   :  { %290 = vmatpush3.bf16.msra.mxu0 %v334_v7  ;;  %322 = vmatpush3.bf16.msra.mxu1 %v334_v7 }
  0x10   :  { %291 = vmatprep.subr.bf16.mxu0 %v335_v8  ;;  %315 = vmatprep.subr.bf16.mxu1 %v335_v8 }
  0x13   :  { %292 = vmatpush3.bf16.msra.mxu0 %v336_v9  ;;  %323 = vmatpush3.bf16.msra.mxu1 %v336_v9 }
  0x14   :  { %293 = vmatprep.subr.bf16.mxu0 %v337_v10  ;;  %316 = vmatprep.subr.bf16.mxu1 %v337_v10 }
  0x17   :  { %294 = vmatpush3.bf16.msra.mxu0 %v338_v13  ;;  %324 = vmatpush3.bf16.msra.mxu1 %v338_v13 }
  0x18   :  { %295 = vmatprep.subr.bf16.mxu0 %v339_v14  ;;  %317 = vmatprep.subr.bf16.mxu1 %v339_v14 }
  0x1b   :  { %296 = vmatpush3.bf16.msra.mxu0 %v340_v15  ;;  %325 = vmatpush3.bf16.msra.mxu1 %v340_v15 }
  0x1c   :  { %297 = vmatprep.subr.bf16.mxu0 %v341_v16  ;;  %318 = vmatprep.subr.bf16.mxu1 %v341_v16 }
  0x1f   :  { %298 = vmatpush3.bf16.msra.mxu0 %v342_v17  ;;  %326 = vmatpush3.bf16.msra.mxu1 %v342_v17 }
  0x22   :  { %212 = vmatmul.mubr.bf16.vlgmr.msra.gmra.mrb[0].mxu0 %v343_v18  ;;  %220 = vmatmul.mubr.bf16.vlgmr.msra.gmra.mrb[0].mxu1 %v346_v19 }
  0xf5   :  { %v299_v20 = vpop.f32.mrb[0].mxu0  ;;  %v305_v21 = vpop.f32.mrb[0].mxu1 }
  0xf6   :  { %v300_v22 = vpop.f32.mrb[1].mxu0  ;;  %v306_v24 = vpop.f32.mrb[1].mxu1 }
  0xf7   :  { %v301_v25 = vadd.f32 %v300_v22, %v299_v20  ;;  %v307_v26 = vadd.f32 %v306_v24, %v305_v21  ;;  %v302_v27 = vpop.f32.mrb[2].mxu0  ;;  %v308_v28 = vpop.f32.mrb[2].mxu1 }
  0xf8   :  { %v303_v29 = vpop.f32.mrb[3].mxu0  ;;  %v309_v30 = vpop.f32.mrb[3].mxu1 }
  0xf9   :  { %v250_v31 = vadd.f32 %v301_v25, %v282_v23  ;;  %v252_v32 = vadd.f32 %v307_v26, %v282_v23  ;;  %v304_v33 = vadd.f32 %v303_v29, %v302_v27  ;;  %v310_v34 = vadd.f32 %v309_v30, %v308_v28 }
  0xfb   :  { %254 = vst [vmem:[%s447_s3] sm:$0xff] %v250_v31  ;;  %256 = vst [vmem:[%s447_s3 + $0x10] sm:$0xff] %v252_v32  ;;  %v251_v35 = vadd.f32 %v304_v33, %v282_v23  ;;  %v253_v36 = vadd.f32 %v310_v34, %v282_v23 }
  0xfd   :  { %255 = vst [vmem:[%s447_s3 + $0x8] sm:$0xff] %v251_v35  ;;  %257 = vst [vmem:[%s447_s3 + $0x18] sm:$0xff] %v253_v36 }

// kernel: generator_forward.54
= control target key start
LH: loop header
LB: loop body
LE: loop exit
PB: predicated region body
PF: predicated region fallthrough
CT: control target
= control target key end

     0   :  { %s302_s0 = inlined_call_operand.vmem [shape: f32[64,128], index: 0, kind: input, shape index: {}]   ;;  %s303_s1 = inlined_call_operand.vmem [shape: f32[64,128], index: 1, kind: output, shape index: {}]  }
   0x1   :  { %v169_v0 = vld [vmem:[%s302_s0 + $0x10] sm:$0xff]  ;;  %v174_v1 = vld [vmem:[%s302_s0] sm:$0xff]  ;;  %v181_v2 = vld [vmem:[%s302_s0 + $0x18] sm:$0xff] }
   0x2   :  { %20 = vadd.xlane.f32.xlu1 %v169_v0  ;;  %16 = vadd.xlane.f32.xlu0 %v174_v1  ;;  %v186_v3 = vld [vmem:[%s302_s0 + $0x8] sm:$0xff]  ;;  %v198_v5 = vld [vmem:[%s302_s0 + $0x20] sm:$0xff]  ;;  %v205_v6 = vld [vmem:[%s302_s0 + $0x38] sm:$0xff]  ;;  %v32_v9 = vmul.f32 %v174_v1, %v174_v1  ;;  %v35_v10 = vmul.f32 %v181_v2, %v181_v2  ;;  %v34_v11 = vmul.f32 %v169_v0, %v169_v0 }
   0x3   :  { %v193_v4 = vld [vmem:[%s302_s0 + $0x28] sm:$0xff]  ;;  %v210_v7 = vld [vmem:[%s302_s0 + $0x30] sm:$0xff]  ;;  %v33_v8 = vmul.f32 %v186_v3, %v186_v3  ;;  %v36_v13 = vmul.f32 %v198_v5, %v198_v5  ;;  %v39_v14 = vmul.f32 %v205_v6, %v205_v6 }
   0x4   :  { %v37_v12 = vmul.f32 %v193_v4, %v193_v4  ;;  %v38_v15 = vmul.f32 %v210_v7, %v210_v7 }
   0x6   :  { %22 = vadd.xlane.f32.xlu1 %v181_v2  ;;  %18 = vadd.xlane.f32.xlu0 %v186_v3 }
   0xa   :  { %26 = vadd.xlane.f32.xlu1 %v193_v4  ;;  %24 = vadd.xlane.f32.xlu0 %v198_v5 }
   0xe   :  { %30 = vadd.xlane.f32.xlu1 %v205_v6  ;;  %28 = vadd.xlane.f32.xlu0 %v210_v7 }
  0x12   :  { %42 = vadd.xlane.f32.xlu1 %v33_v8  ;;  %40 = vadd.xlane.f32.xlu0 %v32_v9 }
  0x16   :  { %46 = vadd.xlane.f32.xlu1 %v35_v10  ;;  %44 = vadd.xlane.f32.xlu0 %v34_v11 }
  0x1a   :  { %50 = vadd.xlane.f32.xlu1 %v37_v12  ;;  %48 = vadd.xlane.f32.xlu0 %v36_v13 }
  0x1e   :  { %54 = vadd.xlane.f32.xlu1 %v39_v14  ;;  %52 = vadd.xlane.f32.xlu0 %v38_v15 }
  0x8f   :  { %v21_v16 = vpop.xlane.xlu1 %20  ;;  %v17_v17 = vpop.xlane.xlu0 %16 }
  0x90   :  { %v230_v24 = vmul.f32 0.0625, %v17_v17  ;;  %v234_v26 = vmul.f32 0.0625, %v21_v16 }
  0x92   :  { %v72_v30 = vmul.f32 %v230_v24, %v230_v24  ;;  %v74_v36 = vmul.f32 %v234_v26, %v234_v26 }
  0x93   :  { %v23_v18 = vpop.xlane.xlu1 %22  ;;  %v19_v19 = vpop.xlane.xlu0 %18 }
  0x94   :  { %v232_v25 = vmul.f32 0.0625, %v19_v19  ;;  %v236_v27 = vmul.f32 0.0625, %v23_v18 }
  0x96   :  { %v73_v31 = vmul.f32 %v232_v25, %v232_v25  ;;  %v75_v37 = vmul.f32 %v236_v27, %v236_v27 }
  0x97   :  { %v27_v20 = vpop.xlane.xlu1 %26  ;;  %v25_v21 = vpop.xlane.xlu0 %24 }
  0x98   :  { %v246_v38 = vmul.f32 0.0625, %v27_v20  ;;  %v248_v45 = vmul.f32 0.0625, %v25_v21 }
  0x9a   :  { %v77_v50 = vmul.f32 %v246_v38, %v246_v38  ;;  %v76_v58 = vmul.f32 %v248_v45, %v248_v45 }
  0x9b   :  { %v31_v22 = vpop.xlane.xlu1 %30  ;;  %v29_v23 = vpop.xlane.xlu0 %28 }
  0x9c   :  { %v252_v51 = vmul.f32 0.0625, %v31_v22  ;;  %v254_v52 = vmul.f32 0.0625, %v29_v23  ;;  %v97_v22 = vsub.f32 %v186_v3, %v232_v25  ;;  %v98_v25 = vsub.f32 %v169_v0, %v234_v26 }
  0x9e   :  { %v79_v63 = vmul.f32 %v252_v51, %v252_v51  ;;  %v78_v8 = vmul.f32 %v254_v52, %v254_v52 }
  0x9f   :  { %v43_v28 = vpop.xlane.xlu1 %42  ;;  %v41_v29 = vpop.xlane.xlu0 %40 }
  0xa0   :  { %v65_v32 = vmul.f32 0.0625, %v43_v28  ;;  %v64_v33 = vmul.f32 0.0625, %v41_v29  ;;  %v96_v28 = vsub.f32 %v174_v1, %v230_v24 }
  0xa2   :  { %v81_v34 = vsub.f32 %v65_v32, %v73_v31  ;;  %v80_v35 = vsub.f32 %v64_v33, %v72_v30 }
  0xa3   :  { %v47_v39 = vpop.xlane.xlu1 %46  ;;  %v45_v40 = vpop.xlane.xlu0 %44 }
  0xa4   :  { %v89_v41 = vmax.f32 %v81_v34, 0.0  ;;  %v88_v42 = vmax.f32 %v80_v35, 0.0  ;;  %v67_v43 = vmul.f32 0.0625, %v47_v39  ;;  %v66_v44 = vmul.f32 0.0625, %v45_v40 }
  0xa5   :  { %v99_v34 = vsub.f32 %v181_v2, %v236_v27  ;;  %v100_v27 = vsub.f32 %v198_v5, %v248_v45  ;;  %v103_v39 = vsub.f32 %v205_v6, %v252_v51 }
  0xa6   :  { %v105_v46 = vadd.f32 1e-05, %v89_v41  ;;  %v104_v47 = vadd.f32 1e-05, %v88_v42  ;;  %v83_v48 = vsub.f32 %v67_v43, %v75_v37  ;;  %v82_v49 = vsub.f32 %v66_v44, %v74_v36 }
  0xa7   :  { %v51_v53 = vpop.xlane.xlu1 %50  ;;  %v49_v54 = vpop.xlane.xlu0 %48  ;;  %v101_v36 = vsub.f32 %v193_v4, %v246_v38  ;;  %v102_v38 = vsub.f32 %v210_v7, %v254_v52 }
  0xa8   :  { %140 = vrsqrt.f32 %v105_v46  ;;  %v91_v55 = vmax.f32 %v83_v48, 0.0  ;;  %v90_v56 = vmax.f32 %v82_v49, 0.0  ;;  %v69_v57 = vmul.f32 0.0625, %v51_v53 }
  0xa9   :  { %142 = vrsqrt.f32 %v104_v47  ;;  %v68_v59 = vmul.f32 0.0625, %v49_v54 }
  0xaa   :  { %v107_v60 = vadd.f32 1e-05, %v91_v55  ;;  %v106_v61 = vadd.f32 1e-05, %v90_v56  ;;  %v85_v62 = vsub.f32 %v69_v57, %v77_v50 }
  0xab   :  { %v84_v9 = vsub.f32 %v68_v59, %v76_v58  ;;  %v55_v10 = vpop.xlane.xlu1 %54  ;;  %v53_v11 = vpop.xlane.xlu0 %52 }
  0xac   :  { %144 = vrsqrt.f32 %v107_v60  ;;  %v93_v12 = vmax.f32 %v85_v62, 0.0  ;;  %v71_v13 = vmul.f32 0.0625, %v55_v10  ;;  %v70_v14 = vmul.f32 0.0625, %v53_v11 }
  0xad   :  { %146 = vrsqrt.f32 %v106_v61  ;;  %v92_v15 = vmax.f32 %v84_v9, 0.0 }
  0xae   :  { %v109_v16 = vadd.f32 1e-05, %v93_v12  ;;  %v87_v17 = vsub.f32 %v71_v13, %v79_v63  ;;  %v86_v18 = vsub.f32 %v70_v14, %v78_v8 }
  0xaf   :  { %v108_v19 = vadd.f32 1e-05, %v92_v15 }
  0xb0   :  { %148 = vrsqrt.f32 %v109_v16  ;;  %v95_v20 = vmax.f32 %v87_v17, 0.0  ;;  %v94_v21 = vmax.f32 %v86_v18, 0.0 }
  0xb1   :  { %150 = vrsqrt.f32 %v108_v19 }
  0xb2   :  { %v141_v23 = vpop.eup %140  ;;  %v111_v29 = vadd.f32 1e-05, %v95_v20  ;;  %v110_v30 = vadd.f32 1e-05, %v94_v21 }
  0xb3   :  { %v143_v31 = vpop.eup %142  ;;  %v121_v32 = vmul.f32 %v141_v23, %v97_v22 }
  0xb4   :  { %v120_v33 = vmul.f32 %v143_v31, %v96_v28  ;;  %152 = vrsqrt.f32 %v111_v29 }
  0xb5   :  { %129 = vst [vmem:[%s303_s1 + $0x8] sm:$0xff] %v121_v32  ;;  %154 = vrsqrt.f32 %v110_v30 }
  0xb6   :  { %v145_v3 = vpop.eup %144  ;;  %128 = vst [vmem:[%s303_s1] sm:$0xff] %v120_v33 }
  0xb7   :  { %v147_v1 = vpop.eup %146  ;;  %v123_v24 = vmul.f32 %v145_v3, %v99_v34 }
  0xb8   :  { %v122_v35 = vmul.f32 %v147_v1, %v98_v25 }
  0xb9   :  { %131 = vst [vmem:[%s303_s1 + $0x18] sm:$0xff] %v123_v24 }
  0xba   :  { %v149_v2 = vpop.eup %148  ;;  %130 = vst [vmem:[%s303_s1 + $0x10] sm:$0xff] %v122_v35 }
  0xbb   :  { %v151_v0 = vpop.eup %150  ;;  %v125_v26 = vmul.f32 %v149_v2, %v101_v36 }
  0xbc   :  { %v124_v37 = vmul.f32 %v151_v0, %v100_v27 }
  0xbd   :  { %133 = vst [vmem:[%s303_s1 + $0x28] sm:$0xff] %v125_v26 }
  0xbe   :  { %v153_v4 = vpop.eup %152  ;;  %132 = vst [vmem:[%s303_s1 + $0x20] sm:$0xff] %v124_v37 }
  0xbf   :  { %v155_v5 = vpop.eup %154  ;;  %v127_v40 = vmul.f32 %v153_v4, %v103_v39 }
  0xc0   :  { %v126_v41 = vmul.f32 %v155_v5, %v102_v38 }
  0xc1   :  { %135 = vst [vmem:[%s303_s1 + $0x38] sm:$0xff] %v127_v40 }
  0xc2   :  { %134 = vst [vmem:[%s303_s1 + $0x30] sm:$0xff] %v126_v41 }

// kernel: generator_forward.51
= control target key start
LH: loop header
LB: loop body
LE: loop exit
PB: predicated region body
PF: predicated region fallthrough
CT: control target
= control target key end

     0   :  { %s637_s1 = inlined_call_operand.vmem [shape: bf16[384,128], index: 1, kind: input, shape index: {}]   ;;  %s638_s0 = inlined_call_operand.vmem [shape: bf16[32,384], index: 0, kind: input, shape index: {}]   ;;  %s639_s2 = inlined_call_operand.vmem [shape: f32[1,128], index: 2, kind: input, shape index: {}]   ;;  %s640_s3 = inlined_call_operand.vmem [shape: f32[32,128], index: 3, kind: output, shape index: {}]  }
   0x1   :  { %v480_v0 = vld [vmem:[%s637_s1 + $0x40] sm:$0xff]   ;;  %v483_v3 = vld [vmem:[%s637_s1 + $0x48] sm:$0xff]   ;;  %v486_v6 = vld [vmem:[%s637_s1 + $0x50] sm:$0xff]  }
   0x2   :  { %v481_v1 = vld [vmem:[%s637_s1] sm:$0xff]   ;;  %422 = vmatprep.subr.bf16.mxu0 %v480_v0  ;;  %v484_v4 = vld [vmem:[%s637_s1 + $0x8] sm:$0xff]   ;;  %v487_v7 = vld [vmem:[%s637_s1 + $0x10] sm:$0xff]  }
   0x3   :  { %v482_v2 = vld [vmem:[%s637_s1 + $0x80] sm:$0xff]   ;;  %423 = vmatpush3.bf16.msra.mxu0 %v481_v1  ;;  %v485_v5 = vld [vmem:[%s637_s1 + $0x88] sm:$0xff]   ;;  %v488_v8 = vld [vmem:[%s637_s1 + $0x90] sm:$0xff]  }
   0x4   :  { %460 = vmatprep.subr.bf16.mxu1 %v482_v2  ;;  %424 = vmatprep.subr.bf16.mxu0 %v483_v3  ;;  %v489_v9 = vld [vmem:[%s637_s1 + $0x58] sm:$0xff]   ;;  %v492_v12 = vld [vmem:[%s637_s1 + $0x60] sm:$0xff]   ;;  %v495_v15 = vld [vmem:[%s637_s1 + $0x68] sm:$0xff]  }
   0x5   :  { %461 = vmatpush3.bf16.msra.mxu1 %v482_v2  ;;  %v490_v10 = vld [vmem:[%s637_s1 + $0x18] sm:$0xff]   ;;  %v494_v13 = vld [vmem:[%s637_s1 + $0xa0] sm:$0xff]   ;;  %v497_v16 = vld [vmem:[%s637_s1 + $0xa8] sm:$0xff]  }
   0x6   :  { %462 = vmatprep.subr.bf16.mxu1 %v485_v5  ;;  %v491_v11 = vld [vmem:[%s637_s1 + $0x98] sm:$0xff]   ;;  %v493_v14 = vld [vmem:[%s637_s1 + $0x20] sm:$0xff]   ;;  %v496_v17 = vld [vmem:[%s637_s1 + $0x28] sm:$0xff]  }
   0x7   :  { %425 = vmatpush3.bf16.msra.mxu0 %v484_v4  ;;  %v498_v18 = vld [vmem:[%s637_s1 + $0x70] sm:$0xff]   ;;  %v501_v21 = vld [vmem:[%s637_s1 + $0x78] sm:$0xff]   ;;  %v504_v26 = vld [vmem:[%s638_s0] ss:$12 sps:$4 sm:$0xff]  }
   0x8   :  { %426 = vmatprep.subr.bf16.mxu0 %v486_v6  ;;  %v499_v19 = vld [vmem:[%s637_s1 + $0x30] sm:$0xff]   ;;  %v503_v22 = vld [vmem:[%s637_s1 + $0xb8] sm:$0xff]   ;;  %v508_v28 = vld [vmem:[%s638_s0 + $0x20] ss:$12 sps:$4 sm:$0xff]  }
   0x9   :  { %463 = vmatpush3.bf16.msra.mxu1 %v485_v5  ;;  %v500_v20 = vld [vmem:[%s637_s1 + $0xb0] sm:$0xff]   ;;  %v502_v25 = vld [vmem:[%s637_s1 + $0x38] sm:$0xff]   ;;  %v421_v37 = vld [vmem:[%s639_s2] ss:$0 sm:$0xff] }
   0xa   :  { %464 = vmatprep.subr.bf16.mxu1 %v488_v8  ;;  %v506_v23 = vld [vmem:[%s638_s0 + $0x4] ss:$12 sps:$4 sm:$0xff]   ;;  %v507_v24 = vld [vmem:[%s638_s0 + $0x8] ss:$12 sps:$4 sm:$0xff]  }
   0xb   :  { %427 = vmatpush3.bf16.msra.mxu0 %v487_v7  ;;  %291 = vmatprep.mubr.bf16.mxu0 %v506_v23  ;;  %v509_v27 = vld [vmem:[%s638_s0 + $0x1c] ss:$12 sps:$4 sm:$0xff]   ;;  %v511_v29 = vld [vmem:[%s638_s0 + $0x18] ss:$12 sps:$4 sm:$0xff]  }
   0xc   :  { %428 = vmatprep.subr.bf16.mxu0 %v489_v9  ;;  %476 = vmatprep.mubr.bf16.mxu1 %v507_v24 }
   0xd   :  { %465 = vmatpush3.bf16.msra.mxu1 %v488_v8 }
   0xe   :  { %466 = vmatprep.subr.bf16.mxu1 %v491_v11 }
   0xf   :  { %429 = vmatpush3.bf16.msra.mxu0 %v490_v10 }
  0x10   :  { %430 = vmatprep.subr.bf16.mxu0 %v492_v12 }
  0x11   :  { %467 = vmatpush3.bf16.msra.mxu1 %v491_v11 }
  0x12   :  { %468 = vmatprep.subr.bf16.mxu1 %v494_v13 }
  0x13   :  { %431 = vmatpush3.bf16.msra.mxu0 %v493_v14 }
  0x14   :  { %432 = vmatprep.subr.bf16.mxu0 %v495_v15 }
  0x15   :  { %469 = vmatpush3.bf16.msra.mxu1 %v494_v13 }
  0x16   :  { %470 = vmatprep.subr.bf16.mxu1 %v497_v16 }
  0x17   :  { %433 = vmatpush3.bf16.msra.mxu0 %v496_v17 }
  0x18   :  { %434 = vmatprep.subr.bf16.mxu0 %v498_v18 }
  0x19   :  { %471 = vmatpush3.bf16.msra.mxu1 %v497_v16 }
  0x1a   :  { %472 = vmatprep.subr.bf16.mxu1 %v500_v20 }
  0x1b   :  { %435 = vmatpush3.bf16.msra.mxu0 %v499_v19 }
  0x1c   :  { %436 = vmatprep.subr.bf16.mxu0 %v501_v21 }
  0x1d   :  { %473 = vmatpush3.bf16.msra.mxu1 %v500_v20 }
  0x1e   :  { %474 = vmatprep.subr.bf16.mxu1 %v503_v22 }
  0x1f   :  { %437 = vmatpush3.bf16.msra.mxu0 %v502_v25 }
  0x21   :  { %475 = vmatpush3.bf16.msra.mxu1 %v503_v22 }
  0x22   :  { %292 = vmatmul.mubr.bf16.vlgmr.msra.gmra.mrb[0].mxu0 %v504_v26 }
  0x23   :  { %299 = vmatprep.mubr.bf16.mxu0 %v509_v27 }
  0x24   :  { %477 = vmatmul.mubr.bf16.vlgmr.msra.gmra.mrb[0].mxu1 %v508_v28 }
  0x2a   :  { %300 = vmatmul.mubr.bf16.gmra.mrb[4].mxu0 %v511_v29 }
  0xf5   :  { %v438_v30 = vpop.f32.mrb[0].mxu0 }
  0xf6   :  { %v439_v31 = vpop.f32.mrb[1].mxu0 }
  0xf7   :  { %v440_v32 = vadd.f32 %v439_v31, %v438_v30  ;;  %v441_v33 = vpop.f32.mrb[2].mxu0  ;;  %v478_v34 = vpop.f32.mrb[0].mxu1 }
  0xf8   :  { %v442_v35 = vpop.f32.mrb[3].mxu0  ;;  %v342_v36 = vpop.f32.mrb[1].mxu1 }
  0xf9   :  { %v443_v38 = vadd.f32 %v442_v35, %v441_v33  ;;  %v343_v39 = vadd.f32 %v440_v32, %v342_v36  ;;  %v479_v40 = vpop.f32.mrb[2].mxu1 }
  0xfa   :  { %v345_v41 = vpop.f32.mrb[3].mxu1 }
  0xfb   :  { %v379_v42 = vadd.f32 %v421_v37, %v343_v39  ;;  %v346_v43 = vadd.f32 %v443_v38, %v345_v41 }
  0xfd   :  { %383 = vst [vmem:[%s640_s3] sm:$0xff] %v379_v42  ;;  %v380_v44 = vadd.f32 %v421_v37, %v346_v43  ;;  %v444_v45 = vpop.f32.mrb[4].mxu0 }
  0xfe   :  { %v445_v46 = vpop.f32.mrb[5].mxu0 }
  0xff   :  { %384 = vst [vmem:[%s640_s3 + $0x8] sm:$0xff] %v380_v44  ;;  %v446_v47 = vadd.f32 %v445_v46, %v444_v45  ;;  %v447_v48 = vpop.f32.mrb[6].mxu0 }
 0x100   :  { %v448_v49 = vpop.f32.mrb[7].mxu0 }
 0x101   :  { %v351_v50 = vadd.f32 %v478_v34, %v446_v47  ;;  %v449_v51 = vadd.f32 %v448_v49, %v447_v48 }
 0x103   :  { %v381_v52 = vadd.f32 %v421_v37, %v351_v50  ;;  %v354_v53 = vadd.f32 %v479_v40, %v449_v51 }
 0x105   :  { %385 = vst [vmem:[%s640_s3 + $0x10] sm:$0xff] %v381_v52  ;;  %v382_v54 = vadd.f32 %v421_v37, %v354_v53 }
 0x107   :  { %386 = vst [vmem:[%s640_s3 + $0x18] sm:$0xff] %v382_v54 }

// kernel: generator_forward.87
= control target key start
LH: loop header
LB: loop body
LE: loop exit
PB: predicated region body
PF: predicated region fallthrough
CT: control target
= control target key end

     0   :  { %s1141_s1 = inlined_call_operand.vmem [shape: bf16[384,128], index: 1, kind: input, shape index: {}]   ;;  %s1142_s0 = inlined_call_operand.vmem [shape: bf16[128,384], index: 0, kind: input, shape index: {}]   ;;  %s1143_s2 = inlined_call_operand.vmem [shape: f32[1,128], index: 2, kind: input, shape index: {}]   ;;  %s1144_s3 = inlined_call_operand.vmem [shape: f32[128,128], index: 3, kind: output, shape index: {}]  }
   0x1   :  { %v852_v0 = vld [vmem:[%s1141_s1 + $0x40] sm:$0xff]   ;;  %v855_v3 = vld [vmem:[%s1141_s1 + $0x48] sm:$0xff]   ;;  %v858_v6 = vld [vmem:[%s1141_s1 + $0x50] sm:$0xff]  }
   0x2   :  { %v853_v1 = vld [vmem:[%s1141_s1] sm:$0xff]   ;;  %740 = vmatprep.subr.bf16.mxu0 %v852_v0  ;;  %v856_v4 = vld [vmem:[%s1141_s1 + $0x8] sm:$0xff]   ;;  %v859_v7 = vld [vmem:[%s1141_s1 + $0x10] sm:$0xff]  }
   0x3   :  { %v854_v2 = vld [vmem:[%s1141_s1 + $0x80] sm:$0xff]   ;;  %741 = vmatpush3.bf16.msra.mxu0 %v853_v1  ;;  %v857_v5 = vld [vmem:[%s1141_s1 + $0x88] sm:$0xff]   ;;  %v860_v8 = vld [vmem:[%s1141_s1 + $0x90] sm:$0xff]  }
   0x4   :  { %820 = vmatprep.subr.bf16.mxu1 %v854_v2  ;;  %742 = vmatprep.subr.bf16.mxu0 %v855_v3  ;;  %v861_v9 = vld [vmem:[%s1141_s1 + $0x58] sm:$0xff]   ;;  %v864_v12 = vld [vmem:[%s1141_s1 + $0x60] sm:$0xff]   ;;  %v867_v15 = vld [vmem:[%s1141_s1 + $0x68] sm:$0xff]  }
   0x5   :  { %821 = vmatpush3.bf16.msra.mxu1 %v854_v2  ;;  %v862_v10 = vld [vmem:[%s1141_s1 + $0x18] sm:$0xff]   ;;  %v866_v13 = vld [vmem:[%s1141_s1 + $0xa0] sm:$0xff]   ;;  %v869_v16 = vld [vmem:[%s1141_s1 + $0xa8] sm:$0xff]  }
   0x6   :  { %822 = vmatprep.subr.bf16.mxu1 %v857_v5  ;;  %v863_v11 = vld [vmem:[%s1141_s1 + $0x98] sm:$0xff]   ;;  %v865_v14 = vld [vmem:[%s1141_s1 + $0x20] sm:$0xff]   ;;  %v868_v17 = vld [vmem:[%s1141_s1 + $0x28] sm:$0xff]  }
   0x7   :  { %743 = vmatpush3.bf16.msra.mxu0 %v856_v4  ;;  %v870_v18 = vld [vmem:[%s1141_s1 + $0x70] sm:$0xff]   ;;  %v873_v21 = vld [vmem:[%s1141_s1 + $0x78] sm:$0xff]   ;;  %v876_v26 = vld [vmem:[%s1142_s0] ss:$12 sps:$4 sm:$0xff]  }
   0x8   :  { %744 = vmatprep.subr.bf16.mxu0 %v858_v6  ;;  %v871_v19 = vld [vmem:[%s1141_s1 + $0x30] sm:$0xff]   ;;  %v875_v22 = vld [vmem:[%s1141_s1 + $0xb8] sm:$0xff]   ;;  %v880_v28 = vld [vmem:[%s1142_s0 + $0x20] ss:$12 sps:$4 sm:$0xff]  }
   0x9   :  { %823 = vmatpush3.bf16.msra.mxu1 %v857_v5  ;;  %v872_v20 = vld [vmem:[%s1141_s1 + $0xb0] sm:$0xff]   ;;  %v874_v25 = vld [vmem:[%s1141_s1 + $0x38] sm:$0xff]   ;;  %v896_v36 = vld [vmem:[%s1142_s0 + $0x80] ss:$12 sps:$4 sm:$0xff]  }
   0xa   :  { %824 = vmatprep.subr.bf16.mxu1 %v860_v8  ;;  %v878_v23 = vld [vmem:[%s1142_s0 + $0x4] ss:$12 sps:$4 sm:$0xff]   ;;  %v879_v24 = vld [vmem:[%s1142_s0 + $0x8] ss:$12 sps:$4 sm:$0xff]   ;;  %v889_v35 = vld [vmem:[%s1142_s0 + $0x4c] ss:$12 sps:$4 sm:$0xff]  }
   0xb   :  { %745 = vmatpush3.bf16.msra.mxu0 %v859_v7  ;;  %435 = vmatprep.mubr.bf16.mxu0 %v878_v23  ;;  %v881_v27 = vld [vmem:[%s1142_s0 + $0x1c] ss:$12 sps:$4 sm:$0xff]   ;;  %v887_v29 = vld [vmem:[%s1142_s0 + $0x38] ss:$12 sps:$4 sm:$0xff]   ;;  %v884_v31 = vld [vmem:[%s1142_s0 + $0x34] ss:$12 sps:$4 sm:$0xff]  }
   0xc   :  { %746 = vmatprep.subr.bf16.mxu0 %v861_v9  ;;  %836 = vmatprep.mubr.bf16.mxu1 %v879_v24  ;;  %v883_v30 = vld [vmem:[%s1142_s0 + $0x18] ss:$12 sps:$4 sm:$0xff]   ;;  %v888_v32 = vld [vmem:[%s1142_s0 + $0x50] ss:$12 sps:$4 sm:$0xff]   ;;  %v895_v33 = vld [vmem:[%s1142_s0 + $0x68] ss:$12 sps:$4 sm:$0xff]  }
   0xd   :  { %825 = vmatpush3.bf16.msra.mxu1 %v860_v8  ;;  %v886_v34 = vld [vmem:[%s1142_s0 + $0x30] ss:$12 sps:$4 sm:$0xff]   ;;  %v903_v37 = vld [vmem:[%s1142_s0 + $0x98] ss:$12 sps:$4 sm:$0xff]   ;;  %v891_v38 = vld [vmem:[%s1142_s0 + $0x48] ss:$12 sps:$4 sm:$0xff]  }
   0xe   :  { %826 = vmatprep.subr.bf16.mxu1 %v863_v11  ;;  %v892_v39 = vld [vmem:[%s1142_s0 + $0x64] ss:$12 sps:$4 sm:$0xff]   ;;  %v894_v41 = vld [vmem:[%s1142_s0 + $0x60] ss:$12 sps:$4 sm:$0xff]   ;;  %v897_v42 = vld [vmem:[%s1142_s0 + $0x7c] ss:$12 sps:$4 sm:$0xff]  }
   0xf   :  { %747 = vmatpush3.bf16.msra.mxu0 %v862_v10  ;;  %v904_v40 = vld [vmem:[%s1142_s0 + $0xb0] ss:$12 sps:$4 sm:$0xff]   ;;  %v899_v43 = vld [vmem:[%s1142_s0 + $0x78] ss:$12 sps:$4 sm:$0xff]   ;;  %v900_v44 = vld [vmem:[%s1142_s0 + $0x94] ss:$12 sps:$4 sm:$0xff]  }
  0x10   :  { %748 = vmatprep.subr.bf16.mxu0 %v864_v12  ;;  %v902_v45 = vld [vmem:[%s1142_s0 + $0x90] ss:$12 sps:$4 sm:$0xff]   ;;  %v905_v46 = vld [vmem:[%s1142_s0 + $0xac] ss:$12 sps:$4 sm:$0xff]   ;;  %v907_v47 = vld [vmem:[%s1142_s0 + $0xa8] ss:$12 sps:$4 sm:$0xff]  }
  0x11   :  { %827 = vmatpush3.bf16.msra.mxu1 %v863_v11  ;;  %v1075_v55 = vld [vmem:[%s1143_s2] ss:$0 sm:$0xff] }
  0x12   :  { %828 = vmatprep.subr.bf16.mxu1 %v866_v13 }
  0x13   :  { %749 = vmatpush3.bf16.msra.mxu0 %v865_v14 }
  0x14   :  { %750 = vmatprep.subr.bf16.mxu0 %v867_v15 }
  0x15   :  { %829 = vmatpush3.bf16.msra.mxu1 %v866_v13 }
  0x16   :  { %830 = vmatprep.subr.bf16.mxu1 %v869_v16 }
  0x17   :  { %751 = vmatpush3.bf16.msra.mxu0 %v868_v17 }
  0x18   :  { %752 = vmatprep.subr.bf16.mxu0 %v870_v18 }
  0x19   :  { %831 = vmatpush3.bf16.msra.mxu1 %v869_v16 }
  0x1a   :  { %832 = vmatprep.subr.bf16.mxu1 %v872_v20 }
  0x1b   :  { %753 = vmatpush3.bf16.msra.mxu0 %v871_v19 }
  0x1c   :  { %754 = vmatprep.subr.bf16.mxu0 %v873_v21 }
  0x1d   :  { %833 = vmatpush3.bf16.msra.mxu1 %v872_v20 }
  0x1e   :  { %834 = vmatprep.subr.bf16.mxu1 %v875_v22 }
  0x1f   :  { %755 = vmatpush3.bf16.msra.mxu0 %v874_v25 }
  0x21   :  { %835 = vmatpush3.bf16.msra.mxu1 %v875_v22 }
  0x22   :  { %436 = vmatmul.mubr.bf16.vlgmr.msra.gmra.mrb[0].mxu0 %v876_v26 }
  0x23   :  { %443 = vmatprep.mubr.bf16.mxu0 %v881_v27 }
  0x24   :  { %837 = vmatmul.mubr.bf16.vlgmr.msra.gmra.mrb[0].mxu1 %v880_v28 }
  0x25   :  { %840 = vmatprep.mubr.bf16.mxu1 %v887_v29 }
  0x2a   :  { %444 = vmatmul.mubr.bf16.gmra.mrb[4].mxu0 %v883_v30 }
  0x2b   :  { %451 = vmatprep.mubr.bf16.mxu0 %v884_v31 }
  0x2c   :  { %841 = vmatmul.mubr.bf16.gmra.mrb[4].mxu1 %v888_v32 }
  0x2d   :  { %844 = vmatprep.mubr.bf16.mxu1 %v895_v33 }
  0x32   :  { %452 = vmatmul.mubr.bf16.gmra.mrb[8].mxu0 %v886_v34 }
  0x33   :  { %459 = vmatprep.mubr.bf16.mxu0 %v889_v35 }
  0x34   :  { %845 = vmatmul.mubr.bf16.gmra.mrb[8].mxu1 %v896_v36 }
  0x35   :  { %848 = vmatprep.mubr.bf16.mxu1 %v903_v37 }
  0x3a   :  { %460 = vmatmul.mubr.bf16.gmra.mrb[12].mxu0 %v891_v38 }
  0x3b   :  { %467 = vmatprep.mubr.bf16.mxu0 %v892_v39 }
  0x3c   :  { %849 = vmatmul.mubr.bf16.gmra.mrb[12].mxu1 %v904_v40 }
  0x42   :  { %468 = vmatmul.mubr.bf16.gmra.mrb[16].mxu0 %v894_v41 }
  0x43   :  { %475 = vmatprep.mubr.bf16.mxu0 %v897_v42 }
  0x4a   :  { %476 = vmatmul.mubr.bf16.gmra.mrb[20].mxu0 %v899_v43 }
  0x4b   :  { %483 = vmatprep.mubr.bf16.mxu0 %v900_v44 }
  0x52   :  { %484 = vmatmul.mubr.bf16.gmra.mrb[24].mxu0 %v902_v45 }
  0x53   :  { %491 = vmatprep.mubr.bf16.mxu0 %v905_v46 }
  0x5a   :  { %492 = vmatmul.mubr.bf16.gmra.mrb[28].mxu0 %v907_v47 }
  0xf5   :  { %v756_v48 = vpop.f32.mrb[0].mxu0 }
  0xf6   :  { %v757_v49 = vpop.f32.mrb[1].mxu0 }
  0xf7   :  { %v758_v50 = vadd.f32 %v757_v49, %v756_v48  ;;  %v759_v51 = vpop.f32.mrb[2].mxu0  ;;  %v838_v52 = vpop.f32.mrb[0].mxu1 }
  0xf8   :  { %v760_v53 = vpop.f32.mrb[3].mxu0  ;;  %v534_v54 = vpop.f32.mrb[1].mxu1 }
  0xf9   :  { %v761_v56 = vadd.f32 %v760_v53, %v759_v51  ;;  %v535_v57 = vadd.f32 %v758_v50, %v534_v54  ;;  %v839_v58 = vpop.f32.mrb[2].mxu1 }
  0xfa   :  { %v537_v59 = vpop.f32.mrb[3].mxu1 }
  0xfb   :  { %v655_v60 = vadd.f32 %v1075_v55, %v535_v57  ;;  %v538_v61 = vadd.f32 %v761_v56, %v537_v59 }
  0xfd   :  { %671 = vst [vmem:[%s1144_s3] sm:$0xff] %v655_v60  ;;  %v656_v62 = vadd.f32 %v1075_v55, %v538_v61  ;;  %v762_v63 = vpop.f32.mrb[4].mxu0 }
  0xfe   :  { %v763_v0 = vpop.f32.mrb[5].mxu0 }
  0xff   :  { %672 = vst [vmem:[%s1144_s3 + $0x8] sm:$0xff] %v656_v62  ;;  %v764_v1 = vadd.f32 %v763_v0, %v762_v63  ;;  %v765_v2 = vpop.f32.mrb[6].mxu0  ;;  %v842_v3 = vpop.f32.mrb[4].mxu1 }
 0x100   :  { %v766_v4 = vpop.f32.mrb[7].mxu0  ;;  %v550_v5 = vpop.f32.mrb[5].mxu1 }
 0x101   :  { %v543_v6 = vadd.f32 %v838_v52, %v764_v1  ;;  %v767_v7 = vadd.f32 %v766_v4, %v765_v2  ;;  %v843_v8 = vpop.f32.mrb[6].mxu1 }
 0x102   :  { %v553_v9 = vpop.f32.mrb[7].mxu1 }
 0x103   :  { %v657_v10 = vadd.f32 %v1075_v55, %v543_v6  ;;  %v546_v11 = vadd.f32 %v839_v58, %v767_v7 }
 0x105   :  { %673 = vst [vmem:[%s1144_s3 + $0x10] sm:$0xff] %v657_v10  ;;  %v658_v12 = vadd.f32 %v1075_v55, %v546_v11  ;;  %v768_v13 = vpop.f32.mrb[8].mxu0 }
 0x106   :  { %v769_v14 = vpop.f32.mrb[9].mxu0 }
 0x107   :  { %674 = vst [vmem:[%s1144_s3 + $0x18] sm:$0xff] %v658_v12  ;;  %v770_v15 = vadd.f32 %v769_v14, %v768_v13  ;;  %v771_v16 = vpop.f32.mrb[10].mxu0  ;;  %v846_v17 = vpop.f32.mrb[8].mxu1 }
 0x108   :  { %v772_v18 = vpop.f32.mrb[11].mxu0  ;;  %v566_v19 = vpop.f32.mrb[9].mxu1 }
 0x109   :  { %v773_v20 = vadd.f32 %v772_v18, %v771_v16  ;;  %v551_v21 = vadd.f32 %v770_v15, %v550_v5  ;;  %v847_v22 = vpop.f32.mrb[10].mxu1 }
 0x10a   :  { %v569_v23 = vpop.f32.mrb[11].mxu1 }
 0x10b   :  { %v659_v24 = vadd.f32 %v1075_v55, %v551_v21  ;;  %v554_v25 = vadd.f32 %v773_v20, %v553_v9 }
 0x10d   :  { %675 = vst [vmem:[%s1144_s3 + $0x20] sm:$0xff] %v659_v24  ;;  %v660_v26 = vadd.f32 %v1075_v55, %v554_v25  ;;  %v774_v27 = vpop.f32.mrb[12].mxu0 }
 0x10e   :  { %v775_v28 = vpop.f32.mrb[13].mxu0 }
 0x10f   :  { %676 = vst [vmem:[%s1144_s3 + $0x28] sm:$0xff] %v660_v26  ;;  %v776_v29 = vadd.f32 %v775_v28, %v774_v27  ;;  %v777_v30 = vpop.f32.mrb[14].mxu0  ;;  %v850_v31 = vpop.f32.mrb[12].mxu1 }
 0x110   :  { %v778_v32 = vpop.f32.mrb[15].mxu0  ;;  %v582_v33 = vpop.f32.mrb[13].mxu1 }
 0x111   :  { %v559_v34 = vadd.f32 %v842_v3, %v776_v29  ;;  %v779_v35 = vadd.f32 %v778_v32, %v777_v30  ;;  %v851_v36 = vpop.f32.mrb[14].mxu1 }
 0x112   :  { %v585_v37 = vpop.f32.mrb[15].mxu1 }
 0x113   :  { %v661_v38 = vadd.f32 %v1075_v55, %v559_v34  ;;  %v562_v39 = vadd.f32 %v843_v8, %v779_v35 }
 0x115   :  { %677 = vst [vmem:[%s1144_s3 + $0x30] sm:$0xff] %v661_v38  ;;  %v662_v40 = vadd.f32 %v1075_v55, %v562_v39  ;;  %v780_v41 = vpop.f32.mrb[16].mxu0 }
 0x116   :  { %v781_v42 = vpop.f32.mrb[17].mxu0 }
 0x117   :  { %678 = vst [vmem:[%s1144_s3 + $0x38] sm:$0xff] %v662_v40  ;;  %v782_v43 = vadd.f32 %v781_v42, %v780_v41  ;;  %v783_v44 = vpop.f32.mrb[18].mxu0 }
 0x118   :  { %v784_v45 = vpop.f32.mrb[19].mxu0 }
 0x119   :  { %v785_v46 = vadd.f32 %v784_v45, %v783_v44  ;;  %v567_v47 = vadd.f32 %v782_v43, %v566_v19 }
 0x11b   :  { %v663_v48 = vadd.f32 %v1075_v55, %v567_v47  ;;  %v570_v49 = vadd.f32 %v785_v46, %v569_v23 }
 0x11d   :  { %679 = vst [vmem:[%s1144_s3 + $0x40] sm:$0xff] %v663_v48  ;;  %v664_v50 = vadd.f32 %v1075_v55, %v570_v49  ;;  %v786_v51 = vpop.f32.mrb[20].mxu0 }
 0x11e   :  { %v787_v52 = vpop.f32.mrb[21].mxu0 }
 0x11f   :  { %680 = vst [vmem:[%s1144_s3 + $0x48] sm:$0xff] %v664_v50  ;;  %v788_v53 = vadd.f32 %v787_v52, %v786_v51  ;;  %v789_v54 = vpop.f32.mrb[22].mxu0 }
 0x120   :  { %v790_v56 = vpop.f32.mrb[23].mxu0 }
 0x121   :  { %v575_v57 = vadd.f32 %v846_v17, %v788_v53  ;;  %v791_v58 = vadd.f32 %v790_v56, %v789_v54 }
 0x123   :  { %v665_v59 = vadd.f32 %v1075_v55, %v575_v57  ;;  %v578_v60 = vadd.f32 %v847_v22, %v791_v58 }
 0x125   :  { %681 = vst [vmem:[%s1144_s3 + $0x50] sm:$0xff] %v665_v59  ;;  %v666_v61 = vadd.f32 %v1075_v55, %v578_v60  ;;  %v792_v62 = vpop.f32.mrb[24].mxu0 }
 0x126   :  { %v793_v63 = vpop.f32.mrb[25].mxu0 }
 0x127   :  { %682 = vst [vmem:[%s1144_s3 + $0x58] sm:$0xff] %v666_v61  ;;  %v794_v0 = vadd.f32 %v793_v63, %v792_v62  ;;  %v795_v1 = vpop.f32.mrb[26].mxu0 }
 0x128   :  { %v796_v2 = vpop.f32.mrb[27].mxu0 }
 0x129   :  { %v797_v3 = vadd.f32 %v796_v2, %v795_v1  ;;  %v583_v4 = vadd.f32 %v794_v0, %v582_v33 }
 0x12b   :  { %v667_v5 = vadd.f32 %v1075_v55, %v583_v4  ;;  %v586_v6 = vadd.f32 %v797_v3, %v585_v37 }
 0x12d   :  { %683 = vst [vmem:[%s1144_s3 + $0x60] sm:$0xff] %v667_v5  ;;  %v668_v7 = vadd.f32 %v1075_v55, %v586_v6  ;;  %v798_v8 = vpop.f32.mrb[28].mxu0 }
 0x12e   :  { %v799_v9 = vpop.f32.mrb[29].mxu0 }
 0x12f   :  { %684 = vst [vmem:[%s1144_s3 + $0x68] sm:$0xff] %v668_v7  ;;  %v800_v10 = vadd.f32 %v799_v9, %v798_v8  ;;  %v801_v11 = vpop.f32.mrb[30].mxu0 }
 0x130   :  { %v802_v12 = vpop.f32.mrb[31].mxu0 }
 0x131   :  { %v591_v13 = vadd.f32 %v850_v31, %v800_v10  ;;  %v803_v14 = vadd.f32 %v802_v12, %v801_v11 }
 0x133   :  { %v669_v15 = vadd.f32 %v1075_v55, %v591_v13  ;;  %v594_v16 = vadd.f32 %v851_v36, %v803_v14 }
 0x135   :  { %685 = vst [vmem:[%s1144_s3 + $0x70] sm:$0xff] %v669_v15  ;;  %v670_v17 = vadd.f32 %v1075_v55, %v594_v16 }
 0x137   :  { %686 = vst [vmem:[%s1144_s3 + $0x78] sm:$0xff] %v670_v17 }

// kernel: generator_forward.90
= control target key start
LH: loop header
LB: loop body
LE: loop exit
PB: predicated region body
PF: predicated region fallthrough
CT: control target
= control target key end

     0   :  { %s100_s0 = inlined_call_operand.vmem [shape: f32[16,256], index: 0, kind: input, shape index: {}]   ;;  %s101_s1 = inlined_call_operand.vmem [shape: f32[16,256], index: 1, kind: output, shape index: {}]  }
   0x1   :  { %v8_v0 = vld [vmem:[%s100_s0] sm:$0xff]  ;;  %v9_v1 = vld [vmem:[%s100_s0 + $0x8] sm:$0xff]  ;;  %v10_v2 = vld [vmem:[%s100_s0 + $0x10] sm:$0xff] }
   0x2   :  { %v12_v3 = vadd.f32 %v9_v1, %v8_v0  ;;  %v18_v4 = vmul.f32 %v8_v0, %v8_v0  ;;  %v19_v5 = vmul.f32 %v9_v1, %v9_v1  ;;  %v11_v6 = vld [vmem:[%s100_s0 + $0x18] sm:$0xff]  ;;  %v20_v7 = vmul.f32 %v10_v2, %v10_v2 }
   0x3   :  { %v21_v8 = vmul.f32 %v11_v6, %v11_v6  ;;  %v15_v10 = vadd.f32 %v11_v6, %v10_v2 }
   0x4   :  { %13 = vadd.xlane.f32.xlu0 %v12_v3  ;;  %v22_v9 = vadd.f32 %v19_v5, %v18_v4 }
   0x5   :  { %v25_v11 = vadd.f32 %v21_v8, %v20_v7 }
   0x6   :  { %23 = vadd.xlane.f32.xlu1 %v22_v9 }
   0x8   :  { %16 = vadd.xlane.f32.xlu0 %v15_v10 }
   0xa   :  { %26 = vadd.xlane.f32.xlu1 %v25_v11 }
  0x91   :  { %v14_v12 = vpop.xlane.xlu0 %13 }
  0x92   :  { %v28_v13 = vmul.f32 0.00390625, %v14_v12 }
  0x93   :  { %v24_v14 = vpop.xlane.xlu1 %23 }
  0x94   :  { %v30_v15 = vmul.f32 0.00390625, %v24_v14  ;;  %v32_v16 = vmul.f32 %v28_v13, %v28_v13  ;;  %v38_v28 = vsub.f32 %v8_v0, %v28_v13  ;;  %v39_v29 = vsub.f32 %v9_v1, %v28_v13 }
  0x95   :  { %v17_v17 = vpop.xlane.xlu0 %16 }
  0x96   :  { %v34_v18 = vsub.f32 %v30_v15, %v32_v16  ;;  %v29_v19 = vmul.f32 0.00390625, %v17_v17 }
  0x97   :  { %v27_v20 = vpop.xlane.xlu1 %26 }
  0x98   :  { %v36_v21 = vmax.f32 %v34_v18, 0.0  ;;  %v31_v22 = vmul.f32 0.00390625, %v27_v20  ;;  %v33_v23 = vmul.f32 %v29_v19, %v29_v19  ;;  %v40_v35 = vsub.f32 %v10_v2, %v29_v19 }
  0x99   :  { %v41_v36 = vsub.f32 %v11_v6, %v29_v19 }
  0x9a   :  { %v42_v24 = vadd.f32 1e-05, %v36_v21  ;;  %v35_v25 = vsub.f32 %v31_v22, %v33_v23 }
  0x9c   :  { %62 = vrsqrt.f32 %v42_v24  ;;  %v37_v26 = vmax.f32 %v35_v25, 0.0 }
  0x9e   :  { %v43_v27 = vadd.f32 1e-05, %v37_v26 }
  0xa0   :  { %64 = vrsqrt.f32 %v43_v27 }
  0xa6   :  { %v63_v30 = vpop.eup %62 }
  0xa7   :  { %v46_v31 = vmul.f32 %v63_v30, %v38_v28  ;;  %v47_v32 = vmul.f32 %v63_v30, %v39_v29 }
  0xa9   :  { %v50_v33 = vmax.f32 %v46_v31, 0.0  ;;  %v51_v34 = vmax.f32 %v47_v32, 0.0 }
  0xaa   :  { %v65_v37 = vpop.eup %64 }
  0xab   :  { %54 = vst [vmem:[%s101_s1] sm:$0xff] %v50_v33  ;;  %55 = vst [vmem:[%s101_s1 + $0x8] sm:$0xff] %v51_v34  ;;  %v48_v38 = vmul.f32 %v65_v37, %v40_v35  ;;  %v49_v39 = vmul.f32 %v65_v37, %v41_v36 }
  0xad   :  { %v52_v40 = vmax.f32 %v48_v38, 0.0  ;;  %v53_v41 = vmax.f32 %v49_v39, 0.0 }
  0xaf   :  { %56 = vst [vmem:[%s101_s1 + $0x10] sm:$0xff] %v52_v40  ;;  %57 = vst [vmem:[%s101_s1 + $0x18] sm:$0xff] %v53_v41 }

// kernel: generator_forward.89
= control target key start
LH: loop header
LB: loop body
LE: loop exit
PB: predicated region body
PF: predicated region fallthrough
CT: control target
= control target key end

     0   :  { %v1508_v0 = vmov 0   ;;  %s2062_s1 = inlined_call_operand.vmem [shape: bf16[256,128], index: 1, kind: input, shape index: {}]   ;;  %s2063_s0 = inlined_call_operand.vmem [shape: bf16[512,256], index: 0, kind: input, shape index: {}]   ;;  %s2064_s2 = inlined_call_operand.vmem [shape: f32[1,128], index: 2, kind: input, shape index: {}]   ;;  %s2065_s3 = inlined_call_operand.vmem [shape: f32[512,128], index: 3, kind: output, shape index: {}]  }
   0x1   :  { %659 = vmatprep.subr.bf16.mxu0 %v1508_v0  ;;  %1363 = vmatprep.subr.bf16.mxu1 %v1508_v0  ;;  %v1396_v1 = vld [vmem:[%s2062_s1] sm:$0xff]   ;;  %v1397_v2 = vld [vmem:[%s2062_s1 + $0x8] sm:$0xff]   ;;  %v1398_v3 = vld [vmem:[%s2062_s1 + $0x10] sm:$0xff]  }
   0x2   :  { %660 = vmatpush1.bf16.msra.mxu0 %v1396_v1  ;;  %1379 = vmatpush1.bf16.msra.mxu1 %v1396_v1  ;;  %v1399_v4 = vld [vmem:[%s2062_s1 + $0x18] sm:$0xff]   ;;  %v1400_v5 = vld [vmem:[%s2062_s1 + $0x20] sm:$0xff]   ;;  %v1401_v7 = vld [vmem:[%s2062_s1 + $0x28] sm:$0xff]  }
   0x3   :  { %661 = vmatprep.subr.bf16.mxu0 %v1508_v0  ;;  %1364 = vmatprep.subr.bf16.mxu1 %v1508_v0  ;;  %v1414_v6 = vld [vmem:[%s2063_s0 + $0x4] ss:$8 sps:$4 sm:$0xff]   ;;  %v1402_v9 = vld [vmem:[%s2062_s1 + $0x30] sm:$0xff]   ;;  %v1403_v10 = vld [vmem:[%s2062_s1 + $0x38] sm:$0xff]  }
   0x4   :  { %v1417_v8 = vld [vmem:[%s2063_s0 + $0x104] ss:$8 sps:$4 sm:$0xff]   ;;  %691 = vmatprep.mubr.bf16.mxu0 %v1414_v6  ;;  %v1406_v13 = vld [vmem:[%s2062_s1 + $0x50] sm:$0xff]   ;;  %v1407_v14 = vld [vmem:[%s2062_s1 + $0x58] sm:$0xff]  }
   0x5   :  { %819 = vmatprep.mubr.bf16.mxu1 %v1417_v8  ;;  %v1404_v11 = vld [vmem:[%s2062_s1 + $0x40] sm:$0xff]   ;;  %v1405_v12 = vld [vmem:[%s2062_s1 + $0x48] sm:$0xff]   ;;  %v1410_v17 = vld [vmem:[%s2062_s1 + $0x70] sm:$0xff]  }
   0x6   :  { %662 = vmatpush1.bf16.msra.mxu0 %v1397_v2  ;;  %1380 = vmatpush1.bf16.msra.mxu1 %v1397_v2  ;;  %v1408_v15 = vld [vmem:[%s2062_s1 + $0x60] sm:$0xff]   ;;  %v1409_v16 = vld [vmem:[%s2062_s1 + $0x68] sm:$0xff]   ;;  %v1411_v18 = vld [vmem:[%s2062_s1 + $0x78] sm:$0xff]  }
   0x7   :  { %663 = vmatprep.subr.bf16.mxu0 %v1508_v0  ;;  %1365 = vmatprep.subr.bf16.mxu1 %v1508_v0  ;;  %v1412_v19 = vld [vmem:[%s2063_s0] ss:$8 sps:$4 sm:$0xff]   ;;  %v1418_v21 = vld [vmem:[%s2063_s0 + $0x14] ss:$8 sps:$4 sm:$0xff]   ;;  %v1422_v23 = vld [vmem:[%s2063_s0 + $0x10] ss:$8 sps:$4 sm:$0xff]  }
   0x8   :  { %v1415_v20 = vld [vmem:[%s2063_s0 + $0x100] ss:$8 sps:$4 sm:$0xff]   ;;  %v1420_v22 = vld [vmem:[%s2063_s0 + $0x114] ss:$8 sps:$4 sm:$0xff]   ;;  %v1423_v24 = vld [vmem:[%s2063_s0 + $0x110] ss:$8 sps:$4 sm:$0xff]  }
   0x9   :  { %v1424_v25 = vld [vmem:[%s2063_s0 + $0x24] ss:$8 sps:$4 sm:$0xff]   ;;  %v1428_v27 = vld [vmem:[%s2063_s0 + $0x20] ss:$8 sps:$4 sm:$0xff]   ;;  %v1430_v29 = vld [vmem:[%s2063_s0 + $0x34] ss:$8 sps:$4 sm:$0xff]  }
   0xa   :  { %664 = vmatpush1.bf16.msra.mxu0 %v1398_v3  ;;  %1381 = vmatpush1.bf16.msra.mxu1 %v1398_v3  ;;  %v1426_v26 = vld [vmem:[%s2063_s0 + $0x124] ss:$8 sps:$4 sm:$0xff]   ;;  %v1429_v28 = vld [vmem:[%s2063_s0 + $0x120] ss:$8 sps:$4 sm:$0xff]   ;;  %v1432_v30 = vld [vmem:[%s2063_s0 + $0x134] ss:$8 sps:$4 sm:$0xff]  }
   0xb   :  { %665 = vmatprep.subr.bf16.mxu0 %v1508_v0  ;;  %1366 = vmatprep.subr.bf16.mxu1 %v1508_v0  ;;  %v1434_v31 = vld [vmem:[%s2063_s0 + $0x30] ss:$8 sps:$4 sm:$0xff]   ;;  %v1436_v33 = vld [vmem:[%s2063_s0 + $0x44] ss:$8 sps:$4 sm:$0xff]   ;;  %v1440_v35 = vld [vmem:[%s2063_s0 + $0x40] ss:$8 sps:$4 sm:$0xff]  }
   0xc   :  { %v1435_v32 = vld [vmem:[%s2063_s0 + $0x130] ss:$8 sps:$4 sm:$0xff]   ;;  %v1438_v34 = vld [vmem:[%s2063_s0 + $0x144] ss:$8 sps:$4 sm:$0xff]   ;;  %v1441_v36 = vld [vmem:[%s2063_s0 + $0x140] ss:$8 sps:$4 sm:$0xff]  }
   0xd   :  { %v1442_v37 = vld [vmem:[%s2063_s0 + $0x54] ss:$8 sps:$4 sm:$0xff]   ;;  %v1446_v39 = vld [vmem:[%s2063_s0 + $0x50] ss:$8 sps:$4 sm:$0xff]   ;;  %v1448_v41 = vld [vmem:[%s2063_s0 + $0x64] ss:$8 sps:$4 sm:$0xff]  }
   0xe   :  { %666 = vmatpush1.bf16.msra.mxu0 %v1399_v4  ;;  %1382 = vmatpush1.bf16.msra.mxu1 %v1399_v4  ;;  %v1444_v38 = vld [vmem:[%s2063_s0 + $0x154] ss:$8 sps:$4 sm:$0xff]   ;;  %v1447_v40 = vld [vmem:[%s2063_s0 + $0x150] ss:$8 sps:$4 sm:$0xff]   ;;  %v1450_v42 = vld [vmem:[%s2063_s0 + $0x164] ss:$8 sps:$4 sm:$0xff]  }
   0xf   :  { %667 = vmatprep.subr.bf16.mxu0 %v1508_v0  ;;  %1367 = vmatprep.subr.bf16.mxu1 %v1508_v0  ;;  %v1452_v43 = vld [vmem:[%s2063_s0 + $0x60] ss:$8 sps:$4 sm:$0xff]   ;;  %v1454_v45 = vld [vmem:[%s2063_s0 + $0x74] ss:$8 sps:$4 sm:$0xff]   ;;  %v1458_v47 = vld [vmem:[%s2063_s0 + $0x70] ss:$8 sps:$4 sm:$0xff]  }
  0x10   :  { %v1453_v44 = vld [vmem:[%s2063_s0 + $0x160] ss:$8 sps:$4 sm:$0xff]   ;;  %v1456_v46 = vld [vmem:[%s2063_s0 + $0x174] ss:$8 sps:$4 sm:$0xff]   ;;  %v1459_v48 = vld [vmem:[%s2063_s0 + $0x170] ss:$8 sps:$4 sm:$0xff]  }
  0x11   :  { %v1460_v49 = vld [vmem:[%s2063_s0 + $0x84] ss:$8 sps:$4 sm:$0xff]   ;;  %v1464_v51 = vld [vmem:[%s2063_s0 + $0x80] ss:$8 sps:$4 sm:$0xff]   ;;  %v1466_v53 = vld [vmem:[%s2063_s0 + $0x94] ss:$8 sps:$4 sm:$0xff]  }
  0x12   :  { %668 = vmatpush1.bf16.msra.mxu0 %v1400_v5  ;;  %1383 = vmatpush1.bf16.msra.mxu1 %v1400_v5  ;;  %v1462_v50 = vld [vmem:[%s2063_s0 + $0x184] ss:$8 sps:$4 sm:$0xff]   ;;  %v1465_v52 = vld [vmem:[%s2063_s0 + $0x180] ss:$8 sps:$4 sm:$0xff]   ;;  %v1468_v54 = vld [vmem:[%s2063_s0 + $0x194] ss:$8 sps:$4 sm:$0xff]  }
  0x13   :  { %669 = vmatprep.subr.bf16.mxu0 %v1508_v0  ;;  %1368 = vmatprep.subr.bf16.mxu1 %v1508_v0  ;;  %v1470_v55 = vld [vmem:[%s2063_s0 + $0x90] ss:$8 sps:$4 sm:$0xff]   ;;  %v1472_v57 = vld [vmem:[%s2063_s0 + $0xa4] ss:$8 sps:$4 sm:$0xff]   ;;  %v1476_v59 = vld [vmem:[%s2063_s0 + $0xa0] ss:$8 sps:$4 sm:$0xff]  }
  0x14   :  { %v1471_v56 = vld [vmem:[%s2063_s0 + $0x190] ss:$8 sps:$4 sm:$0xff]   ;;  %v1474_v58 = vld [vmem:[%s2063_s0 + $0x1a4] ss:$8 sps:$4 sm:$0xff]   ;;  %v1477_v60 = vld [vmem:[%s2063_s0 + $0x1a0] ss:$8 sps:$4 sm:$0xff]  }
  0x15   :  { %v1478_v61 = vld [vmem:[%s2063_s0 + $0xb4] ss:$8 sps:$4 sm:$0xff]   ;;  %v1482_v63 = vld [vmem:[%s2063_s0 + $0xb0] ss:$8 sps:$4 sm:$0xff]   ;;  %v1484_v1 = vld [vmem:[%s2063_s0 + $0xc4] ss:$8 sps:$4 sm:$0xff]  }
  0x16   :  { %670 = vmatpush1.bf16.msra.mxu0 %v1401_v7  ;;  %1384 = vmatpush1.bf16.msra.mxu1 %v1401_v7  ;;  %v1480_v62 = vld [vmem:[%s2063_s0 + $0x1b4] ss:$8 sps:$4 sm:$0xff]   ;;  %v1486_v2 = vld [vmem:[%s2063_s0 + $0x1c4] ss:$8 sps:$4 sm:$0xff]   ;;  %v1488_v3 = vld [vmem:[%s2063_s0 + $0xc0] ss:$8 sps:$4 sm:$0xff]  }
  0x17   :  { %671 = vmatprep.subr.bf16.mxu0 %v1508_v0  ;;  %1369 = vmatprep.subr.bf16.mxu1 %v1508_v0  ;;  %v1489_v4 = vld [vmem:[%s2063_s0 + $0x1c0] ss:$8 sps:$4 sm:$0xff]   ;;  %v1490_v5 = vld [vmem:[%s2063_s0 + $0xd4] ss:$8 sps:$4 sm:$0xff]   ;;  %v1494_v7 = vld [vmem:[%s2063_s0 + $0xd0] ss:$8 sps:$4 sm:$0xff]  }
  0x18   :  { %v1492_v6 = vld [vmem:[%s2063_s0 + $0x1d4] ss:$8 sps:$4 sm:$0xff]   ;;  %v1495_v8 = vld [vmem:[%s2063_s0 + $0x1d0] ss:$8 sps:$4 sm:$0xff]  }
  0x1a   :  { %672 = vmatpush1.bf16.msra.mxu0 %v1402_v9  ;;  %1385 = vmatpush1.bf16.msra.mxu1 %v1402_v9  ;;  %v1496_v9 = vld [vmem:[%s2063_s0 + $0xe4] ss:$8 sps:$4 sm:$0xff]  }
  0x1b   :  { %673 = vmatprep.subr.bf16.mxu0 %v1508_v0  ;;  %1370 = vmatprep.subr.bf16.mxu1 %v1508_v0 }
  0x1e   :  { %674 = vmatpush1.bf16.msra.mxu0 %v1403_v10  ;;  %1386 = vmatpush1.bf16.msra.mxu1 %v1403_v10  ;;  %v1498_v10 = vld [vmem:[%s2063_s0 + $0x1e4] ss:$8 sps:$4 sm:$0xff]  }
  0x1f   :  { %675 = vmatprep.subr.bf16.mxu0 %v1508_v0  ;;  %1371 = vmatprep.subr.bf16.mxu1 %v1508_v0 }
  0x22   :  { %676 = vmatpush1.bf16.msra.mxu0 %v1404_v11  ;;  %1387 = vmatpush1.bf16.msra.mxu1 %v1404_v11  ;;  %v1500_v11 = vld [vmem:[%s2063_s0 + $0xe0] ss:$8 sps:$4 sm:$0xff]  }
  0x23   :  { %677 = vmatprep.subr.bf16.mxu0 %v1508_v0  ;;  %1372 = vmatprep.subr.bf16.mxu1 %v1508_v0 }
  0x26   :  { %678 = vmatpush1.bf16.msra.mxu0 %v1405_v12  ;;  %1388 = vmatpush1.bf16.msra.mxu1 %v1405_v12  ;;  %v1501_v12 = vld [vmem:[%s2063_s0 + $0x1e0] ss:$8 sps:$4 sm:$0xff]  }
  0x27   :  { %679 = vmatprep.subr.bf16.mxu0 %v1508_v0  ;;  %1373 = vmatprep.subr.bf16.mxu1 %v1508_v0 }
  0x2a   :  { %680 = vmatpush1.bf16.msra.mxu0 %v1406_v13  ;;  %1389 = vmatpush1.bf16.msra.mxu1 %v1406_v13  ;;  %v1502_v13 = vld [vmem:[%s2063_s0 + $0xf4] ss:$8 sps:$4 sm:$0xff]  }
  0x2b   :  { %681 = vmatprep.subr.bf16.mxu0 %v1508_v0  ;;  %1374 = vmatprep.subr.bf16.mxu1 %v1508_v0 }
  0x2e   :  { %682 = vmatpush1.bf16.msra.mxu0 %v1407_v14  ;;  %1390 = vmatpush1.bf16.msra.mxu1 %v1407_v14  ;;  %v1504_v14 = vld [vmem:[%s2063_s0 + $0x1f4] ss:$8 sps:$4 sm:$0xff]  }
  0x2f   :  { %683 = vmatprep.subr.bf16.mxu0 %v1508_v0  ;;  %1375 = vmatprep.subr.bf16.mxu1 %v1508_v0 }
  0x32   :  { %684 = vmatpush1.bf16.msra.mxu0 %v1408_v15  ;;  %1391 = vmatpush1.bf16.msra.mxu1 %v1408_v15  ;;  %v1506_v15 = vld [vmem:[%s2063_s0 + $0xf0] ss:$8 sps:$4 sm:$0xff]  }
  0x33   :  { %685 = vmatprep.subr.bf16.mxu0 %v1508_v0  ;;  %1376 = vmatprep.subr.bf16.mxu1 %v1508_v0 }
  0x36   :  { %686 = vmatpush1.bf16.msra.mxu0 %v1409_v16  ;;  %1392 = vmatpush1.bf16.msra.mxu1 %v1409_v16  ;;  %v1507_v16 = vld [vmem:[%s2063_s0 + $0x1f0] ss:$8 sps:$4 sm:$0xff]  }
  0x37   :  { %687 = vmatprep.subr.bf16.mxu0 %v1508_v0  ;;  %1377 = vmatprep.subr.bf16.mxu1 %v1508_v0 }
  0x3a   :  { %688 = vmatpush1.bf16.msra.mxu0 %v1410_v17  ;;  %1393 = vmatpush1.bf16.msra.mxu1 %v1410_v17  ;;  %v1804_v17 = vld [vmem:[%s2064_s2] ss:$0 sm:$0xff] }
  0x3b   :  { %689 = vmatprep.subr.bf16.mxu0 %v1508_v0  ;;  %1378 = vmatprep.subr.bf16.mxu1 %v1508_v0  ;;  %v1483_v0 = vld [vmem:[%s2063_s0 + $0x1b0] ss:$8 sps:$4 sm:$0xff]  }
  0x3e   :  { %690 = vmatpush1.bf16.msra.mxu0 %v1411_v18  ;;  %1394 = vmatpush1.bf16.msra.mxu1 %v1411_v18 }
  0x41   :  { %692 = vmatmul.mubr.bf16.vlgmr.msra.gmra.mrb[0].mxu0 %v1412_v19  ;;  %820 = vmatmul.mubr.bf16.vlgmr.msra.gmra.mrb[0].mxu1 %v1415_v20 }
  0x42   :  { %699 = vmatprep.mubr.bf16.mxu0 %v1418_v21  ;;  %827 = vmatprep.mubr.bf16.mxu1 %v1420_v22 }
  0x49   :  { %700 = vmatmul.mubr.bf16.gmra.mrb[4].mxu0 %v1422_v23  ;;  %828 = vmatmul.mubr.bf16.gmra.mrb[4].mxu1 %v1423_v24 }
  0x4a   :  { %707 = vmatprep.mubr.bf16.mxu0 %v1424_v25  ;;  %835 = vmatprep.mubr.bf16.mxu1 %v1426_v26 }
  0x51   :  { %708 = vmatmul.mubr.bf16.gmra.mrb[8].mxu0 %v1428_v27  ;;  %836 = vmatmul.mubr.bf16.gmra.mrb[8].mxu1 %v1429_v28 }
  0x52   :  { %715 = vmatprep.mubr.bf16.mxu0 %v1430_v29  ;;  %843 = vmatprep.mubr.bf16.mxu1 %v1432_v30 }
  0x59   :  { %716 = vmatmul.mubr.bf16.gmra.mrb[12].mxu0 %v1434_v31  ;;  %844 = vmatmul.mubr.bf16.gmra.mrb[12].mxu1 %v1435_v32 }
  0x5a   :  { %723 = vmatprep.mubr.bf16.mxu0 %v1436_v33  ;;  %851 = vmatprep.mubr.bf16.mxu1 %v1438_v34 }
  0x61   :  { %724 = vmatmul.mubr.bf16.gmra.mrb[16].mxu0 %v1440_v35  ;;  %852 = vmatmul.mubr.bf16.gmra.mrb[16].mxu1 %v1441_v36 }
  0x62   :  { %731 = vmatprep.mubr.bf16.mxu0 %v1442_v37  ;;  %859 = vmatprep.mubr.bf16.mxu1 %v1444_v38 }
  0x69   :  { %732 = vmatmul.mubr.bf16.gmra.mrb[20].mxu0 %v1446_v39  ;;  %860 = vmatmul.mubr.bf16.gmra.mrb[20].mxu1 %v1447_v40 }
  0x6a   :  { %739 = vmatprep.mubr.bf16.mxu0 %v1448_v41  ;;  %867 = vmatprep.mubr.bf16.mxu1 %v1450_v42 }
  0x71   :  { %740 = vmatmul.mubr.bf16.gmra.mrb[24].mxu0 %v1452_v43  ;;  %868 = vmatmul.mubr.bf16.gmra.mrb[24].mxu1 %v1453_v44 }
  0x72   :  { %747 = vmatprep.mubr.bf16.mxu0 %v1454_v45  ;;  %875 = vmatprep.mubr.bf16.mxu1 %v1456_v46 }
  0x79   :  { %748 = vmatmul.mubr.bf16.gmra.mrb[28].mxu0 %v1458_v47  ;;  %876 = vmatmul.mubr.bf16.gmra.mrb[28].mxu1 %v1459_v48 }
  0x7a   :  { %755 = vmatprep.mubr.bf16.mxu0 %v1460_v49  ;;  %883 = vmatprep.mubr.bf16.mxu1 %v1462_v50 }
  0x81   :  { %756 = vmatmul.mubr.bf16.gmra.mrb[32].mxu0 %v1464_v51  ;;  %884 = vmatmul.mubr.bf16.gmra.mrb[32].mxu1 %v1465_v52 }
  0x82   :  { %763 = vmatprep.mubr.bf16.mxu0 %v1466_v53  ;;  %891 = vmatprep.mubr.bf16.mxu1 %v1468_v54 }
  0x89   :  { %764 = vmatmul.mubr.bf16.gmra.mrb[36].mxu0 %v1470_v55  ;;  %892 = vmatmul.mubr.bf16.gmra.mrb[36].mxu1 %v1471_v56 }
  0x8a   :  { %771 = vmatprep.mubr.bf16.mxu0 %v1472_v57  ;;  %899 = vmatprep.mubr.bf16.mxu1 %v1474_v58 }
  0x91   :  { %772 = vmatmul.mubr.bf16.gmra.mrb[40].mxu0 %v1476_v59  ;;  %900 = vmatmul.mubr.bf16.gmra.mrb[40].mxu1 %v1477_v60 }
  0x92   :  { %779 = vmatprep.mubr.bf16.mxu0 %v1478_v61  ;;  %907 = vmatprep.mubr.bf16.mxu1 %v1480_v62 }
  0x99   :  { %780 = vmatmul.mubr.bf16.gmra.mrb[44].mxu0 %v1482_v63  ;;  %908 = vmatmul.mubr.bf16.gmra.mrb[44].mxu1 %v1483_v0 }
  0x9a   :  { %787 = vmatprep.mubr.bf16.mxu0 %v1484_v1  ;;  %915 = vmatprep.mubr.bf16.mxu1 %v1486_v2 }
  0xa1   :  { %788 = vmatmul.mubr.bf16.gmra.mrb[48].mxu0 %v1488_v3  ;;  %916 = vmatmul.mubr.bf16.gmra.mrb[48].mxu1 %v1489_v4 }
  0xa2   :  { %795 = vmatprep.mubr.bf16.mxu0 %v1490_v5  ;;  %923 = vmatprep.mubr.bf16.mxu1 %v1492_v6 }
  0xa9   :  { %796 = vmatmul.mubr.bf16.gmra.mrb[52].mxu0 %v1494_v7  ;;  %924 = vmatmul.mubr.bf16.gmra.mrb[52].mxu1 %v1495_v8 }
  0xaa   :  { %803 = vmatprep.mubr.bf16.mxu0 %v1496_v9  ;;  %931 = vmatprep.mubr.bf16.mxu1 %v1498_v10 }
  0xb1   :  { %804 = vmatmul.mubr.bf16.gmra.mrb[56].mxu0 %v1500_v11  ;;  %932 = vmatmul.mubr.bf16.gmra.mrb[56].mxu1 %v1501_v12 }
  0xb2   :  { %811 = vmatprep.mubr.bf16.mxu0 %v1502_v13  ;;  %939 = vmatprep.mubr.bf16.mxu1 %v1504_v14 }
  0xb9   :  { %812 = vmatmul.mubr.bf16.gmra.mrb[60].mxu0 %v1506_v15  ;;  %940 = vmatmul.mubr.bf16.gmra.mrb[60].mxu1 %v1507_v16 }
 0x114   :  { %v693_v18 = vpop.f32.mrb[0].mxu0  ;;  %v821_v19 = vpop.f32.mrb[0].mxu1 }
 0x115   :  { %v1150_v20 = vadd.f32 %v1804_v17, %v693_v18  ;;  %v1182_v21 = vadd.f32 %v1804_v17, %v821_v19  ;;  %v695_v22 = vpop.f32.mrb[1].mxu0  ;;  %v823_v23 = vpop.f32.mrb[1].mxu1 }
 0x116   :  { %v696_v24 = vpop.f32.mrb[2].mxu0  ;;  %v824_v25 = vpop.f32.mrb[2].mxu1 }
 0x117   :  { %1214 = vst [vmem:[%s2065_s3] sm:$0xff] %v1150_v20  ;;  %1246 = vst [vmem:[%s2065_s3 + $0x100] sm:$0xff] %v1182_v21  ;;  %v1151_v26 = vadd.f32 %v1804_v17, %v696_v24  ;;  %v1183_v27 = vadd.f32 %v1804_v17, %v824_v25  ;;  %v698_v28 = vpop.f32.mrb[3].mxu0  ;;  %v826_v29 = vpop.f32.mrb[3].mxu1 }
 0x119   :  { %1215 = vst [vmem:[%s2065_s3 + $0x8] sm:$0xff] %v1151_v26  ;;  %1247 = vst [vmem:[%s2065_s3 + $0x108] sm:$0xff] %v1183_v27 }
 0x11c   :  { %v701_v30 = vpop.f32.mrb[4].mxu0  ;;  %v829_v31 = vpop.f32.mrb[4].mxu1 }
 0x11d   :  { %v1152_v32 = vadd.f32 %v1804_v17, %v701_v30  ;;  %v1184_v33 = vadd.f32 %v1804_v17, %v829_v31  ;;  %v703_v34 = vpop.f32.mrb[5].mxu0  ;;  %v831_v35 = vpop.f32.mrb[5].mxu1 }
 0x11e   :  { %v704_v36 = vpop.f32.mrb[6].mxu0  ;;  %v832_v37 = vpop.f32.mrb[6].mxu1 }
 0x11f   :  { %1216 = vst [vmem:[%s2065_s3 + $0x10] sm:$0xff] %v1152_v32  ;;  %1248 = vst [vmem:[%s2065_s3 + $0x110] sm:$0xff] %v1184_v33  ;;  %v1153_v38 = vadd.f32 %v1804_v17, %v704_v36  ;;  %v1185_v39 = vadd.f32 %v1804_v17, %v832_v37  ;;  %v706_v40 = vpop.f32.mrb[7].mxu0  ;;  %v834_v41 = vpop.f32.mrb[7].mxu1 }
 0x121   :  { %1217 = vst [vmem:[%s2065_s3 + $0x18] sm:$0xff] %v1153_v38  ;;  %1249 = vst [vmem:[%s2065_s3 + $0x118] sm:$0xff] %v1185_v39 }
 0x124   :  { %v709_v42 = vpop.f32.mrb[8].mxu0  ;;  %v837_v43 = vpop.f32.mrb[8].mxu1 }
 0x125   :  { %v1154_v44 = vadd.f32 %v1804_v17, %v709_v42  ;;  %v1186_v45 = vadd.f32 %v1804_v17, %v837_v43  ;;  %v711_v46 = vpop.f32.mrb[9].mxu0  ;;  %v839_v47 = vpop.f32.mrb[9].mxu1 }
 0x126   :  { %v712_v48 = vpop.f32.mrb[10].mxu0  ;;  %v840_v49 = vpop.f32.mrb[10].mxu1 }
 0x127   :  { %1218 = vst [vmem:[%s2065_s3 + $0x20] sm:$0xff] %v1154_v44  ;;  %1250 = vst [vmem:[%s2065_s3 + $0x120] sm:$0xff] %v1186_v45  ;;  %v1155_v50 = vadd.f32 %v1804_v17, %v712_v48  ;;  %v1187_v51 = vadd.f32 %v1804_v17, %v840_v49  ;;  %v714_v52 = vpop.f32.mrb[11].mxu0  ;;  %v842_v53 = vpop.f32.mrb[11].mxu1 }
 0x129   :  { %1219 = vst [vmem:[%s2065_s3 + $0x28] sm:$0xff] %v1155_v50  ;;  %1251 = vst [vmem:[%s2065_s3 + $0x128] sm:$0xff] %v1187_v51 }
 0x12c   :  { %v717_v54 = vpop.f32.mrb[12].mxu0  ;;  %v845_v55 = vpop.f32.mrb[12].mxu1 }
 0x12d   :  { %v1156_v56 = vadd.f32 %v1804_v17, %v717_v54  ;;  %v1188_v57 = vadd.f32 %v1804_v17, %v845_v55  ;;  %v719_v58 = vpop.f32.mrb[13].mxu0  ;;  %v847_v59 = vpop.f32.mrb[13].mxu1 }
 0x12e   :  { %v720_v60 = vpop.f32.mrb[14].mxu0  ;;  %v848_v61 = vpop.f32.mrb[14].mxu1 }
 0x12f   :  { %1220 = vst [vmem:[%s2065_s3 + $0x30] sm:$0xff] %v1156_v56  ;;  %1252 = vst [vmem:[%s2065_s3 + $0x130] sm:$0xff] %v1188_v57  ;;  %v1157_v62 = vadd.f32 %v1804_v17, %v720_v60  ;;  %v1189_v63 = vadd.f32 %v1804_v17, %v848_v61  ;;  %v722_v0 = vpop.f32.mrb[15].mxu0  ;;  %v850_v1 = vpop.f32.mrb[15].mxu1 }
 0x131   :  { %1221 = vst [vmem:[%s2065_s3 + $0x38] sm:$0xff] %v1157_v62  ;;  %1253 = vst [vmem:[%s2065_s3 + $0x138] sm:$0xff] %v1189_v63 }
 0x134   :  { %v725_v2 = vpop.f32.mrb[16].mxu0  ;;  %v853_v3 = vpop.f32.mrb[16].mxu1 }
 0x135   :  { %v1158_v4 = vadd.f32 %v1804_v17, %v725_v2  ;;  %v1190_v5 = vadd.f32 %v1804_v17, %v853_v3  ;;  %v727_v6 = vpop.f32.mrb[17].mxu0  ;;  %v855_v7 = vpop.f32.mrb[17].mxu1 }
 0x136   :  { %v728_v8 = vpop.f32.mrb[18].mxu0  ;;  %v856_v9 = vpop.f32.mrb[18].mxu1 }
 0x137   :  { %1222 = vst [vmem:[%s2065_s3 + $0x40] sm:$0xff] %v1158_v4  ;;  %1254 = vst [vmem:[%s2065_s3 + $0x140] sm:$0xff] %v1190_v5  ;;  %v1159_v10 = vadd.f32 %v1804_v17, %v728_v8  ;;  %v1191_v11 = vadd.f32 %v1804_v17, %v856_v9  ;;  %v730_v12 = vpop.f32.mrb[19].mxu0  ;;  %v858_v13 = vpop.f32.mrb[19].mxu1 }
 0x139   :  { %1223 = vst [vmem:[%s2065_s3 + $0x48] sm:$0xff] %v1159_v10  ;;  %1255 = vst [vmem:[%s2065_s3 + $0x148] sm:$0xff] %v1191_v11 }
 0x13c   :  { %v733_v14 = vpop.f32.mrb[20].mxu0  ;;  %v861_v15 = vpop.f32.mrb[20].mxu1 }
 0x13d   :  { %v1160_v16 = vadd.f32 %v1804_v17, %v733_v14  ;;  %v1192_v18 = vadd.f32 %v1804_v17, %v861_v15  ;;  %v735_v19 = vpop.f32.mrb[21].mxu0  ;;  %v863_v20 = vpop.f32.mrb[21].mxu1 }
 0x13e   :  { %v736_v21 = vpop.f32.mrb[22].mxu0  ;;  %v864_v22 = vpop.f32.mrb[22].mxu1 }
 0x13f   :  { %1224 = vst [vmem:[%s2065_s3 + $0x50] sm:$0xff] %v1160_v16  ;;  %1256 = vst [vmem:[%s2065_s3 + $0x150] sm:$0xff] %v1192_v18  ;;  %v1161_v23 = vadd.f32 %v1804_v17, %v736_v21  ;;  %v1193_v24 = vadd.f32 %v1804_v17, %v864_v22  ;;  %v738_v25 = vpop.f32.mrb[23].mxu0  ;;  %v866_v26 = vpop.f32.mrb[23].mxu1 }
 0x141   :  { %1225 = vst [vmem:[%s2065_s3 + $0x58] sm:$0xff] %v1161_v23  ;;  %1257 = vst [vmem:[%s2065_s3 + $0x158] sm:$0xff] %v1193_v24 }
 0x144   :  { %v741_v27 = vpop.f32.mrb[24].mxu0  ;;  %v869_v28 = vpop.f32.mrb[24].mxu1 }
 0x145   :  { %v1162_v29 = vadd.f32 %v1804_v17, %v741_v27  ;;  %v1194_v30 = vadd.f32 %v1804_v17, %v869_v28  ;;  %v743_v31 = vpop.f32.mrb[25].mxu0  ;;  %v871_v32 = vpop.f32.mrb[25].mxu1 }
 0x146   :  { %v744_v33 = vpop.f32.mrb[26].mxu0  ;;  %v872_v34 = vpop.f32.mrb[26].mxu1 }
 0x147   :  { %1226 = vst [vmem:[%s2065_s3 + $0x60] sm:$0xff] %v1162_v29  ;;  %1258 = vst [vmem:[%s2065_s3 + $0x160] sm:$0xff] %v1194_v30  ;;  %v1163_v35 = vadd.f32 %v1804_v17, %v744_v33  ;;  %v1195_v36 = vadd.f32 %v1804_v17, %v872_v34  ;;  %v746_v37 = vpop.f32.mrb[27].mxu0  ;;  %v874_v38 = vpop.f32.mrb[27].mxu1 }
 0x149   :  { %1227 = vst [vmem:[%s2065_s3 + $0x68] sm:$0xff] %v1163_v35  ;;  %1259 = vst [vmem:[%s2065_s3 + $0x168] sm:$0xff] %v1195_v36 }
 0x14c   :  { %v749_v39 = vpop.f32.mrb[28].mxu0  ;;  %v877_v40 = vpop.f32.mrb[28].mxu1 }
 0x14d   :  { %v1164_v41 = vadd.f32 %v1804_v17, %v749_v39  ;;  %v1196_v42 = vadd.f32 %v1804_v17, %v877_v40  ;;  %v751_v43 = vpop.f32.mrb[29].mxu0  ;;  %v879_v44 = vpop.f32.mrb[29].mxu1 }
 0x14e   :  { %v752_v45 = vpop.f32.mrb[30].mxu0  ;;  %v880_v46 = vpop.f32.mrb[30].mxu1 }
 0x14f   :  { %1228 = vst [vmem:[%s2065_s3 + $0x70] sm:$0xff] %v1164_v41  ;;  %1260 = vst [vmem:[%s2065_s3 + $0x170] sm:$0xff] %v1196_v42  ;;  %v1165_v47 = vadd.f32 %v1804_v17, %v752_v45  ;;  %v1197_v48 = vadd.f32 %v1804_v17, %v880_v46  ;;  %v754_v49 = vpop.f32.mrb[31].mxu0  ;;  %v882_v50 = vpop.f32.mrb[31].mxu1 }
 0x151   :  { %1229 = vst [vmem:[%s2065_s3 + $0x78] sm:$0xff] %v1165_v47  ;;  %1261 = vst [vmem:[%s2065_s3 + $0x178] sm:$0xff] %v1197_v48 }
 0x154   :  { %v757_v51 = vpop.f32.mrb[32].mxu0  ;;  %v885_v52 = vpop.f32.mrb[32].mxu1 }
 0x155   :  { %v1166_v53 = vadd.f32 %v1804_v17, %v757_v51  ;;  %v1198_v54 = vadd.f32 %v1804_v17, %v885_v52  ;;  %v759_v55 = vpop.f32.mrb[33].mxu0  ;;  %v887_v56 = vpop.f32.mrb[33].mxu1 }
 0x156   :  { %v760_v57 = vpop.f32.mrb[34].mxu0  ;;  %v888_v58 = vpop.f32.mrb[34].mxu1 }
 0x157   :  { %1230 = vst [vmem:[%s2065_s3 + $0x80] sm:$0xff] %v1166_v53  ;;  %1262 = vst [vmem:[%s2065_s3 + $0x180] sm:$0xff] %v1198_v54  ;;  %v1167_v59 = vadd.f32 %v1804_v17, %v760_v57  ;;  %v1199_v60 = vadd.f32 %v1804_v17, %v888_v58  ;;  %v762_v61 = vpop.f32.mrb[35].mxu0  ;;  %v890_v62 = vpop.f32.mrb[35].mxu1 }
 0x159   :  { %1231 = vst [vmem:[%s2065_s3 + $0x88] sm:$0xff] %v1167_v59  ;;  %1263 = vst [vmem:[%s2065_s3 + $0x188] sm:$0xff] %v1199_v60 }
 0x15c   :  { %v765_v63 = vpop.f32.mrb[36].mxu0  ;;  %v893_v0 = vpop.f32.mrb[36].mxu1 }
 0x15d   :  { %v1168_v1 = vadd.f32 %v1804_v17, %v765_v63  ;;  %v1200_v2 = vadd.f32 %v1804_v17, %v893_v0  ;;  %v767_v3 = vpop.f32.mrb[37].mxu0  ;;  %v895_v4 = vpop.f32.mrb[37].mxu1 }
 0x15e   :  { %v768_v5 = vpop.f32.mrb[38].mxu0  ;;  %v896_v6 = vpop.f32.mrb[38].mxu1 }
 0x15f   :  { %1232 = vst [vmem:[%s2065_s3 + $0x90] sm:$0xff] %v1168_v1  ;;  %1264 = vst [vmem:[%s2065_s3 + $0x190] sm:$0xff] %v1200_v2  ;;  %v1169_v7 = vadd.f32 %v1804_v17, %v768_v5  ;;  %v1201_v8 = vadd.f32 %v1804_v17, %v896_v6  ;;  %v770_v9 = vpop.f32.mrb[39].mxu0  ;;  %v898_v10 = vpop.f32.mrb[39].mxu1 }
 0x161   :  { %1233 = vst [vmem:[%s2065_s3 + $0x98] sm:$0xff] %v1169_v7  ;;  %1265 = vst [vmem:[%s2065_s3 + $0x198] sm:$0xff] %v1201_v8 }
 0x164   :  { %v773_v11 = vpop.f32.mrb[40].mxu0  ;;  %v901_v12 = vpop.f32.mrb[40].mxu1 }
 0x165   :  { %v1170_v13 = vadd.f32 %v1804_v17, %v773_v11  ;;  %v1202_v14 = vadd.f32 %v1804_v17, %v901_v12  ;;  %v775_v15 = vpop.f32.mrb[41].mxu0  ;;  %v903_v16 = vpop.f32.mrb[41].mxu1 }
 0x166   :  { %v776_v18 = vpop.f32.mrb[42].mxu0  ;;  %v904_v19 = vpop.f32.mrb[42].mxu1 }
 0x167   :  { %1234 = vst [vmem:[%s2065_s3 + $0xa0] sm:$0xff] %v1170_v13  ;;  %1266 = vst [vmem:[%s2065_s3 + $0x1a0] sm:$0xff] %v1202_v14  ;;  %v1171_v20 = vadd.f32 %v1804_v17, %v776_v18  ;;  %v1203_v21 = vadd.f32 %v1804_v17, %v904_v19  ;;  %v778_v22 = vpop.f32.mrb[43].mxu0  ;;  %v906_v23 = vpop.f32.mrb[43].mxu1 }
 0x169   :  { %1235 = vst [vmem:[%s2065_s3 + $0xa8] sm:$0xff] %v1171_v20  ;;  %1267 = vst [vmem:[%s2065_s3 + $0x1a8] sm:$0xff] %v1203_v21 }
 0x16c   :  { %v781_v24 = vpop.f32.mrb[44].mxu0  ;;  %v909_v25 = vpop.f32.mrb[44].mxu1 }
 0x16d   :  { %v1172_v26 = vadd.f32 %v1804_v17, %v781_v24  ;;  %v1204_v27 = vadd.f32 %v1804_v17, %v909_v25  ;;  %v783_v28 = vpop.f32.mrb[45].mxu0  ;;  %v911_v29 = vpop.f32.mrb[45].mxu1 }
 0x16e   :  { %v784_v30 = vpop.f32.mrb[46].mxu0  ;;  %v912_v31 = vpop.f32.mrb[46].mxu1 }
 0x16f   :  { %1236 = vst [vmem:[%s2065_s3 + $0xb0] sm:$0xff] %v1172_v26  ;;  %1268 = vst [vmem:[%s2065_s3 + $0x1b0] sm:$0xff] %v1204_v27  ;;  %v1173_v32 = vadd.f32 %v1804_v17, %v784_v30  ;;  %v1205_v33 = vadd.f32 %v1804_v17, %v912_v31  ;;  %v786_v34 = vpop.f32.mrb[47].mxu0  ;;  %v914_v35 = vpop.f32.mrb[47].mxu1 }
 0x171   :  { %1237 = vst [vmem:[%s2065_s3 + $0xb8] sm:$0xff] %v1173_v32  ;;  %1269 = vst [vmem:[%s2065_s3 + $0x1b8] sm:$0xff] %v1205_v33 }
 0x174   :  { %v789_v36 = vpop.f32.mrb[48].mxu0  ;;  %v917_v37 = vpop.f32.mrb[48].mxu1 }
 0x175   :  { %v1174_v38 = vadd.f32 %v1804_v17, %v789_v36  ;;  %v1206_v39 = vadd.f32 %v1804_v17, %v917_v37  ;;  %v791_v40 = vpop.f32.mrb[49].mxu0  ;;  %v919_v41 = vpop.f32.mrb[49].mxu1 }
 0x176   :  { %v792_v42 = vpop.f32.mrb[50].mxu0  ;;  %v920_v43 = vpop.f32.mrb[50].mxu1 }
 0x177   :  { %1238 = vst [vmem:[%s2065_s3 + $0xc0] sm:$0xff] %v1174_v38  ;;  %1270 = vst [vmem:[%s2065_s3 + $0x1c0] sm:$0xff] %v1206_v39  ;;  %v1175_v44 = vadd.f32 %v1804_v17, %v792_v42  ;;  %v1207_v45 = vadd.f32 %v1804_v17, %v920_v43  ;;  %v794_v46 = vpop.f32.mrb[51].mxu0  ;;  %v922_v47 = vpop.f32.mrb[51].mxu1 }
 0x179   :  { %1239 = vst [vmem:[%s2065_s3 + $0xc8] sm:$0xff] %v1175_v44  ;;  %1271 = vst [vmem:[%s2065_s3 + $0x1c8] sm:$0xff] %v1207_v45 }
 0x17c   :  { %v797_v48 = vpop.f32.mrb[52].mxu0  ;;  %v925_v49 = vpop.f32.mrb[52].mxu1 }
 0x17d   :  { %v1176_v50 = vadd.f32 %v1804_v17, %v797_v48  ;;  %v1208_v51 = vadd.f32 %v1804_v17, %v925_v49  ;;  %v799_v52 = vpop.f32.mrb[53].mxu0  ;;  %v927_v53 = vpop.f32.mrb[53].mxu1 }
 0x17e   :  { %v800_v54 = vpop.f32.mrb[54].mxu0  ;;  %v928_v55 = vpop.f32.mrb[54].mxu1 }
 0x17f   :  { %1240 = vst [vmem:[%s2065_s3 + $0xd0] sm:$0xff] %v1176_v50  ;;  %1272 = vst [vmem:[%s2065_s3 + $0x1d0] sm:$0xff] %v1208_v51  ;;  %v1177_v56 = vadd.f32 %v1804_v17, %v800_v54  ;;  %v1209_v57 = vadd.f32 %v1804_v17, %v928_v55  ;;  %v802_v58 = vpop.f32.mrb[55].mxu0  ;;  %v930_v59 = vpop.f32.mrb[55].mxu1 }
 0x181   :  { %1241 = vst [vmem:[%s2065_s3 + $0xd8] sm:$0xff] %v1177_v56  ;;  %1273 = vst [vmem:[%s2065_s3 + $0x1d8] sm:$0xff] %v1209_v57 }
 0x184   :  { %v805_v60 = vpop.f32.mrb[56].mxu0  ;;  %v933_v61 = vpop.f32.mrb[56].mxu1 }
 0x185   :  { %v1178_v62 = vadd.f32 %v1804_v17, %v805_v60  ;;  %v1210_v63 = vadd.f32 %v1804_v17, %v933_v61  ;;  %v807_v0 = vpop.f32.mrb[57].mxu0  ;;  %v935_v1 = vpop.f32.mrb[57].mxu1 }
 0x186   :  { %v808_v2 = vpop.f32.mrb[58].mxu0  ;;  %v936_v3 = vpop.f32.mrb[58].mxu1 }
 0x187   :  { %1242 = vst [vmem:[%s2065_s3 + $0xe0] sm:$0xff] %v1178_v62  ;;  %1274 = vst [vmem:[%s2065_s3 + $0x1e0] sm:$0xff] %v1210_v63  ;;  %v1179_v4 = vadd.f32 %v1804_v17, %v808_v2  ;;  %v1211_v5 = vadd.f32 %v1804_v17, %v936_v3  ;;  %v810_v6 = vpop.f32.mrb[59].mxu0  ;;  %v938_v7 = vpop.f32.mrb[59].mxu1 }
 0x189   :  { %1243 = vst [vmem:[%s2065_s3 + $0xe8] sm:$0xff] %v1179_v4  ;;  %1275 = vst [vmem:[%s2065_s3 + $0x1e8] sm:$0xff] %v1211_v5 }
 0x18c   :  { %v813_v8 = vpop.f32.mrb[60].mxu0  ;;  %v941_v9 = vpop.f32.mrb[60].mxu1 }
 0x18d   :  { %v1180_v10 = vadd.f32 %v1804_v17, %v813_v8  ;;  %v1212_v11 = vadd.f32 %v1804_v17, %v941_v9  ;;  %v815_v12 = vpop.f32.mrb[61].mxu0  ;;  %v943_v13 = vpop.f32.mrb[61].mxu1 }
 0x18e   :  { %v816_v14 = vpop.f32.mrb[62].mxu0  ;;  %v944_v15 = vpop.f32.mrb[62].mxu1 }
 0x18f   :  { %1244 = vst [vmem:[%s2065_s3 + $0xf0] sm:$0xff] %v1180_v10  ;;  %1276 = vst [vmem:[%s2065_s3 + $0x1f0] sm:$0xff] %v1212_v11  ;;  %v1181_v16 = vadd.f32 %v1804_v17, %v816_v14  ;;  %v1213_v18 = vadd.f32 %v1804_v17, %v944_v15  ;;  %v818_v19 = vpop.f32.mrb[63].mxu0  ;;  %v946_v20 = vpop.f32.mrb[63].mxu1 }
 0x191   :  { %1245 = vst [vmem:[%s2065_s3 + $0xf8] sm:$0xff] %v1181_v16  ;;  %1277 = vst [vmem:[%s2065_s3 + $0x1f8] sm:$0xff] %v1213_v18 }

// kernel: generator_forward.91
= control target key start
LH: loop header
LB: loop body
LE: loop exit
PB: predicated region body
PF: predicated region fallthrough
CT: control target
= control target key end

     0   :  { %v2662_v0 = vmov 0   ;;  %s3461_s1 = inlined_call_operand.vmem [shape: bf16[512,128], index: 1, kind: input, shape index: {}]   ;;  %s3462_s0 = inlined_call_operand.vmem [shape: bf16[512,512], index: 0, kind: input, shape index: {}]   ;;  %s3463_s2 = inlined_call_operand.vmem [shape: f32[1,128], index: 2, kind: input, shape index: {}]   ;;  %s3464_s3 = inlined_call_operand.vmem [shape: f32[512,128], index: 3, kind: output, shape index: {}]  }
   0x1   :  { %1171 = vmatprep.subr.bf16.mxu0 %v2662_v0  ;;  %1460 = vmatprep.subr.bf16.mxu1 %v2662_v0  ;;  %v2309_v1 = vld [vmem:[%s3461_s1] sm:$0xff]   ;;  %v2311_v3 = vld [vmem:[%s3461_s1 + $0x8] sm:$0xff]   ;;  %v2313_v5 = vld [vmem:[%s3461_s1 + $0x10] sm:$0xff]  }
   0x2   :  { %v2310_v2 = vld [vmem:[%s3461_s1 + $0x80] sm:$0xff]   ;;  %1172 = vmatpush1.bf16.msra.mxu0 %v2309_v1  ;;  %v2312_v4 = vld [vmem:[%s3461_s1 + $0x88] sm:$0xff]   ;;  %v2314_v6 = vld [vmem:[%s3461_s1 + $0x90] sm:$0xff]  }
   0x3   :  { %1461 = vmatpush1.bf16.msra.mxu1 %v2310_v2  ;;  %1173 = vmatprep.subr.bf16.mxu0 %v2662_v0  ;;  %v2315_v7 = vld [vmem:[%s3461_s1 + $0x18] sm:$0xff]   ;;  %v2317_v9 = vld [vmem:[%s3461_s1 + $0x20] sm:$0xff]   ;;  %v2319_v11 = vld [vmem:[%s3461_s1 + $0x28] sm:$0xff]  }
   0x4   :  { %1462 = vmatprep.subr.bf16.mxu1 %v2662_v0  ;;  %v2316_v8 = vld [vmem:[%s3461_s1 + $0x98] sm:$0xff]   ;;  %v2318_v10 = vld [vmem:[%s3461_s1 + $0xa0] sm:$0xff]   ;;  %v2320_v12 = vld [vmem:[%s3461_s1 + $0xa8] sm:$0xff]  }
   0x5   :  { %v2321_v13 = vld [vmem:[%s3461_s1 + $0x30] sm:$0xff]   ;;  %v2323_v15 = vld [vmem:[%s3461_s1 + $0x38] sm:$0xff]   ;;  %v2325_v17 = vld [vmem:[%s3461_s1 + $0x40] sm:$0xff]  }
   0x6   :  { %1174 = vmatpush1.bf16.msra.mxu0 %v2311_v3  ;;  %v2322_v14 = vld [vmem:[%s3461_s1 + $0xb0] sm:$0xff]   ;;  %v2324_v16 = vld [vmem:[%s3461_s1 + $0xb8] sm:$0xff]   ;;  %v2326_v18 = vld [vmem:[%s3461_s1 + $0xc0] sm:$0xff]  }
   0x7   :  { %1463 = vmatpush1.bf16.msra.mxu1 %v2312_v4  ;;  %1175 = vmatprep.subr.bf16.mxu0 %v2662_v0  ;;  %v2343_v19 = vld [vmem:[%s3462_s0 + $0x4] ss:$16 sps:$4 sm:$0xff]   ;;  %v2327_v20 = vld [vmem:[%s3461_s1 + $0x48] sm:$0xff]   ;;  %v2331_v25 = vld [vmem:[%s3461_s1 + $0x58] sm:$0xff]  }
   0x8   :  { %1464 = vmatprep.subr.bf16.mxu1 %v2662_v0  ;;  %v2346_v21 = vld [vmem:[%s3462_s0 + $0xc] ss:$16 sps:$4 sm:$0xff]   ;;  %1203 = vmatprep.mubr.bf16.mxu0 %v2343_v19  ;;  %v2329_v23 = vld [vmem:[%s3461_s1 + $0x50] sm:$0xff]   ;;  %v2333_v27 = vld [vmem:[%s3461_s1 + $0x60] sm:$0xff]  }
   0x9   :  { %v2328_v22 = vld [vmem:[%s3461_s1 + $0xc8] sm:$0xff]   ;;  %1492 = vmatprep.mubr.bf16.mxu1 %v2346_v21  ;;  %v2330_v24 = vld [vmem:[%s3461_s1 + $0xd0] sm:$0xff]   ;;  %v2332_v26 = vld [vmem:[%s3461_s1 + $0xd8] sm:$0xff]  }
   0xa   :  { %1176 = vmatpush1.bf16.msra.mxu0 %v2313_v5  ;;  %v2334_v28 = vld [vmem:[%s3461_s1 + $0xe0] sm:$0xff]   ;;  %v2335_v29 = vld [vmem:[%s3461_s1 + $0x68] sm:$0xff]   ;;  %v2337_v31 = vld [vmem:[%s3461_s1 + $0x70] sm:$0xff]  }
   0xb   :  { %1465 = vmatpush1.bf16.msra.mxu1 %v2314_v6  ;;  %1177 = vmatprep.subr.bf16.mxu0 %v2662_v0  ;;  %v2336_v30 = vld [vmem:[%s3461_s1 + $0xe8] sm:$0xff]   ;;  %v2338_v32 = vld [vmem:[%s3461_s1 + $0xf0] sm:$0xff]   ;;  %v2339_v33 = vld [vmem:[%s3461_s1 + $0x78] sm:$0xff]  }
   0xc   :  { %1466 = vmatprep.subr.bf16.mxu1 %v2662_v0  ;;  %v2340_v34 = vld [vmem:[%s3461_s1 + $0xf8] sm:$0xff]   ;;  %v2341_v35 = vld [vmem:[%s3462_s0] ss:$16 sps:$4 sm:$0xff]   ;;  %v2347_v37 = vld [vmem:[%s3462_s0 + $0x24] ss:$16 sps:$4 sm:$0xff]  }
   0xd   :  { %v2344_v36 = vld [vmem:[%s3462_s0 + $0x8] ss:$16 sps:$4 sm:$0xff]   ;;  %v2349_v38 = vld [vmem:[%s3462_s0 + $0x2c] ss:$16 sps:$4 sm:$0xff]   ;;  %v2351_v39 = vld [vmem:[%s3462_s0 + $0x20] ss:$16 sps:$4 sm:$0xff]  }
   0xe   :  { %1178 = vmatpush1.bf16.msra.mxu0 %v2315_v7  ;;  %v2352_v40 = vld [vmem:[%s3462_s0 + $0x28] ss:$16 sps:$4 sm:$0xff]   ;;  %v2353_v41 = vld [vmem:[%s3462_s0 + $0x44] ss:$16 sps:$4 sm:$0xff]   ;;  %v2355_v42 = vld [vmem:[%s3462_s0 + $0x4c] ss:$16 sps:$4 sm:$0xff]  }
   0xf   :  { %1467 = vmatpush1.bf16.msra.mxu1 %v2316_v8  ;;  %1179 = vmatprep.subr.bf16.mxu0 %v2662_v0  ;;  %v2357_v43 = vld [vmem:[%s3462_s0 + $0x40] ss:$16 sps:$4 sm:$0xff]   ;;  %v2358_v44 = vld [vmem:[%s3462_s0 + $0x48] ss:$16 sps:$4 sm:$0xff]   ;;  %v2359_v45 = vld [vmem:[%s3462_s0 + $0x64] ss:$16 sps:$4 sm:$0xff]  }
  0x10   :  { %1468 = vmatprep.subr.bf16.mxu1 %v2662_v0  ;;  %v2361_v46 = vld [vmem:[%s3462_s0 + $0x6c] ss:$16 sps:$4 sm:$0xff]   ;;  %v2363_v47 = vld [vmem:[%s3462_s0 + $0x60] ss:$16 sps:$4 sm:$0xff]   ;;  %v2364_v48 = vld [vmem:[%s3462_s0 + $0x68] ss:$16 sps:$4 sm:$0xff]  }
  0x11   :  { %v2365_v49 = vld [vmem:[%s3462_s0 + $0x84] ss:$16 sps:$4 sm:$0xff]   ;;  %v2367_v50 = vld [vmem:[%s3462_s0 + $0x8c] ss:$16 sps:$4 sm:$0xff]   ;;  %v2369_v51 = vld [vmem:[%s3462_s0 + $0x80] ss:$16 sps:$4 sm:$0xff]  }
  0x12   :  { %1180 = vmatpush1.bf16.msra.mxu0 %v2317_v9  ;;  %v2370_v52 = vld [vmem:[%s3462_s0 + $0x88] ss:$16 sps:$4 sm:$0xff]   ;;  %v2371_v53 = vld [vmem:[%s3462_s0 + $0xa4] ss:$16 sps:$4 sm:$0xff]   ;;  %v2373_v54 = vld [vmem:[%s3462_s0 + $0xac] ss:$16 sps:$4 sm:$0xff]  }
  0x13   :  { %1469 = vmatpush1.bf16.msra.mxu1 %v2318_v10  ;;  %1181 = vmatprep.subr.bf16.mxu0 %v2662_v0  ;;  %v2375_v55 = vld [vmem:[%s3462_s0 + $0xa0] ss:$16 sps:$4 sm:$0xff]   ;;  %v2376_v56 = vld [vmem:[%s3462_s0 + $0xa8] ss:$16 sps:$4 sm:$0xff]   ;;  %v2377_v57 = vld [vmem:[%s3462_s0 + $0xc4] ss:$16 sps:$4 sm:$0xff]  }
  0x14   :  { %1470 = vmatprep.subr.bf16.mxu1 %v2662_v0  ;;  %v2379_v58 = vld [vmem:[%s3462_s0 + $0xcc] ss:$16 sps:$4 sm:$0xff]   ;;  %v2381_v59 = vld [vmem:[%s3462_s0 + $0xc0] ss:$16 sps:$4 sm:$0xff]   ;;  %v2382_v60 = vld [vmem:[%s3462_s0 + $0xc8] ss:$16 sps:$4 sm:$0xff]  }
  0x15   :  { %v2383_v61 = vld [vmem:[%s3462_s0 + $0xe4] ss:$16 sps:$4 sm:$0xff]   ;;  %v2385_v62 = vld [vmem:[%s3462_s0 + $0xec] ss:$16 sps:$4 sm:$0xff]   ;;  %v2387_v63 = vld [vmem:[%s3462_s0 + $0xe0] ss:$16 sps:$4 sm:$0xff]  }
  0x16   :  { %1182 = vmatpush1.bf16.msra.mxu0 %v2319_v11  ;;  %v2389_v1 = vld [vmem:[%s3462_s0 + $0x104] ss:$16 sps:$4 sm:$0xff]   ;;  %v2391_v2 = vld [vmem:[%s3462_s0 + $0x10c] ss:$16 sps:$4 sm:$0xff]   ;;  %v2393_v3 = vld [vmem:[%s3462_s0 + $0x100] ss:$16 sps:$4 sm:$0xff]  }
  0x17   :  { %1471 = vmatpush1.bf16.msra.mxu1 %v2320_v12  ;;  %1183 = vmatprep.subr.bf16.mxu0 %v2662_v0  ;;  %v2394_v4 = vld [vmem:[%s3462_s0 + $0x108] ss:$16 sps:$4 sm:$0xff]   ;;  %v2395_v5 = vld [vmem:[%s3462_s0 + $0x124] ss:$16 sps:$4 sm:$0xff]   ;;  %v2397_v6 = vld [vmem:[%s3462_s0 + $0x12c] ss:$16 sps:$4 sm:$0xff]  }
  0x18   :  { %1472 = vmatprep.subr.bf16.mxu1 %v2662_v0  ;;  %v2399_v7 = vld [vmem:[%s3462_s0 + $0x120] ss:$16 sps:$4 sm:$0xff]   ;;  %v2400_v8 = vld [vmem:[%s3462_s0 + $0x128] ss:$16 sps:$4 sm:$0xff]   ;;  %v2401_v9 = vld [vmem:[%s3462_s0 + $0x144] ss:$16 sps:$4 sm:$0xff]  }
  0x19   :  { %v2403_v10 = vld [vmem:[%s3462_s0 + $0x14c] ss:$16 sps:$4 sm:$0xff]   ;;  %v2405_v11 = vld [vmem:[%s3462_s0 + $0x140] ss:$16 sps:$4 sm:$0xff]   ;;  %v2406_v12 = vld [vmem:[%s3462_s0 + $0x148] ss:$16 sps:$4 sm:$0xff]  }
  0x1a   :  { %1184 = vmatpush1.bf16.msra.mxu0 %v2321_v13  ;;  %v2407_v13 = vld [vmem:[%s3462_s0 + $0x164] ss:$16 sps:$4 sm:$0xff]   ;;  %v2417_v19 = vld [vmem:[%s3462_s0 + $0x180] ss:$16 sps:$4 sm:$0xff]  }
  0x1b   :  { %1473 = vmatpush1.bf16.msra.mxu1 %v2322_v14  ;;  %1185 = vmatprep.subr.bf16.mxu0 %v2662_v0  ;;  %v2409_v14 = vld [vmem:[%s3462_s0 + $0x16c] ss:$16 sps:$4 sm:$0xff]   ;;  %v2419_v21 = vld [vmem:[%s3462_s0 + $0x1a4] ss:$16 sps:$4 sm:$0xff]  }
  0x1c   :  { %1474 = vmatprep.subr.bf16.mxu1 %v2662_v0 }
  0x1e   :  { %1186 = vmatpush1.bf16.msra.mxu0 %v2323_v15  ;;  %v2411_v15 = vld [vmem:[%s3462_s0 + $0x160] ss:$16 sps:$4 sm:$0xff]  }
  0x1f   :  { %1475 = vmatpush1.bf16.msra.mxu1 %v2324_v16  ;;  %1187 = vmatprep.subr.bf16.mxu0 %v2662_v0  ;;  %v2412_v16 = vld [vmem:[%s3462_s0 + $0x168] ss:$16 sps:$4 sm:$0xff]  }
  0x20   :  { %1476 = vmatprep.subr.bf16.mxu1 %v2662_v0 }
  0x22   :  { %1188 = vmatpush1.bf16.msra.mxu0 %v2325_v17  ;;  %v2413_v17 = vld [vmem:[%s3462_s0 + $0x184] ss:$16 sps:$4 sm:$0xff]  }
  0x23   :  { %1477 = vmatpush1.bf16.msra.mxu1 %v2326_v18  ;;  %1189 = vmatprep.subr.bf16.mxu0 %v2662_v0  ;;  %v2415_v18 = vld [vmem:[%s3462_s0 + $0x18c] ss:$16 sps:$4 sm:$0xff]  }
  0x24   :  { %1478 = vmatprep.subr.bf16.mxu1 %v2662_v0 }
  0x26   :  { %1190 = vmatpush1.bf16.msra.mxu0 %v2327_v20  ;;  %v2418_v20 = vld [vmem:[%s3462_s0 + $0x188] ss:$16 sps:$4 sm:$0xff]  }
  0x27   :  { %1479 = vmatpush1.bf16.msra.mxu1 %v2328_v22  ;;  %1191 = vmatprep.subr.bf16.mxu0 %v2662_v0  ;;  %v2421_v22 = vld [vmem:[%s3462_s0 + $0x1ac] ss:$16 sps:$4 sm:$0xff]  }
  0x28   :  { %1480 = vmatprep.subr.bf16.mxu1 %v2662_v0 }
  0x2a   :  { %1192 = vmatpush1.bf16.msra.mxu0 %v2329_v23  ;;  %v2423_v23 = vld [vmem:[%s3462_s0 + $0x1a0] ss:$16 sps:$4 sm:$0xff]  }
  0x2b   :  { %1481 = vmatpush1.bf16.msra.mxu1 %v2330_v24  ;;  %1193 = vmatprep.subr.bf16.mxu0 %v2662_v0  ;;  %v2424_v24 = vld [vmem:[%s3462_s0 + $0x1a8] ss:$16 sps:$4 sm:$0xff]  }
  0x2c   :  { %1482 = vmatprep.subr.bf16.mxu1 %v2662_v0 }
  0x2e   :  { %1194 = vmatpush1.bf16.msra.mxu0 %v2331_v25  ;;  %v2425_v25 = vld [vmem:[%s3462_s0 + $0x1c4] ss:$16 sps:$4 sm:$0xff]  }
  0x2f   :  { %1483 = vmatpush1.bf16.msra.mxu1 %v2332_v26  ;;  %1195 = vmatprep.subr.bf16.mxu0 %v2662_v0  ;;  %v2427_v26 = vld [vmem:[%s3462_s0 + $0x1cc] ss:$16 sps:$4 sm:$0xff]  }
  0x30   :  { %1484 = vmatprep.subr.bf16.mxu1 %v2662_v0 }
  0x32   :  { %1196 = vmatpush1.bf16.msra.mxu0 %v2333_v27  ;;  %v2429_v27 = vld [vmem:[%s3462_s0 + $0x1c0] ss:$16 sps:$4 sm:$0xff]  }
  0x33   :  { %1485 = vmatpush1.bf16.msra.mxu1 %v2334_v28  ;;  %1197 = vmatprep.subr.bf16.mxu0 %v2662_v0  ;;  %v2430_v28 = vld [vmem:[%s3462_s0 + $0x1c8] ss:$16 sps:$4 sm:$0xff]  }
  0x34   :  { %1486 = vmatprep.subr.bf16.mxu1 %v2662_v0 }
  0x36   :  { %1198 = vmatpush1.bf16.msra.mxu0 %v2335_v29  ;;  %v2431_v29 = vld [vmem:[%s3462_s0 + $0x1e4] ss:$16 sps:$4 sm:$0xff]  }
  0x37   :  { %1487 = vmatpush1.bf16.msra.mxu1 %v2336_v30  ;;  %1199 = vmatprep.subr.bf16.mxu0 %v2662_v0  ;;  %v2433_v30 = vld [vmem:[%s3462_s0 + $0x1ec] ss:$16 sps:$4 sm:$0xff]  }
  0x38   :  { %1488 = vmatprep.subr.bf16.mxu1 %v2662_v0 }
  0x3a   :  { %1200 = vmatpush1.bf16.msra.mxu0 %v2337_v31  ;;  %v2435_v31 = vld [vmem:[%s3462_s0 + $0x1e0] ss:$16 sps:$4 sm:$0xff]  }
  0x3b   :  { %1489 = vmatpush1.bf16.msra.mxu1 %v2338_v32  ;;  %1201 = vmatprep.subr.bf16.mxu0 %v2662_v0  ;;  %v2436_v32 = vld [vmem:[%s3462_s0 + $0x1e8] ss:$16 sps:$4 sm:$0xff]  }
  0x3c   :  { %1490 = vmatprep.subr.bf16.mxu1 %v2662_v0  ;;  %v2388_v0 = vld [vmem:[%s3462_s0 + $0xe8] ss:$16 sps:$4 sm:$0xff]  }
  0x3e   :  { %1202 = vmatpush1.bf16.msra.mxu0 %v2339_v33  ;;  %v2437_v33 = vld [vmem:[%s3462_s0 + $0x204] ss:$16 sps:$4 sm:$0xff]  }
  0x3f   :  { %1491 = vmatpush1.bf16.msra.mxu1 %v2340_v34  ;;  %v2439_v34 = vld [vmem:[%s3462_s0 + $0x20c] ss:$16 sps:$4 sm:$0xff]  }
  0x41   :  { %1204 = vmatmul.mubr.bf16.vlgmr.msra.gmra.mrb[0].mxu0 %v2341_v35  ;;  %v2441_v35 = vld [vmem:[%s3462_s0 + $0x200] ss:$16 sps:$4 sm:$0xff]  }
  0x42   :  { %1493 = vmatmul.mubr.bf16.vlgmr.msra.gmra.mrb[0].mxu1 %v2344_v36  ;;  %1211 = vmatprep.mubr.bf16.mxu0 %v2347_v37  ;;  %v2442_v36 = vld [vmem:[%s3462_s0 + $0x208] ss:$16 sps:$4 sm:$0xff]   ;;  %v2443_v37 = vld [vmem:[%s3462_s0 + $0x224] ss:$16 sps:$4 sm:$0xff]  }
  0x43   :  { %1500 = vmatprep.mubr.bf16.mxu1 %v2349_v38  ;;  %v2445_v38 = vld [vmem:[%s3462_s0 + $0x22c] ss:$16 sps:$4 sm:$0xff]  }
  0x49   :  { %1212 = vmatmul.mubr.bf16.gmra.mrb[4].mxu0 %v2351_v39  ;;  %v2447_v39 = vld [vmem:[%s3462_s0 + $0x220] ss:$16 sps:$4 sm:$0xff]  }
  0x4a   :  { %1501 = vmatmul.mubr.bf16.gmra.mrb[4].mxu1 %v2352_v40  ;;  %1219 = vmatprep.mubr.bf16.mxu0 %v2353_v41  ;;  %v2448_v40 = vld [vmem:[%s3462_s0 + $0x228] ss:$16 sps:$4 sm:$0xff]   ;;  %v2449_v41 = vld [vmem:[%s3462_s0 + $0x244] ss:$16 sps:$4 sm:$0xff]  }
  0x4b   :  { %1508 = vmatprep.mubr.bf16.mxu1 %v2355_v42  ;;  %v2451_v42 = vld [vmem:[%s3462_s0 + $0x24c] ss:$16 sps:$4 sm:$0xff]  }
  0x51   :  { %1220 = vmatmul.mubr.bf16.gmra.mrb[8].mxu0 %v2357_v43  ;;  %v2453_v43 = vld [vmem:[%s3462_s0 + $0x240] ss:$16 sps:$4 sm:$0xff]  }
  0x52   :  { %1509 = vmatmul.mubr.bf16.gmra.mrb[8].mxu1 %v2358_v44  ;;  %1227 = vmatprep.mubr.bf16.mxu0 %v2359_v45  ;;  %v2454_v44 = vld [vmem:[%s3462_s0 + $0x248] ss:$16 sps:$4 sm:$0xff]   ;;  %v2455_v45 = vld [vmem:[%s3462_s0 + $0x264] ss:$16 sps:$4 sm:$0xff]  }
  0x53   :  { %1516 = vmatprep.mubr.bf16.mxu1 %v2361_v46  ;;  %v2457_v46 = vld [vmem:[%s3462_s0 + $0x26c] ss:$16 sps:$4 sm:$0xff]  }
  0x59   :  { %1228 = vmatmul.mubr.bf16.gmra.mrb[12].mxu0 %v2363_v47  ;;  %v2459_v47 = vld [vmem:[%s3462_s0 + $0x260] ss:$16 sps:$4 sm:$0xff]  }
  0x5a   :  { %1517 = vmatmul.mubr.bf16.gmra.mrb[12].mxu1 %v2364_v48  ;;  %1235 = vmatprep.mubr.bf16.mxu0 %v2365_v49  ;;  %v2460_v48 = vld [vmem:[%s3462_s0 + $0x268] ss:$16 sps:$4 sm:$0xff]   ;;  %v2461_v49 = vld [vmem:[%s3462_s0 + $0x284] ss:$16 sps:$4 sm:$0xff]  }
  0x5b   :  { %1524 = vmatprep.mubr.bf16.mxu1 %v2367_v50  ;;  %v2463_v50 = vld [vmem:[%s3462_s0 + $0x28c] ss:$16 sps:$4 sm:$0xff]  }
  0x61   :  { %1236 = vmatmul.mubr.bf16.gmra.mrb[16].mxu0 %v2369_v51  ;;  %v2465_v51 = vld [vmem:[%s3462_s0 + $0x280] ss:$16 sps:$4 sm:$0xff]  }
  0x62   :  { %1525 = vmatmul.mubr.bf16.gmra.mrb[16].mxu1 %v2370_v52  ;;  %1243 = vmatprep.mubr.bf16.mxu0 %v2371_v53  ;;  %v2466_v52 = vld [vmem:[%s3462_s0 + $0x288] ss:$16 sps:$4 sm:$0xff]   ;;  %v2467_v53 = vld [vmem:[%s3462_s0 + $0x2a4] ss:$16 sps:$4 sm:$0xff]  }
  0x63   :  { %1532 = vmatprep.mubr.bf16.mxu1 %v2373_v54  ;;  %v2469_v54 = vld [vmem:[%s3462_s0 + $0x2ac] ss:$16 sps:$4 sm:$0xff]  }
  0x69   :  { %1244 = vmatmul.mubr.bf16.gmra.mrb[20].mxu0 %v2375_v55  ;;  %v2471_v55 = vld [vmem:[%s3462_s0 + $0x2a0] ss:$16 sps:$4 sm:$0xff]  }
  0x6a   :  { %1533 = vmatmul.mubr.bf16.gmra.mrb[20].mxu1 %v2376_v56  ;;  %1251 = vmatprep.mubr.bf16.mxu0 %v2377_v57  ;;  %v2472_v56 = vld [vmem:[%s3462_s0 + $0x2a8] ss:$16 sps:$4 sm:$0xff]   ;;  %v2473_v57 = vld [vmem:[%s3462_s0 + $0x2c4] ss:$16 sps:$4 sm:$0xff]  }
  0x6b   :  { %1540 = vmatprep.mubr.bf16.mxu1 %v2379_v58  ;;  %v2475_v58 = vld [vmem:[%s3462_s0 + $0x2cc] ss:$16 sps:$4 sm:$0xff]  }
  0x71   :  { %1252 = vmatmul.mubr.bf16.gmra.mrb[24].mxu0 %v2381_v59  ;;  %v2477_v59 = vld [vmem:[%s3462_s0 + $0x2c0] ss:$16 sps:$4 sm:$0xff]  }
  0x72   :  { %1541 = vmatmul.mubr.bf16.gmra.mrb[24].mxu1 %v2382_v60  ;;  %1259 = vmatprep.mubr.bf16.mxu0 %v2383_v61  ;;  %v2478_v60 = vld [vmem:[%s3462_s0 + $0x2c8] ss:$16 sps:$4 sm:$0xff]   ;;  %v2479_v61 = vld [vmem:[%s3462_s0 + $0x2e4] ss:$16 sps:$4 sm:$0xff]  }
  0x73   :  { %1548 = vmatprep.mubr.bf16.mxu1 %v2385_v62  ;;  %v2481_v62 = vld [vmem:[%s3462_s0 + $0x2ec] ss:$16 sps:$4 sm:$0xff]  }
  0x79   :  { %1260 = vmatmul.mubr.bf16.gmra.mrb[28].mxu0 %v2387_v63  ;;  %v2483_v63 = vld [vmem:[%s3462_s0 + $0x2e0] ss:$16 sps:$4 sm:$0xff]  }
  0x7a   :  { %1549 = vmatmul.mubr.bf16.gmra.mrb[28].mxu1 %v2388_v0  ;;  %1267 = vmatprep.mubr.bf16.mxu0 %v2389_v1  ;;  %v2484_v0 = vld [vmem:[%s3462_s0 + $0x2e8] ss:$16 sps:$4 sm:$0xff]   ;;  %v2485_v1 = vld [vmem:[%s3462_s0 + $0x304] ss:$16 sps:$4 sm:$0xff]  }
  0x7b   :  { %1556 = vmatprep.mubr.bf16.mxu1 %v2391_v2  ;;  %v2487_v2 = vld [vmem:[%s3462_s0 + $0x30c] ss:$16 sps:$4 sm:$0xff]  }
  0x81   :  { %1268 = vmatmul.mubr.bf16.gmra.mrb[32].mxu0 %v2393_v3  ;;  %v2489_v3 = vld [vmem:[%s3462_s0 + $0x300] ss:$16 sps:$4 sm:$0xff]  }
  0x82   :  { %1557 = vmatmul.mubr.bf16.gmra.mrb[32].mxu1 %v2394_v4  ;;  %1275 = vmatprep.mubr.bf16.mxu0 %v2395_v5  ;;  %v2490_v4 = vld [vmem:[%s3462_s0 + $0x308] ss:$16 sps:$4 sm:$0xff]   ;;  %v2491_v5 = vld [vmem:[%s3462_s0 + $0x324] ss:$16 sps:$4 sm:$0xff]  }
  0x83   :  { %1564 = vmatprep.mubr.bf16.mxu1 %v2397_v6  ;;  %v2493_v6 = vld [vmem:[%s3462_s0 + $0x32c] ss:$16 sps:$4 sm:$0xff]  }
  0x89   :  { %1276 = vmatmul.mubr.bf16.gmra.mrb[36].mxu0 %v2399_v7  ;;  %v2495_v7 = vld [vmem:[%s3462_s0 + $0x320] ss:$16 sps:$4 sm:$0xff]  }
  0x8a   :  { %1565 = vmatmul.mubr.bf16.gmra.mrb[36].mxu1 %v2400_v8  ;;  %1283 = vmatprep.mubr.bf16.mxu0 %v2401_v9  ;;  %v2496_v8 = vld [vmem:[%s3462_s0 + $0x328] ss:$16 sps:$4 sm:$0xff]   ;;  %v2497_v9 = vld [vmem:[%s3462_s0 + $0x344] ss:$16 sps:$4 sm:$0xff]  }
  0x8b   :  { %1572 = vmatprep.mubr.bf16.mxu1 %v2403_v10  ;;  %v2499_v10 = vld [vmem:[%s3462_s0 + $0x34c] ss:$16 sps:$4 sm:$0xff]  }
  0x91   :  { %1284 = vmatmul.mubr.bf16.gmra.mrb[40].mxu0 %v2405_v11  ;;  %v2501_v11 = vld [vmem:[%s3462_s0 + $0x340] ss:$16 sps:$4 sm:$0xff]  }
  0x92   :  { %1573 = vmatmul.mubr.bf16.gmra.mrb[40].mxu1 %v2406_v12  ;;  %1291 = vmatprep.mubr.bf16.mxu0 %v2407_v13  ;;  %v2502_v12 = vld [vmem:[%s3462_s0 + $0x348] ss:$16 sps:$4 sm:$0xff]   ;;  %v2503_v13 = vld [vmem:[%s3462_s0 + $0x364] ss:$16 sps:$4 sm:$0xff]  }
  0x93   :  { %1580 = vmatprep.mubr.bf16.mxu1 %v2409_v14  ;;  %v2505_v14 = vld [vmem:[%s3462_s0 + $0x36c] ss:$16 sps:$4 sm:$0xff]  }
  0x99   :  { %1292 = vmatmul.mubr.bf16.gmra.mrb[44].mxu0 %v2411_v15 }
  0x9a   :  { %1581 = vmatmul.mubr.bf16.gmra.mrb[44].mxu1 %v2412_v16  ;;  %1299 = vmatprep.mubr.bf16.mxu0 %v2413_v17  ;;  %v3144_v17 = vld [vmem:[%s3463_s2] ss:$0 sm:$0xff] }
  0x9b   :  { %1588 = vmatprep.mubr.bf16.mxu1 %v2415_v18 }
  0xa1   :  { %1300 = vmatmul.mubr.bf16.gmra.mrb[48].mxu0 %v2417_v19  ;;  %v2507_v19 = vld [vmem:[%s3462_s0 + $0x360] ss:$16 sps:$4 sm:$0xff]  }
  0xa2   :  { %1589 = vmatmul.mubr.bf16.gmra.mrb[48].mxu1 %v2418_v20  ;;  %1307 = vmatprep.mubr.bf16.mxu0 %v2419_v21 }
  0xa3   :  { %1596 = vmatprep.mubr.bf16.mxu1 %v2421_v22 }
  0xa9   :  { %1308 = vmatmul.mubr.bf16.gmra.mrb[52].mxu0 %v2423_v23  ;;  %v2508_v23 = vld [vmem:[%s3462_s0 + $0x368] ss:$16 sps:$4 sm:$0xff]  }
  0xaa   :  { %1597 = vmatmul.mubr.bf16.gmra.mrb[52].mxu1 %v2424_v24  ;;  %1315 = vmatprep.mubr.bf16.mxu0 %v2425_v25  ;;  %v2509_v24 = vld [vmem:[%s3462_s0 + $0x384] ss:$16 sps:$4 sm:$0xff]  }
  0xab   :  { %1604 = vmatprep.mubr.bf16.mxu1 %v2427_v26 }
  0xb1   :  { %1316 = vmatmul.mubr.bf16.gmra.mrb[56].mxu0 %v2429_v27  ;;  %v2511_v27 = vld [vmem:[%s3462_s0 + $0x38c] ss:$16 sps:$4 sm:$0xff]  }
  0xb2   :  { %1605 = vmatmul.mubr.bf16.gmra.mrb[56].mxu1 %v2430_v28  ;;  %1323 = vmatprep.mubr.bf16.mxu0 %v2431_v29 }
  0xb3   :  { %1612 = vmatprep.mubr.bf16.mxu1 %v2433_v30 }
  0xb9   :  { %1324 = vmatmul.mubr.bf16.gmra.mrb[60].mxu0 %v2435_v31 }
  0xba   :  { %1613 = vmatmul.mubr.bf16.gmra.mrb[60].mxu1 %v2436_v32  ;;  %1331 = vmatprep.mubr.bf16.mxu0 %v2437_v33 }
  0xbb   :  { %1620 = vmatprep.mubr.bf16.mxu1 %v2439_v34 }
  0xc1   :  { %1332 = vmatmul.mubr.bf16.gmra.mrb[64].mxu0 %v2441_v35  ;;  %v2513_v35 = vld [vmem:[%s3462_s0 + $0x380] ss:$16 sps:$4 sm:$0xff]  }
  0xc2   :  { %1621 = vmatmul.mubr.bf16.gmra.mrb[64].mxu1 %v2442_v36  ;;  %1339 = vmatprep.mubr.bf16.mxu0 %v2443_v37 }
  0xc3   :  { %1628 = vmatprep.mubr.bf16.mxu1 %v2445_v38 }
  0xc9   :  { %1340 = vmatmul.mubr.bf16.gmra.mrb[68].mxu0 %v2447_v39  ;;  %v2514_v39 = vld [vmem:[%s3462_s0 + $0x388] ss:$16 sps:$4 sm:$0xff]  }
  0xca   :  { %1629 = vmatmul.mubr.bf16.gmra.mrb[68].mxu1 %v2448_v40  ;;  %1347 = vmatprep.mubr.bf16.mxu0 %v2449_v41  ;;  %v2515_v40 = vld [vmem:[%s3462_s0 + $0x3a4] ss:$16 sps:$4 sm:$0xff]  }
  0xcb   :  { %1636 = vmatprep.mubr.bf16.mxu1 %v2451_v42 }
  0xd1   :  { %1348 = vmatmul.mubr.bf16.gmra.mrb[72].mxu0 %v2453_v43  ;;  %v2517_v43 = vld [vmem:[%s3462_s0 + $0x3ac] ss:$16 sps:$4 sm:$0xff]  }
  0xd2   :  { %1637 = vmatmul.mubr.bf16.gmra.mrb[72].mxu1 %v2454_v44  ;;  %1355 = vmatprep.mubr.bf16.mxu0 %v2455_v45 }
  0xd3   :  { %1644 = vmatprep.mubr.bf16.mxu1 %v2457_v46 }
  0xd9   :  { %1356 = vmatmul.mubr.bf16.gmra.mrb[76].mxu0 %v2459_v47 }
  0xda   :  { %1645 = vmatmul.mubr.bf16.gmra.mrb[76].mxu1 %v2460_v48  ;;  %1363 = vmatprep.mubr.bf16.mxu0 %v2461_v49 }
  0xdb   :  { %1652 = vmatprep.mubr.bf16.mxu1 %v2463_v50 }
  0xe1   :  { %1364 = vmatmul.mubr.bf16.gmra.mrb[80].mxu0 %v2465_v51 }
  0xe2   :  { %1653 = vmatmul.mubr.bf16.gmra.mrb[80].mxu1 %v2466_v52  ;;  %1371 = vmatprep.mubr.bf16.mxu0 %v2467_v53  ;;  %v2519_v52 = vld [vmem:[%s3462_s0 + $0x3a0] ss:$16 sps:$4 sm:$0xff]  }
  0xe3   :  { %1660 = vmatprep.mubr.bf16.mxu1 %v2469_v54 }
  0xe9   :  { %1372 = vmatmul.mubr.bf16.gmra.mrb[84].mxu0 %v2471_v55 }
  0xea   :  { %1661 = vmatmul.mubr.bf16.gmra.mrb[84].mxu1 %v2472_v56  ;;  %1379 = vmatprep.mubr.bf16.mxu0 %v2473_v57  ;;  %v2520_v57 = vld [vmem:[%s3462_s0 + $0x3a8] ss:$16 sps:$4 sm:$0xff]  }
  0xeb   :  { %1668 = vmatprep.mubr.bf16.mxu1 %v2475_v58  ;;  %v2521_v58 = vld [vmem:[%s3462_s0 + $0x3c4] ss:$16 sps:$4 sm:$0xff]  }
  0xf1   :  { %1380 = vmatmul.mubr.bf16.gmra.mrb[88].mxu0 %v2477_v59 }
  0xf2   :  { %1669 = vmatmul.mubr.bf16.gmra.mrb[88].mxu1 %v2478_v60  ;;  %1387 = vmatprep.mubr.bf16.mxu0 %v2479_v61  ;;  %v2523_v61 = vld [vmem:[%s3462_s0 + $0x3cc] ss:$16 sps:$4 sm:$0xff]  }
  0xf3   :  { %1676 = vmatprep.mubr.bf16.mxu1 %v2481_v62 }
  0xf9   :  { %1388 = vmatmul.mubr.bf16.gmra.mrb[92].mxu0 %v2483_v63 }
  0xfa   :  { %1677 = vmatmul.mubr.bf16.gmra.mrb[92].mxu1 %v2484_v0  ;;  %1395 = vmatprep.mubr.bf16.mxu0 %v2485_v1 }
  0xfb   :  { %1684 = vmatprep.mubr.bf16.mxu1 %v2487_v2 }
 0x101   :  { %1396 = vmatmul.mubr.bf16.gmra.mrb[96].mxu0 %v2489_v3 }
 0x102   :  { %1685 = vmatmul.mubr.bf16.gmra.mrb[96].mxu1 %v2490_v4  ;;  %1403 = vmatprep.mubr.bf16.mxu0 %v2491_v5 }
 0x103   :  { %1692 = vmatprep.mubr.bf16.mxu1 %v2493_v6  ;;  %v2525_v6 = vld [vmem:[%s3462_s0 + $0x3c0] ss:$16 sps:$4 sm:$0xff]  }
 0x109   :  { %1404 = vmatmul.mubr.bf16.gmra.mrb[100].mxu0 %v2495_v7 }
 0x10a   :  { %1693 = vmatmul.mubr.bf16.gmra.mrb[100].mxu1 %v2496_v8  ;;  %1411 = vmatprep.mubr.bf16.mxu0 %v2497_v9 }
 0x10b   :  { %1700 = vmatprep.mubr.bf16.mxu1 %v2499_v10 }
 0x111   :  { %1412 = vmatmul.mubr.bf16.gmra.mrb[104].mxu0 %v2501_v11  ;;  %v2526_v11 = vld [vmem:[%s3462_s0 + $0x3c8] ss:$16 sps:$4 sm:$0xff]  }
 0x112   :  { %1701 = vmatmul.mubr.bf16.gmra.mrb[104].mxu1 %v2502_v12  ;;  %1419 = vmatprep.mubr.bf16.mxu0 %v2503_v13  ;;  %v2527_v12 = vld [vmem:[%s3462_s0 + $0x3e4] ss:$16 sps:$4 sm:$0xff]  }
 0x113   :  { %1708 = vmatprep.mubr.bf16.mxu1 %v2505_v14 }
 0x114   :  { %v1205_v15 = vpop.f32.mrb[0].mxu0 }
 0x115   :  { %v1494_v16 = vpop.f32.mrb[0].mxu1  ;;  %v1207_v18 = vpop.f32.mrb[1].mxu0 }
 0x116   :  { %v1495_v20 = vadd.f32 %v1494_v16, %v1205_v15  ;;  %v1496_v21 = vpop.f32.mrb[1].mxu1  ;;  %v1208_v22 = vpop.f32.mrb[2].mxu0  ;;  %v2529_v15 = vld [vmem:[%s3462_s0 + $0x3ec] ss:$16 sps:$4 sm:$0xff]  }
 0x117   :  { %v1497_v25 = vpop.f32.mrb[2].mxu1  ;;  %v1210_v26 = vpop.f32.mrb[3].mxu0 }
 0x118   :  { %v1951_v28 = vadd.f32 %v3144_v17, %v1495_v20  ;;  %v1498_v29 = vadd.f32 %v1497_v25, %v1208_v22  ;;  %v1499_v30 = vpop.f32.mrb[3].mxu1  ;;  %v2531_v25 = vld [vmem:[%s3462_s0 + $0x3e0] ss:$16 sps:$4 sm:$0xff]  }
 0x119   :  { %1420 = vmatmul.mubr.bf16.gmra.mrb[108].mxu0 %v2507_v19  ;;  %v2532_v30 = vld [vmem:[%s3462_s0 + $0x3e8] ss:$16 sps:$4 sm:$0xff]  }
 0x11a   :  { %2533 = vtanh.f32 %v1951_v28  ;;  %v1952_v31 = vadd.f32 %v3144_v17, %v1498_v29  ;;  %1709 = vmatmul.mubr.bf16.gmra.mrb[108].mxu1 %v2508_v23  ;;  %1427 = vmatprep.mubr.bf16.mxu0 %v2509_v24 }
 0x11b   :  { %1716 = vmatprep.mubr.bf16.mxu1 %v2511_v27 }
 0x11c   :  { %2535 = vtanh.f32 %v1952_v31  ;;  %v1213_v32 = vpop.f32.mrb[4].mxu0 }
 0x11d   :  { %v1502_v33 = vpop.f32.mrb[4].mxu1  ;;  %v1215_v34 = vpop.f32.mrb[5].mxu0 }
 0x11e   :  { %v1503_v36 = vadd.f32 %v1502_v33, %v1213_v32  ;;  %v1504_v37 = vpop.f32.mrb[5].mxu1  ;;  %v1216_v38 = vpop.f32.mrb[6].mxu0 }
 0x11f   :  { %v1505_v41 = vpop.f32.mrb[6].mxu1  ;;  %v1218_v42 = vpop.f32.mrb[7].mxu0 }
 0x120   :  { %v1953_v44 = vadd.f32 %v3144_v17, %v1503_v36  ;;  %v1506_v45 = vadd.f32 %v1505_v41, %v1216_v38  ;;  %v1507_v46 = vpop.f32.mrb[7].mxu1 }
 0x121   :  { %1428 = vmatmul.mubr.bf16.gmra.mrb[112].mxu0 %v2513_v35 }
 0x122   :  { %2537 = vtanh.f32 %v1953_v44  ;;  %v1954_v47 = vadd.f32 %v3144_v17, %v1506_v45  ;;  %1717 = vmatmul.mubr.bf16.gmra.mrb[112].mxu1 %v2514_v39  ;;  %1435 = vmatprep.mubr.bf16.mxu0 %v2515_v40 }
 0x123   :  { %1724 = vmatprep.mubr.bf16.mxu1 %v2517_v43 }
 0x124   :  { %v2534_v48 = vpop.eup %2533  ;;  %2539 = vtanh.f32 %v1954_v47  ;;  %v1221_v49 = vpop.f32.mrb[8].mxu0 }
 0x125   :  { %2079 = vst [vmem:[%s3464_s3] sm:$0xff] %v2534_v48  ;;  %v1510_v50 = vpop.f32.mrb[8].mxu1  ;;  %v1223_v51 = vpop.f32.mrb[9].mxu0 }
 0x126   :  { %v2536_v53 = vpop.eup %2535  ;;  %v1511_v54 = vadd.f32 %v1510_v50, %v1221_v49  ;;  %v1512_v55 = vpop.f32.mrb[9].mxu1 }
 0x127   :  { %v1224_v56 = vpop.f32.mrb[10].mxu0  ;;  %2080 = vst [vmem:[%s3464_s3 + $0x8] sm:$0xff] %v2536_v53  ;;  %v1513_v59 = vpop.f32.mrb[10].mxu1 }
 0x128   :  { %v1226_v60 = vpop.f32.mrb[11].mxu0  ;;  %v1955_v62 = vadd.f32 %v3144_v17, %v1511_v54  ;;  %v1514_v63 = vadd.f32 %v1513_v59, %v1224_v56  ;;  %v1515_v0 = vpop.f32.mrb[11].mxu1 }
 0x129   :  { %1436 = vmatmul.mubr.bf16.gmra.mrb[116].mxu0 %v2519_v52 }
 0x12a   :  { %2541 = vtanh.f32 %v1955_v62  ;;  %v1956_v1 = vadd.f32 %v3144_v17, %v1514_v63  ;;  %1725 = vmatmul.mubr.bf16.gmra.mrb[116].mxu1 %v2520_v57  ;;  %1443 = vmatprep.mubr.bf16.mxu0 %v2521_v58 }
 0x12b   :  { %1732 = vmatprep.mubr.bf16.mxu1 %v2523_v61 }
 0x12c   :  { %v2538_v2 = vpop.eup %2537  ;;  %2543 = vtanh.f32 %v1956_v1  ;;  %v1229_v3 = vpop.f32.mrb[12].mxu0 }
 0x12d   :  { %2081 = vst [vmem:[%s3464_s3 + $0x10] sm:$0xff] %v2538_v2  ;;  %v1518_v4 = vpop.f32.mrb[12].mxu1  ;;  %v1231_v5 = vpop.f32.mrb[13].mxu0 }
 0x12e   :  { %v2540_v7 = vpop.eup %2539  ;;  %v1519_v8 = vadd.f32 %v1518_v4, %v1229_v3  ;;  %v1520_v9 = vpop.f32.mrb[13].mxu1 }
 0x12f   :  { %v1232_v10 = vpop.f32.mrb[14].mxu0  ;;  %2082 = vst [vmem:[%s3464_s3 + $0x18] sm:$0xff] %v2540_v7  ;;  %v1521_v13 = vpop.f32.mrb[14].mxu1 }
 0x130   :  { %v1234_v14 = vpop.f32.mrb[15].mxu0  ;;  %v1957_v16 = vadd.f32 %v3144_v17, %v1519_v8  ;;  %v1522_v18 = vadd.f32 %v1521_v13, %v1232_v10  ;;  %v1523_v19 = vpop.f32.mrb[15].mxu1 }
 0x131   :  { %1444 = vmatmul.mubr.bf16.gmra.mrb[120].mxu0 %v2525_v6 }
 0x132   :  { %2545 = vtanh.f32 %v1957_v16  ;;  %v1958_v20 = vadd.f32 %v3144_v17, %v1522_v18  ;;  %1733 = vmatmul.mubr.bf16.gmra.mrb[120].mxu1 %v2526_v11  ;;  %1451 = vmatprep.mubr.bf16.mxu0 %v2527_v12 }
 0x133   :  { %1740 = vmatprep.mubr.bf16.mxu1 %v2529_v15 }
 0x134   :  { %v2542_v21 = vpop.eup %2541  ;;  %2547 = vtanh.f32 %v1958_v20  ;;  %v1237_v22 = vpop.f32.mrb[16].mxu0 }
 0x135   :  { %2083 = vst [vmem:[%s3464_s3 + $0x20] sm:$0xff] %v2542_v21  ;;  %v1526_v23 = vpop.f32.mrb[16].mxu1  ;;  %v1239_v24 = vpop.f32.mrb[17].mxu0 }
 0x136   :  { %v2544_v26 = vpop.eup %2543  ;;  %v1527_v27 = vadd.f32 %v1526_v23, %v1237_v22  ;;  %v1528_v28 = vpop.f32.mrb[17].mxu1 }
 0x137   :  { %v1240_v29 = vpop.f32.mrb[18].mxu0  ;;  %2084 = vst [vmem:[%s3464_s3 + $0x28] sm:$0xff] %v2544_v26  ;;  %v1529_v31 = vpop.f32.mrb[18].mxu1 }
 0x138   :  { %v1242_v32 = vpop.f32.mrb[19].mxu0  ;;  %v1959_v33 = vadd.f32 %v3144_v17, %v1527_v27  ;;  %v1530_v34 = vadd.f32 %v1529_v31, %v1240_v29  ;;  %v1531_v35 = vpop.f32.mrb[19].mxu1 }
 0x139   :  { %1452 = vmatmul.mubr.bf16.gmra.mrb[124].mxu0 %v2531_v25 }
 0x13a   :  { %2549 = vtanh.f32 %v1959_v33  ;;  %v1960_v36 = vadd.f32 %v3144_v17, %v1530_v34  ;;  %1741 = vmatmul.mubr.bf16.gmra.mrb[124].mxu1 %v2532_v30 }
 0x13c   :  { %v2546_v37 = vpop.eup %2545  ;;  %2551 = vtanh.f32 %v1960_v36  ;;  %v1245_v38 = vpop.f32.mrb[20].mxu0 }
 0x13d   :  { %2085 = vst [vmem:[%s3464_s3 + $0x30] sm:$0xff] %v2546_v37  ;;  %v1534_v39 = vpop.f32.mrb[20].mxu1  ;;  %v1247_v40 = vpop.f32.mrb[21].mxu0 }
 0x13e   :  { %v2548_v41 = vpop.eup %2547  ;;  %v1535_v42 = vadd.f32 %v1534_v39, %v1245_v38  ;;  %v1536_v43 = vpop.f32.mrb[21].mxu1 }
 0x13f   :  { %v1248_v44 = vpop.f32.mrb[22].mxu0  ;;  %2086 = vst [vmem:[%s3464_s3 + $0x38] sm:$0xff] %v2548_v41  ;;  %v1537_v45 = vpop.f32.mrb[22].mxu1 }
 0x140   :  { %v1250_v46 = vpop.f32.mrb[23].mxu0  ;;  %v1961_v47 = vadd.f32 %v3144_v17, %v1535_v42  ;;  %v1538_v48 = vadd.f32 %v1537_v45, %v1248_v44  ;;  %v1539_v49 = vpop.f32.mrb[23].mxu1 }
 0x142   :  { %2553 = vtanh.f32 %v1961_v47  ;;  %v1962_v50 = vadd.f32 %v3144_v17, %v1538_v48 }
 0x144   :  { %v2550_v51 = vpop.eup %2549  ;;  %2555 = vtanh.f32 %v1962_v50  ;;  %v1253_v52 = vpop.f32.mrb[24].mxu0 }
 0x145   :  { %2087 = vst [vmem:[%s3464_s3 + $0x40] sm:$0xff] %v2550_v51  ;;  %v1542_v53 = vpop.f32.mrb[24].mxu1  ;;  %v1255_v54 = vpop.f32.mrb[25].mxu0 }
 0x146   :  { %v2552_v55 = vpop.eup %2551  ;;  %v1543_v56 = vadd.f32 %v1542_v53, %v1253_v52  ;;  %v1544_v57 = vpop.f32.mrb[25].mxu1 }
 0x147   :  { %v1256_v58 = vpop.f32.mrb[26].mxu0  ;;  %2088 = vst [vmem:[%s3464_s3 + $0x48] sm:$0xff] %v2552_v55  ;;  %v1545_v59 = vpop.f32.mrb[26].mxu1 }
 0x148   :  { %v1258_v60 = vpop.f32.mrb[27].mxu0  ;;  %v1963_v61 = vadd.f32 %v3144_v17, %v1543_v56  ;;  %v1546_v62 = vadd.f32 %v1545_v59, %v1256_v58  ;;  %v1547_v63 = vpop.f32.mrb[27].mxu1 }
 0x14a   :  { %2557 = vtanh.f32 %v1963_v61  ;;  %v1964_v0 = vadd.f32 %v3144_v17, %v1546_v62 }
 0x14c   :  { %v2554_v1 = vpop.eup %2553  ;;  %2559 = vtanh.f32 %v1964_v0  ;;  %v1261_v2 = vpop.f32.mrb[28].mxu0 }
 0x14d   :  { %2089 = vst [vmem:[%s3464_s3 + $0x50] sm:$0xff] %v2554_v1  ;;  %v1550_v3 = vpop.f32.mrb[28].mxu1  ;;  %v1263_v4 = vpop.f32.mrb[29].mxu0 }
 0x14e   :  { %v2556_v5 = vpop.eup %2555  ;;  %v1551_v6 = vadd.f32 %v1550_v3, %v1261_v2  ;;  %v1552_v7 = vpop.f32.mrb[29].mxu1 }
 0x14f   :  { %v1264_v8 = vpop.f32.mrb[30].mxu0  ;;  %2090 = vst [vmem:[%s3464_s3 + $0x58] sm:$0xff] %v2556_v5  ;;  %v1553_v9 = vpop.f32.mrb[30].mxu1 }
 0x150   :  { %v1266_v10 = vpop.f32.mrb[31].mxu0  ;;  %v1965_v11 = vadd.f32 %v3144_v17, %v1551_v6  ;;  %v1554_v12 = vadd.f32 %v1553_v9, %v1264_v8  ;;  %v1555_v13 = vpop.f32.mrb[31].mxu1 }
 0x152   :  { %2561 = vtanh.f32 %v1965_v11  ;;  %v1966_v14 = vadd.f32 %v3144_v17, %v1554_v12 }
 0x154   :  { %v2558_v15 = vpop.eup %2557  ;;  %2563 = vtanh.f32 %v1966_v14  ;;  %v1269_v16 = vpop.f32.mrb[32].mxu0 }
 0x155   :  { %2091 = vst [vmem:[%s3464_s3 + $0x60] sm:$0xff] %v2558_v15  ;;  %v1558_v18 = vpop.f32.mrb[32].mxu1  ;;  %v1271_v19 = vpop.f32.mrb[33].mxu0 }
 0x156   :  { %v2560_v20 = vpop.eup %2559  ;;  %v1559_v21 = vadd.f32 %v1558_v18, %v1269_v16  ;;  %v1560_v22 = vpop.f32.mrb[33].mxu1 }
 0x157   :  { %v1272_v23 = vpop.f32.mrb[34].mxu0  ;;  %2092 = vst [vmem:[%s3464_s3 + $0x68] sm:$0xff] %v2560_v20  ;;  %v1561_v24 = vpop.f32.mrb[34].mxu1 }
 0x158   :  { %v1274_v25 = vpop.f32.mrb[35].mxu0  ;;  %v1967_v26 = vadd.f32 %v3144_v17, %v1559_v21  ;;  %v1562_v27 = vadd.f32 %v1561_v24, %v1272_v23  ;;  %v1563_v28 = vpop.f32.mrb[35].mxu1 }
 0x15a   :  { %2565 = vtanh.f32 %v1967_v26  ;;  %v1968_v29 = vadd.f32 %v3144_v17, %v1562_v27 }
 0x15c   :  { %v2562_v30 = vpop.eup %2561  ;;  %2567 = vtanh.f32 %v1968_v29  ;;  %v1277_v31 = vpop.f32.mrb[36].mxu0 }
 0x15d   :  { %2093 = vst [vmem:[%s3464_s3 + $0x70] sm:$0xff] %v2562_v30  ;;  %v1566_v32 = vpop.f32.mrb[36].mxu1  ;;  %v1279_v33 = vpop.f32.mrb[37].mxu0 }
 0x15e   :  { %v2564_v34 = vpop.eup %2563  ;;  %v1567_v35 = vadd.f32 %v1566_v32, %v1277_v31  ;;  %v1568_v36 = vpop.f32.mrb[37].mxu1 }
 0x15f   :  { %v1280_v37 = vpop.f32.mrb[38].mxu0  ;;  %2094 = vst [vmem:[%s3464_s3 + $0x78] sm:$0xff] %v2564_v34  ;;  %v1569_v38 = vpop.f32.mrb[38].mxu1 }
 0x160   :  { %v1282_v39 = vpop.f32.mrb[39].mxu0  ;;  %v1969_v40 = vadd.f32 %v3144_v17, %v1567_v35  ;;  %v1570_v41 = vadd.f32 %v1569_v38, %v1280_v37  ;;  %v1571_v42 = vpop.f32.mrb[39].mxu1 }
 0x162   :  { %2569 = vtanh.f32 %v1969_v40  ;;  %v1970_v43 = vadd.f32 %v3144_v17, %v1570_v41 }
 0x164   :  { %v2566_v44 = vpop.eup %2565  ;;  %2571 = vtanh.f32 %v1970_v43  ;;  %v1285_v45 = vpop.f32.mrb[40].mxu0 }
 0x165   :  { %2095 = vst [vmem:[%s3464_s3 + $0x80] sm:$0xff] %v2566_v44  ;;  %v1574_v46 = vpop.f32.mrb[40].mxu1  ;;  %v1287_v47 = vpop.f32.mrb[41].mxu0 }
 0x166   :  { %v2568_v48 = vpop.eup %2567  ;;  %v1575_v49 = vadd.f32 %v1574_v46, %v1285_v45  ;;  %v1576_v50 = vpop.f32.mrb[41].mxu1 }
 0x167   :  { %v1288_v51 = vpop.f32.mrb[42].mxu0  ;;  %2096 = vst [vmem:[%s3464_s3 + $0x88] sm:$0xff] %v2568_v48  ;;  %v1577_v52 = vpop.f32.mrb[42].mxu1 }
 0x168   :  { %v1290_v53 = vpop.f32.mrb[43].mxu0  ;;  %v1971_v54 = vadd.f32 %v3144_v17, %v1575_v49  ;;  %v1578_v55 = vadd.f32 %v1577_v52, %v1288_v51  ;;  %v1579_v56 = vpop.f32.mrb[43].mxu1 }
 0x16a   :  { %2573 = vtanh.f32 %v1971_v54  ;;  %v1972_v57 = vadd.f32 %v3144_v17, %v1578_v55 }
 0x16c   :  { %v2570_v58 = vpop.eup %2569  ;;  %2575 = vtanh.f32 %v1972_v57  ;;  %v1293_v59 = vpop.f32.mrb[44].mxu0 }
 0x16d   :  { %2097 = vst [vmem:[%s3464_s3 + $0x90] sm:$0xff] %v2570_v58  ;;  %v1582_v60 = vpop.f32.mrb[44].mxu1  ;;  %v1295_v61 = vpop.f32.mrb[45].mxu0 }
 0x16e   :  { %v2572_v62 = vpop.eup %2571  ;;  %v1583_v63 = vadd.f32 %v1582_v60, %v1293_v59  ;;  %v1584_v0 = vpop.f32.mrb[45].mxu1 }
 0x16f   :  { %v1296_v1 = vpop.f32.mrb[46].mxu0  ;;  %2098 = vst [vmem:[%s3464_s3 + $0x98] sm:$0xff] %v2572_v62  ;;  %v1585_v2 = vpop.f32.mrb[46].mxu1 }
 0x170   :  { %v1298_v3 = vpop.f32.mrb[47].mxu0  ;;  %v1973_v4 = vadd.f32 %v3144_v17, %v1583_v63  ;;  %v1586_v5 = vadd.f32 %v1585_v2, %v1296_v1  ;;  %v1587_v6 = vpop.f32.mrb[47].mxu1 }
 0x172   :  { %2577 = vtanh.f32 %v1973_v4  ;;  %v1974_v7 = vadd.f32 %v3144_v17, %v1586_v5 }
 0x174   :  { %v2574_v8 = vpop.eup %2573  ;;  %2579 = vtanh.f32 %v1974_v7  ;;  %v1301_v9 = vpop.f32.mrb[48].mxu0 }
 0x175   :  { %2099 = vst [vmem:[%s3464_s3 + $0xa0] sm:$0xff] %v2574_v8  ;;  %v1590_v10 = vpop.f32.mrb[48].mxu1  ;;  %v1303_v11 = vpop.f32.mrb[49].mxu0 }
 0x176   :  { %v2576_v12 = vpop.eup %2575  ;;  %v1591_v13 = vadd.f32 %v1590_v10, %v1301_v9  ;;  %v1592_v14 = vpop.f32.mrb[49].mxu1 }
 0x177   :  { %v1304_v15 = vpop.f32.mrb[50].mxu0  ;;  %2100 = vst [vmem:[%s3464_s3 + $0xa8] sm:$0xff] %v2576_v12  ;;  %v1593_v16 = vpop.f32.mrb[50].mxu1 }
 0x178   :  { %v1306_v18 = vpop.f32.mrb[51].mxu0  ;;  %v1975_v19 = vadd.f32 %v3144_v17, %v1591_v13  ;;  %v1594_v20 = vadd.f32 %v1593_v16, %v1304_v15  ;;  %v1595_v21 = vpop.f32.mrb[51].mxu1 }
 0x17a   :  { %2581 = vtanh.f32 %v1975_v19  ;;  %v1976_v22 = vadd.f32 %v3144_v17, %v1594_v20 }
 0x17c   :  { %v2578_v23 = vpop.eup %2577  ;;  %2583 = vtanh.f32 %v1976_v22  ;;  %v1309_v24 = vpop.f32.mrb[52].mxu0 }
 0x17d   :  { %2101 = vst [vmem:[%s3464_s3 + $0xb0] sm:$0xff] %v2578_v23  ;;  %v1598_v25 = vpop.f32.mrb[52].mxu1  ;;  %v1311_v26 = vpop.f32.mrb[53].mxu0 }
 0x17e   :  { %v2580_v27 = vpop.eup %2579  ;;  %v1599_v28 = vadd.f32 %v1598_v25, %v1309_v24  ;;  %v1600_v29 = vpop.f32.mrb[53].mxu1 }
 0x17f   :  { %v1312_v30 = vpop.f32.mrb[54].mxu0  ;;  %2102 = vst [vmem:[%s3464_s3 + $0xb8] sm:$0xff] %v2580_v27  ;;  %v1601_v31 = vpop.f32.mrb[54].mxu1 }
 0x180   :  { %v1314_v32 = vpop.f32.mrb[55].mxu0  ;;  %v1977_v33 = vadd.f32 %v3144_v17, %v1599_v28  ;;  %v1602_v34 = vadd.f32 %v1601_v31, %v1312_v30  ;;  %v1603_v35 = vpop.f32.mrb[55].mxu1 }
 0x182   :  { %2585 = vtanh.f32 %v1977_v33  ;;  %v1978_v36 = vadd.f32 %v3144_v17, %v1602_v34 }
 0x184   :  { %v2582_v37 = vpop.eup %2581  ;;  %2587 = vtanh.f32 %v1978_v36  ;;  %v1317_v38 = vpop.f32.mrb[56].mxu0 }
 0x185   :  { %2103 = vst [vmem:[%s3464_s3 + $0xc0] sm:$0xff] %v2582_v37  ;;  %v1606_v39 = vpop.f32.mrb[56].mxu1  ;;  %v1319_v40 = vpop.f32.mrb[57].mxu0 }
 0x186   :  { %v2584_v41 = vpop.eup %2583  ;;  %v1607_v42 = vadd.f32 %v1606_v39, %v1317_v38  ;;  %v1608_v43 = vpop.f32.mrb[57].mxu1 }
 0x187   :  { %v1320_v44 = vpop.f32.mrb[58].mxu0  ;;  %2104 = vst [vmem:[%s3464_s3 + $0xc8] sm:$0xff] %v2584_v41  ;;  %v1609_v45 = vpop.f32.mrb[58].mxu1 }
 0x188   :  { %v1322_v46 = vpop.f32.mrb[59].mxu0  ;;  %v1979_v47 = vadd.f32 %v3144_v17, %v1607_v42  ;;  %v1610_v48 = vadd.f32 %v1609_v45, %v1320_v44  ;;  %v1611_v49 = vpop.f32.mrb[59].mxu1 }
 0x18a   :  { %2589 = vtanh.f32 %v1979_v47  ;;  %v1980_v50 = vadd.f32 %v3144_v17, %v1610_v48 }
 0x18c   :  { %v2586_v51 = vpop.eup %2585  ;;  %2591 = vtanh.f32 %v1980_v50  ;;  %v1325_v52 = vpop.f32.mrb[60].mxu0 }
 0x18d   :  { %2105 = vst [vmem:[%s3464_s3 + $0xd0] sm:$0xff] %v2586_v51  ;;  %v1614_v53 = vpop.f32.mrb[60].mxu1  ;;  %v1327_v54 = vpop.f32.mrb[61].mxu0 }
 0x18e   :  { %v2588_v55 = vpop.eup %2587  ;;  %v1615_v56 = vadd.f32 %v1614_v53, %v1325_v52  ;;  %v1616_v57 = vpop.f32.mrb[61].mxu1 }
 0x18f   :  { %v1328_v58 = vpop.f32.mrb[62].mxu0  ;;  %2106 = vst [vmem:[%s3464_s3 + $0xd8] sm:$0xff] %v2588_v55  ;;  %v1617_v59 = vpop.f32.mrb[62].mxu1 }
 0x190   :  { %v1330_v60 = vpop.f32.mrb[63].mxu0  ;;  %v1981_v61 = vadd.f32 %v3144_v17, %v1615_v56  ;;  %v1618_v62 = vadd.f32 %v1617_v59, %v1328_v58  ;;  %v1619_v63 = vpop.f32.mrb[63].mxu1 }
 0x192   :  { %2593 = vtanh.f32 %v1981_v61  ;;  %v1982_v0 = vadd.f32 %v3144_v17, %v1618_v62 }
 0x194   :  { %v2590_v1 = vpop.eup %2589  ;;  %2595 = vtanh.f32 %v1982_v0  ;;  %v1333_v2 = vpop.f32.mrb[64].mxu0 }
 0x195   :  { %2107 = vst [vmem:[%s3464_s3 + $0xe0] sm:$0xff] %v2590_v1  ;;  %v1622_v3 = vpop.f32.mrb[64].mxu1  ;;  %v1335_v4 = vpop.f32.mrb[65].mxu0 }
 0x196   :  { %v2592_v5 = vpop.eup %2591  ;;  %v1623_v6 = vadd.f32 %v1622_v3, %v1333_v2  ;;  %v1624_v7 = vpop.f32.mrb[65].mxu1 }
 0x197   :  { %v1336_v8 = vpop.f32.mrb[66].mxu0  ;;  %2108 = vst [vmem:[%s3464_s3 + $0xe8] sm:$0xff] %v2592_v5  ;;  %v1625_v9 = vpop.f32.mrb[66].mxu1 }
 0x198   :  { %v1338_v10 = vpop.f32.mrb[67].mxu0  ;;  %v1983_v11 = vadd.f32 %v3144_v17, %v1623_v6  ;;  %v1626_v12 = vadd.f32 %v1625_v9, %v1336_v8  ;;  %v1627_v13 = vpop.f32.mrb[67].mxu1 }
 0x19a   :  { %2597 = vtanh.f32 %v1983_v11  ;;  %v1984_v14 = vadd.f32 %v3144_v17, %v1626_v12 }
 0x19c   :  { %v2594_v15 = vpop.eup %2593  ;;  %2599 = vtanh.f32 %v1984_v14  ;;  %v1341_v16 = vpop.f32.mrb[68].mxu0 }
 0x19d   :  { %2109 = vst [vmem:[%s3464_s3 + $0xf0] sm:$0xff] %v2594_v15  ;;  %v1630_v18 = vpop.f32.mrb[68].mxu1  ;;  %v1343_v19 = vpop.f32.mrb[69].mxu0 }
 0x19e   :  { %v2596_v20 = vpop.eup %2595  ;;  %v1631_v21 = vadd.f32 %v1630_v18, %v1341_v16  ;;  %v1632_v22 = vpop.f32.mrb[69].mxu1 }
 0x19f   :  { %v1344_v23 = vpop.f32.mrb[70].mxu0  ;;  %2110 = vst [vmem:[%s3464_s3 + $0xf8] sm:$0xff] %v2596_v20  ;;  %v1633_v24 = vpop.f32.mrb[70].mxu1 }
 0x1a0   :  { %v1346_v25 = vpop.f32.mrb[71].mxu0  ;;  %v1985_v26 = vadd.f32 %v3144_v17, %v1631_v21  ;;  %v1634_v27 = vadd.f32 %v1633_v24, %v1344_v23  ;;  %v1635_v28 = vpop.f32.mrb[71].mxu1 }
 0x1a2   :  { %2601 = vtanh.f32 %v1985_v26  ;;  %v1986_v29 = vadd.f32 %v3144_v17, %v1634_v27 }
 0x1a4   :  { %v2598_v30 = vpop.eup %2597  ;;  %2603 = vtanh.f32 %v1986_v29  ;;  %v1349_v31 = vpop.f32.mrb[72].mxu0 }
 0x1a5   :  { %2111 = vst [vmem:[%s3464_s3 + $0x100] sm:$0xff] %v2598_v30  ;;  %v1638_v32 = vpop.f32.mrb[72].mxu1  ;;  %v1351_v33 = vpop.f32.mrb[73].mxu0 }
 0x1a6   :  { %v2600_v34 = vpop.eup %2599  ;;  %v1639_v35 = vadd.f32 %v1638_v32, %v1349_v31  ;;  %v1640_v36 = vpop.f32.mrb[73].mxu1 }
 0x1a7   :  { %v1352_v37 = vpop.f32.mrb[74].mxu0  ;;  %2112 = vst [vmem:[%s3464_s3 + $0x108] sm:$0xff] %v2600_v34  ;;  %v1641_v38 = vpop.f32.mrb[74].mxu1 }
 0x1a8   :  { %v1354_v39 = vpop.f32.mrb[75].mxu0  ;;  %v1987_v40 = vadd.f32 %v3144_v17, %v1639_v35  ;;  %v1642_v41 = vadd.f32 %v1641_v38, %v1352_v37  ;;  %v1643_v42 = vpop.f32.mrb[75].mxu1 }
 0x1aa   :  { %2605 = vtanh.f32 %v1987_v40  ;;  %v1988_v43 = vadd.f32 %v3144_v17, %v1642_v41 }
 0x1ac   :  { %v2602_v44 = vpop.eup %2601  ;;  %2607 = vtanh.f32 %v1988_v43  ;;  %v1357_v45 = vpop.f32.mrb[76].mxu0 }
 0x1ad   :  { %2113 = vst [vmem:[%s3464_s3 + $0x110] sm:$0xff] %v2602_v44  ;;  %v1646_v46 = vpop.f32.mrb[76].mxu1  ;;  %v1359_v47 = vpop.f32.mrb[77].mxu0 }
 0x1ae   :  { %v2604_v48 = vpop.eup %2603  ;;  %v1647_v49 = vadd.f32 %v1646_v46, %v1357_v45  ;;  %v1648_v50 = vpop.f32.mrb[77].mxu1 }
 0x1af   :  { %v1360_v51 = vpop.f32.mrb[78].mxu0  ;;  %2114 = vst [vmem:[%s3464_s3 + $0x118] sm:$0xff] %v2604_v48  ;;  %v1649_v52 = vpop.f32.mrb[78].mxu1 }
 0x1b0   :  { %v1362_v53 = vpop.f32.mrb[79].mxu0  ;;  %v1989_v54 = vadd.f32 %v3144_v17, %v1647_v49  ;;  %v1650_v55 = vadd.f32 %v1649_v52, %v1360_v51  ;;  %v1651_v56 = vpop.f32.mrb[79].mxu1 }
 0x1b2   :  { %2609 = vtanh.f32 %v1989_v54  ;;  %v1990_v57 = vadd.f32 %v3144_v17, %v1650_v55 }
 0x1b4   :  { %v2606_v58 = vpop.eup %2605  ;;  %2611 = vtanh.f32 %v1990_v57  ;;  %v1365_v59 = vpop.f32.mrb[80].mxu0 }
 0x1b5   :  { %2115 = vst [vmem:[%s3464_s3 + $0x120] sm:$0xff] %v2606_v58  ;;  %v1654_v60 = vpop.f32.mrb[80].mxu1  ;;  %v1367_v61 = vpop.f32.mrb[81].mxu0 }
 0x1b6   :  { %v2608_v62 = vpop.eup %2607  ;;  %v1655_v63 = vadd.f32 %v1654_v60, %v1365_v59  ;;  %v1656_v0 = vpop.f32.mrb[81].mxu1 }
 0x1b7   :  { %v1368_v1 = vpop.f32.mrb[82].mxu0  ;;  %2116 = vst [vmem:[%s3464_s3 + $0x128] sm:$0xff] %v2608_v62  ;;  %v1657_v2 = vpop.f32.mrb[82].mxu1 }
 0x1b8   :  { %v1370_v3 = vpop.f32.mrb[83].mxu0  ;;  %v1991_v4 = vadd.f32 %v3144_v17, %v1655_v63  ;;  %v1658_v5 = vadd.f32 %v1657_v2, %v1368_v1  ;;  %v1659_v6 = vpop.f32.mrb[83].mxu1 }
 0x1ba   :  { %2613 = vtanh.f32 %v1991_v4  ;;  %v1992_v7 = vadd.f32 %v3144_v17, %v1658_v5 }
 0x1bc   :  { %v2610_v8 = vpop.eup %2609  ;;  %2615 = vtanh.f32 %v1992_v7  ;;  %v1373_v9 = vpop.f32.mrb[84].mxu0 }
 0x1bd   :  { %2117 = vst [vmem:[%s3464_s3 + $0x130] sm:$0xff] %v2610_v8  ;;  %v1662_v10 = vpop.f32.mrb[84].mxu1  ;;  %v1375_v11 = vpop.f32.mrb[85].mxu0 }
 0x1be   :  { %v2612_v12 = vpop.eup %2611  ;;  %v1663_v13 = vadd.f32 %v1662_v10, %v1373_v9  ;;  %v1664_v14 = vpop.f32.mrb[85].mxu1 }
 0x1bf   :  { %v1376_v15 = vpop.f32.mrb[86].mxu0  ;;  %2118 = vst [vmem:[%s3464_s3 + $0x138] sm:$0xff] %v2612_v12  ;;  %v1665_v16 = vpop.f32.mrb[86].mxu1 }
 0x1c0   :  { %v1378_v18 = vpop.f32.mrb[87].mxu0  ;;  %v1993_v19 = vadd.f32 %v3144_v17, %v1663_v13  ;;  %v1666_v20 = vadd.f32 %v1665_v16, %v1376_v15  ;;  %v1667_v21 = vpop.f32.mrb[87].mxu1 }
 0x1c2   :  { %2617 = vtanh.f32 %v1993_v19  ;;  %v1994_v22 = vadd.f32 %v3144_v17, %v1666_v20 }
 0x1c4   :  { %v2614_v23 = vpop.eup %2613  ;;  %2619 = vtanh.f32 %v1994_v22  ;;  %v1381_v24 = vpop.f32.mrb[88].mxu0 }
 0x1c5   :  { %2119 = vst [vmem:[%s3464_s3 + $0x140] sm:$0xff] %v2614_v23  ;;  %v1670_v25 = vpop.f32.mrb[88].mxu1  ;;  %v1383_v26 = vpop.f32.mrb[89].mxu0 }
 0x1c6   :  { %v2616_v27 = vpop.eup %2615  ;;  %v1671_v28 = vadd.f32 %v1670_v25, %v1381_v24  ;;  %v1672_v29 = vpop.f32.mrb[89].mxu1 }
 0x1c7   :  { %v1384_v30 = vpop.f32.mrb[90].mxu0  ;;  %2120 = vst [vmem:[%s3464_s3 + $0x148] sm:$0xff] %v2616_v27  ;;  %v1673_v31 = vpop.f32.mrb[90].mxu1  ;;  %v3406_v29 = vld [vmem:[%s3463_s2] ss:$0 sm:$0xff] }
 0x1c8   :  { %v1386_v32 = vpop.f32.mrb[91].mxu0  ;;  %v1995_v33 = vadd.f32 %v3144_v17, %v1671_v28  ;;  %v1674_v34 = vadd.f32 %v1673_v31, %v1384_v30  ;;  %v1675_v35 = vpop.f32.mrb[91].mxu1 }
 0x1ca   :  { %2621 = vtanh.f32 %v1995_v33  ;;  %v1996_v36 = vadd.f32 %v3144_v17, %v1674_v34 }
 0x1cc   :  { %v2618_v37 = vpop.eup %2617  ;;  %2623 = vtanh.f32 %v1996_v36  ;;  %v1389_v38 = vpop.f32.mrb[92].mxu0 }
 0x1cd   :  { %2121 = vst [vmem:[%s3464_s3 + $0x150] sm:$0xff] %v2618_v37  ;;  %v1678_v39 = vpop.f32.mrb[92].mxu1  ;;  %v1391_v40 = vpop.f32.mrb[93].mxu0 }
 0x1ce   :  { %v2620_v41 = vpop.eup %2619  ;;  %v1679_v42 = vadd.f32 %v1678_v39, %v1389_v38  ;;  %v1680_v43 = vpop.f32.mrb[93].mxu1 }
 0x1cf   :  { %v1392_v44 = vpop.f32.mrb[94].mxu0  ;;  %2122 = vst [vmem:[%s3464_s3 + $0x158] sm:$0xff] %v2620_v41  ;;  %v1681_v45 = vpop.f32.mrb[94].mxu1 }
 0x1d0   :  { %v1394_v46 = vpop.f32.mrb[95].mxu0  ;;  %v1997_v47 = vadd.f32 %v3144_v17, %v1679_v42  ;;  %v1682_v48 = vadd.f32 %v1681_v45, %v1392_v44  ;;  %v1683_v49 = vpop.f32.mrb[95].mxu1 }
 0x1d2   :  { %2625 = vtanh.f32 %v1997_v47  ;;  %v1998_v50 = vadd.f32 %v3144_v17, %v1682_v48 }
 0x1d4   :  { %v2622_v51 = vpop.eup %2621  ;;  %2627 = vtanh.f32 %v1998_v50  ;;  %v1397_v52 = vpop.f32.mrb[96].mxu0 }
 0x1d5   :  { %2123 = vst [vmem:[%s3464_s3 + $0x160] sm:$0xff] %v2622_v51  ;;  %v1686_v53 = vpop.f32.mrb[96].mxu1  ;;  %v1399_v54 = vpop.f32.mrb[97].mxu0 }
 0x1d6   :  { %v2624_v55 = vpop.eup %2623  ;;  %v1687_v56 = vadd.f32 %v1686_v53, %v1397_v52  ;;  %v1688_v57 = vpop.f32.mrb[97].mxu1 }
 0x1d7   :  { %v1400_v58 = vpop.f32.mrb[98].mxu0  ;;  %2124 = vst [vmem:[%s3464_s3 + $0x168] sm:$0xff] %v2624_v55  ;;  %v1689_v59 = vpop.f32.mrb[98].mxu1 }
 0x1d8   :  { %v1402_v60 = vpop.f32.mrb[99].mxu0  ;;  %v1999_v61 = vadd.f32 %v3144_v17, %v1687_v56  ;;  %v1690_v62 = vadd.f32 %v1689_v59, %v1400_v58  ;;  %v1691_v63 = vpop.f32.mrb[99].mxu1 }
 0x1da   :  { %2629 = vtanh.f32 %v1999_v61  ;;  %v2000_v0 = vadd.f32 %v3144_v17, %v1690_v62 }
 0x1dc   :  { %v2626_v1 = vpop.eup %2625  ;;  %2631 = vtanh.f32 %v2000_v0  ;;  %v1405_v2 = vpop.f32.mrb[100].mxu0 }
 0x1dd   :  { %2125 = vst [vmem:[%s3464_s3 + $0x170] sm:$0xff] %v2626_v1  ;;  %v1694_v3 = vpop.f32.mrb[100].mxu1  ;;  %v1407_v4 = vpop.f32.mrb[101].mxu0 }
 0x1de   :  { %v2628_v5 = vpop.eup %2627  ;;  %v1695_v6 = vadd.f32 %v1694_v3, %v1405_v2  ;;  %v1696_v7 = vpop.f32.mrb[101].mxu1 }
 0x1df   :  { %v1408_v8 = vpop.f32.mrb[102].mxu0  ;;  %2126 = vst [vmem:[%s3464_s3 + $0x178] sm:$0xff] %v2628_v5  ;;  %v1697_v9 = vpop.f32.mrb[102].mxu1 }
 0x1e0   :  { %v1410_v10 = vpop.f32.mrb[103].mxu0  ;;  %v2001_v11 = vadd.f32 %v3144_v17, %v1695_v6  ;;  %v1698_v12 = vadd.f32 %v1697_v9, %v1408_v8  ;;  %v1699_v13 = vpop.f32.mrb[103].mxu1 }
 0x1e2   :  { %2633 = vtanh.f32 %v2001_v11  ;;  %v2002_v14 = vadd.f32 %v3144_v17, %v1698_v12 }
 0x1e4   :  { %v2630_v15 = vpop.eup %2629  ;;  %2635 = vtanh.f32 %v2002_v14  ;;  %v1413_v16 = vpop.f32.mrb[104].mxu0 }
 0x1e5   :  { %2127 = vst [vmem:[%s3464_s3 + $0x180] sm:$0xff] %v2630_v15  ;;  %v1702_v18 = vpop.f32.mrb[104].mxu1  ;;  %v1415_v19 = vpop.f32.mrb[105].mxu0 }
 0x1e6   :  { %v2632_v20 = vpop.eup %2631  ;;  %v1703_v21 = vadd.f32 %v1702_v18, %v1413_v16  ;;  %v1704_v22 = vpop.f32.mrb[105].mxu1 }
 0x1e7   :  { %v1416_v23 = vpop.f32.mrb[106].mxu0  ;;  %2128 = vst [vmem:[%s3464_s3 + $0x188] sm:$0xff] %v2632_v20  ;;  %v1705_v24 = vpop.f32.mrb[106].mxu1 }
 0x1e8   :  { %v1418_v25 = vpop.f32.mrb[107].mxu0  ;;  %v2003_v26 = vadd.f32 %v3144_v17, %v1703_v21  ;;  %v1706_v27 = vadd.f32 %v1705_v24, %v1416_v23  ;;  %v1707_v28 = vpop.f32.mrb[107].mxu1 }
 0x1ea   :  { %2637 = vtanh.f32 %v2003_v26  ;;  %v2004_v30 = vadd.f32 %v3406_v29, %v1706_v27 }
 0x1ec   :  { %v2634_v31 = vpop.eup %2633  ;;  %2639 = vtanh.f32 %v2004_v30  ;;  %v1421_v32 = vpop.f32.mrb[108].mxu0 }
 0x1ed   :  { %2129 = vst [vmem:[%s3464_s3 + $0x190] sm:$0xff] %v2634_v31  ;;  %v1710_v33 = vpop.f32.mrb[108].mxu1  ;;  %v1423_v34 = vpop.f32.mrb[109].mxu0 }
 0x1ee   :  { %v2636_v17 = vpop.eup %2635  ;;  %v1711_v35 = vadd.f32 %v1710_v33, %v1421_v32  ;;  %v1712_v36 = vpop.f32.mrb[109].mxu1 }
 0x1ef   :  { %v1424_v37 = vpop.f32.mrb[110].mxu0  ;;  %2130 = vst [vmem:[%s3464_s3 + $0x198] sm:$0xff] %v2636_v17  ;;  %v1713_v38 = vpop.f32.mrb[110].mxu1 }
 0x1f0   :  { %v1426_v39 = vpop.f32.mrb[111].mxu0  ;;  %v2005_v40 = vadd.f32 %v3406_v29, %v1711_v35  ;;  %v1714_v41 = vadd.f32 %v1713_v38, %v1424_v37  ;;  %v1715_v42 = vpop.f32.mrb[111].mxu1 }
 0x1f2   :  { %2641 = vtanh.f32 %v2005_v40  ;;  %v2006_v43 = vadd.f32 %v3406_v29, %v1714_v41 }
 0x1f4   :  { %v2638_v44 = vpop.eup %2637  ;;  %2643 = vtanh.f32 %v2006_v43  ;;  %v1429_v45 = vpop.f32.mrb[112].mxu0 }
 0x1f5   :  { %2131 = vst [vmem:[%s3464_s3 + $0x1a0] sm:$0xff] %v2638_v44  ;;  %v1718_v46 = vpop.f32.mrb[112].mxu1  ;;  %v1431_v47 = vpop.f32.mrb[113].mxu0 }
 0x1f6   :  { %v2640_v48 = vpop.eup %2639  ;;  %v1719_v49 = vadd.f32 %v1718_v46, %v1429_v45  ;;  %v1720_v50 = vpop.f32.mrb[113].mxu1 }
 0x1f7   :  { %v1432_v51 = vpop.f32.mrb[114].mxu0  ;;  %2132 = vst [vmem:[%s3464_s3 + $0x1a8] sm:$0xff] %v2640_v48  ;;  %v1721_v52 = vpop.f32.mrb[114].mxu1 }
 0x1f8   :  { %v1434_v53 = vpop.f32.mrb[115].mxu0  ;;  %v2007_v54 = vadd.f32 %v3406_v29, %v1719_v49  ;;  %v1722_v55 = vadd.f32 %v1721_v52, %v1432_v51  ;;  %v1723_v56 = vpop.f32.mrb[115].mxu1 }
 0x1fa   :  { %2645 = vtanh.f32 %v2007_v54  ;;  %v2008_v57 = vadd.f32 %v3406_v29, %v1722_v55 }
 0x1fc   :  { %v2642_v58 = vpop.eup %2641  ;;  %2647 = vtanh.f32 %v2008_v57  ;;  %v1437_v59 = vpop.f32.mrb[116].mxu0 }
 0x1fd   :  { %2133 = vst [vmem:[%s3464_s3 + $0x1b0] sm:$0xff] %v2642_v58  ;;  %v1726_v60 = vpop.f32.mrb[116].mxu1  ;;  %v1439_v61 = vpop.f32.mrb[117].mxu0 }
 0x1fe   :  { %v2644_v62 = vpop.eup %2643  ;;  %v1727_v63 = vadd.f32 %v1726_v60, %v1437_v59  ;;  %v1728_v0 = vpop.f32.mrb[117].mxu1 }
 0x1ff   :  { %v1440_v1 = vpop.f32.mrb[118].mxu0  ;;  %2134 = vst [vmem:[%s3464_s3 + $0x1b8] sm:$0xff] %v2644_v62  ;;  %v1729_v2 = vpop.f32.mrb[118].mxu1 }
 0x200   :  { %v1442_v3 = vpop.f32.mrb[119].mxu0  ;;  %v2009_v4 = vadd.f32 %v3406_v29, %v1727_v63  ;;  %v1730_v5 = vadd.f32 %v1729_v2, %v1440_v1  ;;  %v1731_v6 = vpop.f32.mrb[119].mxu1 }
 0x202   :  { %2649 = vtanh.f32 %v2009_v4  ;;  %v2010_v7 = vadd.f32 %v3406_v29, %v1730_v5 }
 0x204   :  { %v2646_v8 = vpop.eup %2645  ;;  %2651 = vtanh.f32 %v2010_v7  ;;  %v1445_v9 = vpop.f32.mrb[120].mxu0 }
 0x205   :  { %2135 = vst [vmem:[%s3464_s3 + $0x1c0] sm:$0xff] %v2646_v8  ;;  %v1734_v10 = vpop.f32.mrb[120].mxu1  ;;  %v1447_v11 = vpop.f32.mrb[121].mxu0 }
 0x206   :  { %v2648_v12 = vpop.eup %2647  ;;  %v1735_v13 = vadd.f32 %v1734_v10, %v1445_v9  ;;  %v1736_v14 = vpop.f32.mrb[121].mxu1 }
 0x207   :  { %v1448_v15 = vpop.f32.mrb[122].mxu0  ;;  %2136 = vst [vmem:[%s3464_s3 + $0x1c8] sm:$0xff] %v2648_v12  ;;  %v1737_v16 = vpop.f32.mrb[122].mxu1 }
 0x208   :  { %v1450_v18 = vpop.f32.mrb[123].mxu0  ;;  %v2011_v19 = vadd.f32 %v3406_v29, %v1735_v13  ;;  %v1738_v20 = vadd.f32 %v1737_v16, %v1448_v15  ;;  %v1739_v21 = vpop.f32.mrb[123].mxu1 }
 0x20a   :  { %2653 = vtanh.f32 %v2011_v19  ;;  %v2012_v22 = vadd.f32 %v3406_v29, %v1738_v20 }
 0x20c   :  { %v2650_v23 = vpop.eup %2649  ;;  %2655 = vtanh.f32 %v2012_v22  ;;  %v1453_v24 = vpop.f32.mrb[124].mxu0 }
 0x20d   :  { %2137 = vst [vmem:[%s3464_s3 + $0x1d0] sm:$0xff] %v2650_v23  ;;  %v1742_v25 = vpop.f32.mrb[124].mxu1  ;;  %v1455_v26 = vpop.f32.mrb[125].mxu0 }
 0x20e   :  { %v2652_v27 = vpop.eup %2651  ;;  %v1743_v28 = vadd.f32 %v1742_v25, %v1453_v24  ;;  %v1744_v30 = vpop.f32.mrb[125].mxu1 }
 0x20f   :  { %v1456_v31 = vpop.f32.mrb[126].mxu0  ;;  %2138 = vst [vmem:[%s3464_s3 + $0x1d8] sm:$0xff] %v2652_v27  ;;  %v1745_v32 = vpop.f32.mrb[126].mxu1 }
 0x210   :  { %v1458_v33 = vpop.f32.mrb[127].mxu0  ;;  %v2013_v34 = vadd.f32 %v3406_v29, %v1743_v28  ;;  %v1746_v17 = vadd.f32 %v1745_v32, %v1456_v31  ;;  %v1747_v35 = vpop.f32.mrb[127].mxu1 }
 0x212   :  { %2657 = vtanh.f32 %v2013_v34  ;;  %v2014_v36 = vadd.f32 %v3406_v29, %v1746_v17 }
 0x214   :  { %v2654_v37 = vpop.eup %2653  ;;  %2659 = vtanh.f32 %v2014_v36 }
 0x215   :  { %2139 = vst [vmem:[%s3464_s3 + $0x1e0] sm:$0xff] %v2654_v37 }
 0x216   :  { %v2656_v38 = vpop.eup %2655 }
 0x217   :  { %2140 = vst [vmem:[%s3464_s3 + $0x1e8] sm:$0xff] %v2656_v38 }
 0x21c   :  { %v2658_v39 = vpop.eup %2657 }
 0x21d   :  { %2141 = vst [vmem:[%s3464_s3 + $0x1f0] sm:$0xff] %v2658_v39 }
 0x21e   :  { %v2660_v40 = vpop.eup %2659 }
 0x21f   :  { %2142 = vst [vmem:[%s3464_s3 + $0x1f8] sm:$0xff] %v2660_v40 }

</bundles_post_ra>
